<compile_context>
chip_gen: v6e
topology: v6e:2x2x1
jax: 0.10.0
libtpu: 0.0.40
codegen_flags: <defaults>
</compile_context>

<pallas_src>
import functools

import numpy as np
import jax
import jax.numpy as jnp
from jax.experimental import pallas as pl
from jax.experimental.pallas import tpu as pltpu


# ------------------------------------------------------------------------------
# Fused forward kernel (whole A2CNet forward; one grid step per batch tile).
# ------------------------------------------------------------------------------
def _a2c_fused_kernel(x_ref, h_ref, c_ref,
                      s1_ref, s2_ref, s3_ref, s4_ref,
                      w1_ref, w2_ref, w3_ref, w4_ref,
                      b1_ref, b2_ref, b3_ref, b4_ref,
                      pool_ref, wih_ref, whh_ref, bl_ref, wh_ref, bh_ref,
                      head_ref, h_out_ref, c_out_ref):
    f32, bf16 = jnp.float32, jnp.bfloat16
    s_refs = (s1_ref, s2_ref, s3_ref, s4_ref)
    w_refs = (w1_ref, w2_ref, w3_ref, w4_ref)
    b_refs = (b1_ref, b2_ref, b3_ref, b4_ref)

    # ---- ConvBlock: 4 x (conv3x3 s2 p1 + leaky_relu), all samples of the tile
    # ---- batched along sublanes (rows); everything stays VMEM resident.
    a = x_ref[...].astype(bf16)                        # (BT*H, W*C)
    for l in range(4):
        # stride-2 row taps via 0/1 block-diagonal bf16 selectors (exact),
        # lane-concatenated so the column taps run as ONE K-fused matmul.
        g = jnp.concatenate(
            [jnp.dot(s_refs[l][0], a, preferred_element_type=f32),
             jnp.dot(s_refs[l][1], a, preferred_element_type=f32),
             jnp.dot(s_refs[l][2], a, preferred_element_type=f32)],
            axis=1).astype(bf16)                       # (BT*OH, 3*W*C)
        # column taps / stride / padding encoded in the fused Toeplitz weight
        y = (jnp.dot(g, w_refs[l][...], preferred_element_type=f32)
             + b_refs[l][...])                         # (BT*OH, OW*F) f32
        a = jnp.where(y > 0, y, 0.01 * y).astype(bf16)  # leaky_relu

    # ---- AvgPool2d(2)+flatten: per-sample row-pair sum via a tiny 0/1 pool
    # ---- matmul; the column pair + 1/4 factor are folded into the LSTM wih.
    rs = jnp.dot(pool_ref[...], a, preferred_element_type=f32).astype(bf16)  # (BT, 2*F)

    # ---- LSTMCell: gates packed [i|f|g|o] at 384-lane (128-aligned) offsets.
    gates = (jnp.dot(rs, wih_ref[...], preferred_element_type=f32)
             + jnp.dot(h_ref[...].astype(bf16), whh_ref[...],
                       preferred_element_type=f32)
             + bl_ref[...])                            # (BT, 4*GP) f32
    GP = gates.shape[1] // 4
    i_g = jax.nn.sigmoid(gates[:, 0 * GP:1 * GP])
    f_g = jax.nn.sigmoid(gates[:, 1 * GP:2 * GP])
    g_g = jnp.tanh(gates[:, 2 * GP:3 * GP])
    o_g = jax.nn.sigmoid(gates[:, 3 * GP:4 * GP])
    # pad lanes carry gates == 0 -> c_pad = 0.5*0 + 0.5*tanh(0) = 0, h_pad = 0,
    # so the 288..383 lanes of the recurrent state stay exactly zero forever.
    c_new = f_g * c_ref[...] + i_g * g_g               # (BT, GP) f32
    h_new = o_g * jnp.tanh(c_new)
    c_out_ref[...] = c_new
    h_out_ref[...] = h_new

    # ---- merged actor|critic head (bf16 MXU, N padded to 128 lanes) ----
    head_ref[...] = (jnp.dot(h_new.astype(bf16), wh_ref[...],
                             preferred_element_type=f32) + bh_ref[...])


# ------------------------------------------------------------------------------
# Parameter construction (mirrors the PyTorch inits, pre-arranged into the
# kernel-ready layouts: fused Toeplitz conv taps, per-tap bf16 gather selectors,
# lane-aligned LSTM gate weights with the AvgPool folded in, padded merged head).
# ------------------------------------------------------------------------------
def orthogonal_init(key, shape, gain=1.0):
    rows = shape[0]
    cols = int(np.prod(shape[1:]))
    a = jax.random.normal(key, (max(rows, cols), min(rows, cols)), jnp.float32)
    q, r = jnp.linalg.qr(a)
    q = q * jnp.sign(jnp.diagonal(r))
    if rows < cols:
        q = q.T
    return (gain * q[:rows, :cols]).reshape(shape).astype(jnp.float32)


def make_params(key, n_stack, num_actions, *, h1=288, num_filter=32, k=3,
                spatial=32, gate_pad=384, batch_tile=2, head_pad=128):
    assert gate_pad % 128 == 0 and gate_pad >= h1
    assert num_actions + 1 <= head_pad
    keys = jax.random.split(key, 10)
    leaky_gain = float(np.sqrt(2.0 / (1.0 + 0.01 ** 2)))  # calculate_gain('leaky_relu')
    params = {}
    F = num_filter
    BT = batch_tile

    cins = [n_stack, F, F, F]
    widths = [spatial // (2 ** i) for i in range(4)]       # conv input H=W per layer
    for li in range(4):
        C, Win = cins[li], widths[li]
        OW = OH = Win // 2
        w = np.asarray(orthogonal_init(keys[li], (F, C, k, k), leaky_gain))  # (F,C,3,3)
        # fused block-Toeplitz column-tap matrix: (3*Win*C, OW*F)
        wf = np.zeros((k * Win * C, OW * F), np.float32)
        for di in range(k):
            base = di * Win * C
            for ow in range(OW):
                for dj in range(k):
                    s = 2 * ow + dj - 1
                    if 0 <= s < Win:
                        wf[base + s * C:base + (s + 1) * C,
                           ow * F:(ow + 1) * F] = w[:, :, di, dj].T
        params[f"conv{li+1}_w"] = jnp.asarray(wf, jnp.bfloat16)
        params[f"conv{li+1}_b"] = jnp.zeros((1, OW * F), jnp.float32)  # bias init 0
        # per-tap stride-2 row selectors, block-diagonal over the batch tile
        # (zero rows encode the top/bottom padding rows); bf16 0/1 is exact.
        S = np.zeros((k, BT * OH, BT * Win), np.float32)
        for di in range(k):
            for b in range(BT):
                for oh in range(OH):
                    r = 2 * oh + di - 1
                    if 0 <= r < Win:
                        S[di, b * OH + oh, b * Win + r] = 1.0
        params[f"conv{li+1}_s"] = jnp.asarray(S, jnp.bfloat16)

    # AvgPool2d(2) row-pair sum selector (per sample of the tile)
    P = np.zeros((BT, 2 * BT), np.float32)
    for b in range(BT):
        P[b, 2 * b] = 1.0
        P[b, 2 * b + 1] = 1.0
    params["pool"] = jnp.asarray(P, jnp.bfloat16)

    # LSTMCell default PyTorch init: U(-1/sqrt(H), 1/sqrt(H)); gate order i,f,g,o
    in_size = F                              # conv features after the 2x2 pool -> 1x1
    stdv = 1.0 / np.sqrt(h1)
    wih = np.asarray(jax.random.uniform(keys[4], (4 * h1, in_size), jnp.float32, -stdv, stdv))
    whh = np.asarray(jax.random.uniform(keys[5], (4 * h1, h1), jnp.float32, -stdv, stdv))
    bih = np.asarray(jax.random.uniform(keys[6], (4 * h1,), jnp.float32, -stdv, stdv))
    bhh = np.asarray(jax.random.uniform(keys[7], (4 * h1,), jnp.float32, -stdv, stdv))
    GP = gate_pad
    wih_p = np.zeros((in_size, 4 * GP), np.float32)
    whh_p = np.zeros((GP, 4 * GP), np.float32)          # K padded to 384 rows
    b_p = np.zeros((1, 4 * GP), np.float32)
    bsum = bih + bhh
    for gi in range(4):
        wih_p[:, gi * GP:gi * GP + h1] = wih[gi * h1:(gi + 1) * h1, :].T
        whh_p[:h1, gi * GP:gi * GP + h1] = whh[gi * h1:(gi + 1) * h1, :].T
        b_p[0, gi * GP:gi * GP + h1] = bsum[gi * h1:(gi + 1) * h1]
    # fold AvgPool2d(2) (0.25 factor + the two ow column positions of the
    # kernel's row-summed conv4 output) into the LSTM input weight
    wih_fold = 0.25 * np.concatenate([wih_p, wih_p], axis=0)   # (2*in_size, 4*GP)
    params["lstm_wih"] = jnp.asarray(wih_fold, jnp.bfloat16)
    params["lstm_whh"] = jnp.asarray(whh_p, jnp.bfloat16)
    params["lstm_b"] = jnp.asarray(b_p, jnp.float32)

    # merged actor|critic head (orthogonal gain 1, bias 0), K padded to 384,
    # N padded to 128 lanes so the output store is unmasked.
    wa = np.asarray(orthogonal_init(keys[8], (num_actions, h1), 1.0))   # (A, 288)
    wc = np.asarray(orthogonal_init(keys[9], (1, h1), 1.0))             # (1, 288)
    wh_pad = np.zeros((GP, head_pad), np.float32)
    wh_pad[:h1, :num_actions + 1] = np.concatenate([wa, wc], axis=0).T
    params["head_w"] = jnp.asarray(wh_pad, jnp.bfloat16)
    params["head_b"] = jnp.zeros((1, head_pad), jnp.float32)
    return params


# ------------------------------------------------------------------------------
# A2CNet forward (single fused pallas_call; batch-tile grid, weights resident)
# ------------------------------------------------------------------------------
def a2c_forward(params, state, h_pad, c_pad, *, num_actions, h1=288,
                channels_last=False):
    if not channels_last:
        # PyTorch-style NCHW input; pass NHWC + channels_last=True upstream to
        # skip this transpose in a latency-critical stepping loop.
        state = jnp.transpose(state, (0, 2, 3, 1))
    B, H0, W0, C0 = state.shape
    BT = int(params["pool"].shape[0])        # batch tile the selectors were built for
    assert B % BT == 0, "batch must be a multiple of the batch tile"
    GP = h_pad.shape[1]                      # lane-padded hidden width (384)
    HEAD_N = params["head_b"].shape[1]       # lane-padded head width (128)
    nb = B // BT

    # (b, h, w, c) -> rows (b*H + h), cols (w*C + c): the batched conv slab
    x2d = state.reshape(B * H0, W0 * C0).astype(jnp.float32)

    def batch_spec(block_shape):
        nd = len(block_shape)
        return pl.BlockSpec(block_shape, lambda i, _nd=nd: (i,) + (0,) * (_nd - 1))

    def const_spec(shape):
        nd = len(shape)
        return pl.BlockSpec(tuple(shape), lambda i, _nd=nd: (0,) * _nd)

    weight_args = (params["conv1_s"], params["conv2_s"], params["conv3_s"], params["conv4_s"],
                   params["conv1_w"], params["conv2_w"], params["conv3_w"], params["conv4_w"],
                   params["conv1_b"], params["conv2_b"], params["conv3_b"], params["conv4_b"],
                   params["pool"],
                   params["lstm_wih"], params["lstm_whh"], params["lstm_b"],
                   params["head_w"], params["head_b"])

    in_specs = ([batch_spec((BT * H0, W0 * C0)),     # x: blocked over batch tiles
                 batch_spec((BT, GP)),               # h
                 batch_spec((BT, GP))]               # c
                + [const_spec(w.shape) for w in weight_args])  # weights: VMEM resident

    out_shape = (jax.ShapeDtypeStruct((B, HEAD_N), jnp.float32),   # [policy|value|pad]
                 jax.ShapeDtypeStruct((B, GP), jnp.float32),       # h_new (padded)
                 jax.ShapeDtypeStruct((B, GP), jnp.float32))       # c_new (padded)
    out_specs = [batch_spec((BT, HEAD_N)), batch_spec((BT, GP)), batch_spec((BT, GP))]

    head, h_new, c_new = pl.pallas_call(
        _a2c_fused_kernel,
        out_shape=out_shape,
        grid=(nb,),
        in_specs=in_specs,
        out_specs=out_specs,
        # recurrent state updated in place (stepping loop friendly)
        input_output_aliases={1: 1, 2: 2},
        compiler_params=pltpu.CompilerParams(dimension_semantics=("parallel",)),
        cost_estimate=pl.CostEstimate(flops=34_000_000 * nb,
                                      transcendentals=4_000 * nb,
                                      bytes_accessed=3_100_000),
    )(x2d, h_pad, c_pad, *weight_args)

    policy = head[:, :num_actions]
    value = head[:, num_actions]             # == torch.squeeze(critic(feature)) for B > 1
    feature = h_new[:, :h1]
    return policy, value, feature, h_new, c_new


# ------------------------------------------------------------------------------
if __name__ == "__main__":
    n_stack = 4           # stacked input frames (channels)
    spatial = 32          # 32 -> 16 -> 8 -> 4 -> 2 (convs) -> 1 (avgpool)
    num_actions = 4
    h1 = 288
    gate_pad = 384        # lane-padded hidden width carried by the kernel
    batch = 2

    key = jax.random.PRNGKey(0)
    pkey, xkey = jax.random.split(key)
    params = make_params(pkey, n_stack, num_actions, h1=h1, spatial=spatial,
                         gate_pad=gate_pad, batch_tile=batch)

    # NCHW state, exactly like the PyTorch module receives
    state = jax.random.normal(xkey, (batch, n_stack, spatial, spatial), jnp.float32)

    # set_recurrent_buffers(buf_size=batch): zero LSTM hidden/cell state
    # (carried lane-padded to 384; lanes 288..383 stay exactly zero)
    h0 = jnp.zeros((batch, gate_pad), jnp.float32)
    c0 = jnp.zeros((batch, gate_pad), jnp.float32)

    fwd = jax.jit(functools.partial(a2c_forward, num_actions=num_actions, h1=h1))
    policy, value, feature, h1_s, c1_s = fwd(params, state, h0, c0)
    jax.block_until_ready((policy, value, feature, h1_s, c1_s))

    assert policy.shape == (batch, num_actions)
    assert value.shape == (batch,)
    assert feature.shape == (batch, h1)
    assert h1_s.shape == (batch, gate_pad) and c1_s.shape == (batch, gate_pad)
    print("KERNEL_OK")
</pallas_src>

<mosaic_0001>
module attributes {stable_mosaic.version = 11 : i64} {
  func.func @_a2c_fused_kernel(%arg0: i32, %arg1: memref<64x128xf32, #tpu.memory_space<vmem>>, %arg2: memref<2x384xf32, #tpu.memory_space<vmem>>, %arg3: memref<2x384xf32, #tpu.memory_space<vmem>>, %arg4: memref<3x32x64xbf16, #tpu.memory_space<vmem>>, %arg5: memref<3x16x32xbf16, #tpu.memory_space<vmem>>, %arg6: memref<3x8x16xbf16, #tpu.memory_space<vmem>>, %arg7: memref<3x4x8xbf16, #tpu.memory_space<vmem>>, %arg8: memref<384x512xbf16, #tpu.memory_space<vmem>>, %arg9: memref<1536x256xbf16, #tpu.memory_space<vmem>>, %arg10: memref<768x128xbf16, #tpu.memory_space<vmem>>, %arg11: memref<384x64xbf16, #tpu.memory_space<vmem>>, %arg12: memref<1x512xf32, #tpu.memory_space<vmem>>, %arg13: memref<1x256xf32, #tpu.memory_space<vmem>>, %arg14: memref<1x128xf32, #tpu.memory_space<vmem>>, %arg15: memref<1x64xf32, #tpu.memory_space<vmem>>, %arg16: memref<2x4xbf16, #tpu.memory_space<vmem>>, %arg17: memref<64x1536xbf16, #tpu.memory_space<vmem>>, %arg18: memref<384x1536xbf16, #tpu.memory_space<vmem>>, %arg19: memref<1x1536xf32, #tpu.memory_space<vmem>>, %arg20: memref<384x128xbf16, #tpu.memory_space<vmem>>, %arg21: memref<1x128xf32, #tpu.memory_space<vmem>>, %arg22: memref<2x128xf32, #tpu.memory_space<vmem>>, %arg23: memref<2x384xf32, #tpu.memory_space<vmem>>, %arg24: memref<2x384xf32, #tpu.memory_space<vmem>>) attributes {dimension_semantics = [#tpu.dimension_semantics<parallel>], iteration_bounds = array<i64: 1>, scalar_prefetch = 0 : i64, scratch_operands = 0 : i64, tpu.core_type = #tpu.core_type<tc>, window_params = [{transform_indices = @transform_0, window_bounds = array<i64: 64, 128>}, {transform_indices = @transform_1, window_bounds = array<i64: 2, 384>}, {transform_indices = @transform_2, window_bounds = array<i64: 2, 384>}, {pipeline_mode = #tpu.pipeline_mode<synchronous>, transform_indices = @transform_3, window_bounds = array<i64: 3, 32, 64>}, {pipeline_mode = #tpu.pipeline_mode<synchronous>, transform_indices = @transform_4, window_bounds = array<i64: 3, 16, 32>}, {pipeline_mode = #tpu.pipeline_mode<synchronous>, transform_indices = @transform_5, window_bounds = array<i64: 3, 8, 16>}, {pipeline_mode = #tpu.pipeline_mode<synchronous>, transform_indices = @transform_6, window_bounds = array<i64: 3, 4, 8>}, {pipeline_mode = #tpu.pipeline_mode<synchronous>, transform_indices = @transform_7, window_bounds = array<i64: 384, 512>}, {pipeline_mode = #tpu.pipeline_mode<synchronous>, transform_indices = @transform_8, window_bounds = array<i64: 1536, 256>}, {pipeline_mode = #tpu.pipeline_mode<synchronous>, transform_indices = @transform_9, window_bounds = array<i64: 768, 128>}, {pipeline_mode = #tpu.pipeline_mode<synchronous>, transform_indices = @transform_10, window_bounds = array<i64: 384, 64>}, {pipeline_mode = #tpu.pipeline_mode<synchronous>, transform_indices = @transform_11, window_bounds = array<i64: 1, 512>}, {pipeline_mode = #tpu.pipeline_mode<synchronous>, transform_indices = @transform_12, window_bounds = array<i64: 1, 256>}, {pipeline_mode = #tpu.pipeline_mode<synchronous>, transform_indices = @transform_13, window_bounds = array<i64: 1, 128>}, {pipeline_mode = #tpu.pipeline_mode<synchronous>, transform_indices = @transform_14, window_bounds = array<i64: 1, 64>}, {pipeline_mode = #tpu.pipeline_mode<synchronous>, transform_indices = @transform_15, window_bounds = array<i64: 2, 4>}, {pipeline_mode = #tpu.pipeline_mode<synchronous>, transform_indices = @transform_16, window_bounds = array<i64: 64, 1536>}, {pipeline_mode = #tpu.pipeline_mode<synchronous>, transform_indices = @transform_17, window_bounds = array<i64: 384, 1536>}, {pipeline_mode = #tpu.pipeline_mode<synchronous>, transform_indices = @transform_18, window_bounds = array<i64: 1, 1536>}, {pipeline_mode = #tpu.pipeline_mode<synchronous>, transform_indices = @transform_19, window_bounds = array<i64: 384, 128>}, {pipeline_mode = #tpu.pipeline_mode<synchronous>, transform_indices = @transform_20, window_bounds = array<i64: 1, 128>}, {transform_indices = @transform_21, window_bounds = array<i64: 2, 128>}, {transform_indices = @transform_22, window_bounds = array<i64: 2, 384>}, {transform_indices = @transform_23, window_bounds = array<i64: 2, 384>}]} {
    %c0 = arith.constant 0 : index
    %c0_0 = arith.constant 0 : index
    %0 = vector.load %arg1[%c0, %c0_0] : memref<64x128xf32, #tpu.memory_space<vmem>>, vector<64x128xf32>
    %1 = arith.truncf %0 : vector<64x128xf32> to vector<64x128xbf16>
    %c0_1 = arith.constant 0 : index
    %c0_2 = arith.constant 0 : index
    %c0_3 = arith.constant 0 : index
    %2 = vector.load %arg4[%c0_1, %c0_2, %c0_3] : memref<3x32x64xbf16, #tpu.memory_space<vmem>>, vector<1x32x64xbf16>
    %3 = vector.shape_cast %2 : vector<1x32x64xbf16> to vector<32x64xbf16>
    %cst = arith.constant dense<0.000000e+00> : vector<32x128xf32>
    %4 = tpu.matmul %3, %1, %cst {dimension_numbers = #tpu.dot_dimension_numbers<[1], [0], [0], [1], [0, 0, 1, 1], [], []>} : vector<32x64xbf16>, vector<64x128xbf16>, vector<32x128xf32> -> vector<32x128xf32>
    %c1 = arith.constant 1 : index
    %c0_4 = arith.constant 0 : index
    %c0_5 = arith.constant 0 : index
    %5 = vector.load %arg4[%c1, %c0_4, %c0_5] : memref<3x32x64xbf16, #tpu.memory_space<vmem>>, vector<1x32x64xbf16>
    %6 = vector.shape_cast %5 : vector<1x32x64xbf16> to vector<32x64xbf16>
    %cst_6 = arith.constant dense<0.000000e+00> : vector<32x128xf32>
    %7 = tpu.matmul %6, %1, %cst_6 {dimension_numbers = #tpu.dot_dimension_numbers<[1], [0], [0], [1], [0, 0, 1, 1], [], []>} : vector<32x64xbf16>, vector<64x128xbf16>, vector<32x128xf32> -> vector<32x128xf32>
    %c2 = arith.constant 2 : index
    %c0_7 = arith.constant 0 : index
    %c0_8 = arith.constant 0 : index
    %8 = vector.load %arg4[%c2, %c0_7, %c0_8] : memref<3x32x64xbf16, #tpu.memory_space<vmem>>, vector<1x32x64xbf16>
    %9 = vector.shape_cast %8 : vector<1x32x64xbf16> to vector<32x64xbf16>
    %cst_9 = arith.constant dense<0.000000e+00> : vector<32x128xf32>
    %10 = tpu.matmul %9, %1, %cst_9 {dimension_numbers = #tpu.dot_dimension_numbers<[1], [0], [0], [1], [0, 0, 1, 1], [], []>} : vector<32x64xbf16>, vector<64x128xbf16>, vector<32x128xf32> -> vector<32x128xf32>
    %11 = tpu.concatenate %4, %7, %10 in 1 : vector<32x128xf32>, vector<32x128xf32>, vector<32x128xf32> -> vector<32x384xf32>
    %12 = arith.truncf %11 : vector<32x384xf32> to vector<32x384xbf16>
    %c0_10 = arith.constant 0 : index
    %c0_11 = arith.constant 0 : index
    %13 = vector.load %arg8[%c0_10, %c0_11] : memref<384x512xbf16, #tpu.memory_space<vmem>>, vector<384x512xbf16>
    %cst_12 = arith.constant dense<0.000000e+00> : vector<32x512xf32>
    %14 = tpu.matmul %12, %13, %cst_12 {dimension_numbers = #tpu.dot_dimension_numbers<[1], [0], [0], [1], [0, 0, 1, 1], [], []>} : vector<32x384xbf16>, vector<384x512xbf16>, vector<32x512xf32> -> vector<32x512xf32>
    %c0_13 = arith.constant 0 : index
    %c0_14 = arith.constant 0 : index
    %15 = vector.load %arg12[%c0_13, %c0_14] : memref<1x512xf32, #tpu.memory_space<vmem>>, vector<1x512xf32>
    %16 = vector.broadcast %15 : vector<1x512xf32> to vector<32x512xf32>
    %17 = arith.addf %14, %16 : vector<32x512xf32>
    %cst_15 = arith.constant 0.000000e+00 : f32
    %18 = vector.broadcast %cst_15 : f32 to vector<32x512xf32>
    %19 = arith.cmpf ogt, %17, %18 : vector<32x512xf32>
    %cst_16 = arith.constant 0.00999999977 : f32
    %20 = vector.broadcast %cst_16 : f32 to vector<32x512xf32>
    %21 = arith.mulf %20, %17 : vector<32x512xf32>
    %22 = arith.select %19, %17, %21 : vector<32x512xi1>, vector<32x512xf32>
    %23 = arith.truncf %22 : vector<32x512xf32> to vector<32x512xbf16>
    %c0_17 = arith.constant 0 : index
    %c0_18 = arith.constant 0 : index
    %c0_19 = arith.constant 0 : index
    %24 = vector.load %arg5[%c0_17, %c0_18, %c0_19] : memref<3x16x32xbf16, #tpu.memory_space<vmem>>, vector<1x16x32xbf16>
    %25 = vector.shape_cast %24 : vector<1x16x32xbf16> to vector<16x32xbf16>
    %cst_20 = arith.constant dense<0.000000e+00> : vector<16x512xf32>
    %26 = tpu.matmul %25, %23, %cst_20 {dimension_numbers = #tpu.dot_dimension_numbers<[1], [0], [0], [1], [0, 0, 1, 1], [], []>} : vector<16x32xbf16>, vector<32x512xbf16>, vector<16x512xf32> -> vector<16x512xf32>
    %c1_21 = arith.constant 1 : index
    %c0_22 = arith.constant 0 : index
    %c0_23 = arith.constant 0 : index
    %27 = vector.load %arg5[%c1_21, %c0_22, %c0_23] : memref<3x16x32xbf16, #tpu.memory_space<vmem>>, vector<1x16x32xbf16>
    %28 = vector.shape_cast %27 : vector<1x16x32xbf16> to vector<16x32xbf16>
    %cst_24 = arith.constant dense<0.000000e+00> : vector<16x512xf32>
    %29 = tpu.matmul %28, %23, %cst_24 {dimension_numbers = #tpu.dot_dimension_numbers<[1], [0], [0], [1], [0, 0, 1, 1], [], []>} : vector<16x32xbf16>, vector<32x512xbf16>, vector<16x512xf32> -> vector<16x512xf32>
    %c2_25 = arith.constant 2 : index
    %c0_26 = arith.constant 0 : index
    %c0_27 = arith.constant 0 : index
    %30 = vector.load %arg5[%c2_25, %c0_26, %c0_27] : memref<3x16x32xbf16, #tpu.memory_space<vmem>>, vector<1x16x32xbf16>
    %31 = vector.shape_cast %30 : vector<1x16x32xbf16> to vector<16x32xbf16>
    %cst_28 = arith.constant dense<0.000000e+00> : vector<16x512xf32>
    %32 = tpu.matmul %31, %23, %cst_28 {dimension_numbers = #tpu.dot_dimension_numbers<[1], [0], [0], [1], [0, 0, 1, 1], [], []>} : vector<16x32xbf16>, vector<32x512xbf16>, vector<16x512xf32> -> vector<16x512xf32>
    %33 = tpu.concatenate %26, %29, %32 in 1 : vector<16x512xf32>, vector<16x512xf32>, vector<16x512xf32> -> vector<16x1536xf32>
    %34 = arith.truncf %33 : vector<16x1536xf32> to vector<16x1536xbf16>
    %c0_29 = arith.constant 0 : index
    %c0_30 = arith.constant 0 : index
    %35 = vector.load %arg9[%c0_29, %c0_30] : memref<1536x256xbf16, #tpu.memory_space<vmem>>, vector<1536x256xbf16>
    %cst_31 = arith.constant dense<0.000000e+00> : vector<16x256xf32>
    %36 = tpu.matmul %34, %35, %cst_31 {dimension_numbers = #tpu.dot_dimension_numbers<[1], [0], [0], [1], [0, 0, 1, 1], [], []>} : vector<16x1536xbf16>, vector<1536x256xbf16>, vector<16x256xf32> -> vector<16x256xf32>
    %c0_32 = arith.constant 0 : index
    %c0_33 = arith.constant 0 : index
    %37 = vector.load %arg13[%c0_32, %c0_33] : memref<1x256xf32, #tpu.memory_space<vmem>>, vector<1x256xf32>
    %38 = vector.broadcast %37 : vector<1x256xf32> to vector<16x256xf32>
    %39 = arith.addf %36, %38 : vector<16x256xf32>
    %cst_34 = arith.constant 0.000000e+00 : f32
    %40 = vector.broadcast %cst_34 : f32 to vector<16x256xf32>
    %41 = arith.cmpf ogt, %39, %40 : vector<16x256xf32>
    %cst_35 = arith.constant 0.00999999977 : f32
    %42 = vector.broadcast %cst_35 : f32 to vector<16x256xf32>
    %43 = arith.mulf %42, %39 : vector<16x256xf32>
    %44 = arith.select %41, %39, %43 : vector<16x256xi1>, vector<16x256xf32>
    %45 = arith.truncf %44 : vector<16x256xf32> to vector<16x256xbf16>
    %c0_36 = arith.constant 0 : index
    %c0_37 = arith.constant 0 : index
    %c0_38 = arith.constant 0 : index
    %46 = vector.load %arg6[%c0_36, %c0_37, %c0_38] : memref<3x8x16xbf16, #tpu.memory_space<vmem>>, vector<1x8x16xbf16>
    %47 = vector.shape_cast %46 : vector<1x8x16xbf16> to vector<8x16xbf16>
    %cst_39 = arith.constant dense<0.000000e+00> : vector<8x256xf32>
    %48 = tpu.matmul %47, %45, %cst_39 {dimension_numbers = #tpu.dot_dimension_numbers<[1], [0], [0], [1], [0, 0, 1, 1], [], []>} : vector<8x16xbf16>, vector<16x256xbf16>, vector<8x256xf32> -> vector<8x256xf32>
    %c1_40 = arith.constant 1 : index
    %c0_41 = arith.constant 0 : index
    %c0_42 = arith.constant 0 : index
    %49 = vector.load %arg6[%c1_40, %c0_41, %c0_42] : memref<3x8x16xbf16, #tpu.memory_space<vmem>>, vector<1x8x16xbf16>
    %50 = vector.shape_cast %49 : vector<1x8x16xbf16> to vector<8x16xbf16>
    %cst_43 = arith.constant dense<0.000000e+00> : vector<8x256xf32>
    %51 = tpu.matmul %50, %45, %cst_43 {dimension_numbers = #tpu.dot_dimension_numbers<[1], [0], [0], [1], [0, 0, 1, 1], [], []>} : vector<8x16xbf16>, vector<16x256xbf16>, vector<8x256xf32> -> vector<8x256xf32>
    %c2_44 = arith.constant 2 : index
    %c0_45 = arith.constant 0 : index
    %c0_46 = arith.constant 0 : index
    %52 = vector.load %arg6[%c2_44, %c0_45, %c0_46] : memref<3x8x16xbf16, #tpu.memory_space<vmem>>, vector<1x8x16xbf16>
    %53 = vector.shape_cast %52 : vector<1x8x16xbf16> to vector<8x16xbf16>
    %cst_47 = arith.constant dense<0.000000e+00> : vector<8x256xf32>
    %54 = tpu.matmul %53, %45, %cst_47 {dimension_numbers = #tpu.dot_dimension_numbers<[1], [0], [0], [1], [0, 0, 1, 1], [], []>} : vector<8x16xbf16>, vector<16x256xbf16>, vector<8x256xf32> -> vector<8x256xf32>
    %55 = tpu.concatenate %48, %51, %54 in 1 : vector<8x256xf32>, vector<8x256xf32>, vector<8x256xf32> -> vector<8x768xf32>
    %56 = arith.truncf %55 : vector<8x768xf32> to vector<8x768xbf16>
    %c0_48 = arith.constant 0 : index
    %c0_49 = arith.constant 0 : index
    %57 = vector.load %arg10[%c0_48, %c0_49] : memref<768x128xbf16, #tpu.memory_space<vmem>>, vector<768x128xbf16>
    %cst_50 = arith.constant dense<0.000000e+00> : vector<8x128xf32>
    %58 = tpu.matmul %56, %57, %cst_50 {dimension_numbers = #tpu.dot_dimension_numbers<[1], [0], [0], [1], [0, 0, 1, 1], [], []>} : vector<8x768xbf16>, vector<768x128xbf16>, vector<8x128xf32> -> vector<8x128xf32>
    %c0_51 = arith.constant 0 : index
    %c0_52 = arith.constant 0 : index
    %59 = vector.load %arg14[%c0_51, %c0_52] : memref<1x128xf32, #tpu.memory_space<vmem>>, vector<1x128xf32>
    %60 = vector.broadcast %59 : vector<1x128xf32> to vector<8x128xf32>
    %61 = arith.addf %58, %60 : vector<8x128xf32>
    %cst_53 = arith.constant 0.000000e+00 : f32
    %62 = vector.broadcast %cst_53 : f32 to vector<8x128xf32>
    %63 = arith.cmpf ogt, %61, %62 : vector<8x128xf32>
    %cst_54 = arith.constant 0.00999999977 : f32
    %64 = vector.broadcast %cst_54 : f32 to vector<8x128xf32>
    %65 = arith.mulf %64, %61 : vector<8x128xf32>
    %66 = arith.select %63, %61, %65 : vector<8x128xi1>, vector<8x128xf32>
    %67 = arith.truncf %66 : vector<8x128xf32> to vector<8x128xbf16>
    %c0_55 = arith.constant 0 : index
    %c0_56 = arith.constant 0 : index
    %c0_57 = arith.constant 0 : index
    %68 = vector.load %arg7[%c0_55, %c0_56, %c0_57] : memref<3x4x8xbf16, #tpu.memory_space<vmem>>, vector<1x4x8xbf16>
    %69 = vector.shape_cast %68 : vector<1x4x8xbf16> to vector<4x8xbf16>
    %cst_58 = arith.constant dense<0.000000e+00> : vector<4x128xf32>
    %70 = tpu.matmul %69, %67, %cst_58 {dimension_numbers = #tpu.dot_dimension_numbers<[1], [0], [0], [1], [0, 0, 1, 1], [], []>} : vector<4x8xbf16>, vector<8x128xbf16>, vector<4x128xf32> -> vector<4x128xf32>
    %c1_59 = arith.constant 1 : index
    %c0_60 = arith.constant 0 : index
    %c0_61 = arith.constant 0 : index
    %71 = vector.load %arg7[%c1_59, %c0_60, %c0_61] : memref<3x4x8xbf16, #tpu.memory_space<vmem>>, vector<1x4x8xbf16>
    %72 = vector.shape_cast %71 : vector<1x4x8xbf16> to vector<4x8xbf16>
    %cst_62 = arith.constant dense<0.000000e+00> : vector<4x128xf32>
    %73 = tpu.matmul %72, %67, %cst_62 {dimension_numbers = #tpu.dot_dimension_numbers<[1], [0], [0], [1], [0, 0, 1, 1], [], []>} : vector<4x8xbf16>, vector<8x128xbf16>, vector<4x128xf32> -> vector<4x128xf32>
    %c2_63 = arith.constant 2 : index
    %c0_64 = arith.constant 0 : index
    %c0_65 = arith.constant 0 : index
    %74 = vector.load %arg7[%c2_63, %c0_64, %c0_65] : memref<3x4x8xbf16, #tpu.memory_space<vmem>>, vector<1x4x8xbf16>
    %75 = vector.shape_cast %74 : vector<1x4x8xbf16> to vector<4x8xbf16>
    %cst_66 = arith.constant dense<0.000000e+00> : vector<4x128xf32>
    %76 = tpu.matmul %75, %67, %cst_66 {dimension_numbers = #tpu.dot_dimension_numbers<[1], [0], [0], [1], [0, 0, 1, 1], [], []>} : vector<4x8xbf16>, vector<8x128xbf16>, vector<4x128xf32> -> vector<4x128xf32>
    %77 = tpu.concatenate %70, %73, %76 in 1 : vector<4x128xf32>, vector<4x128xf32>, vector<4x128xf32> -> vector<4x384xf32>
    %78 = arith.truncf %77 : vector<4x384xf32> to vector<4x384xbf16>
    %c0_67 = arith.constant 0 : index
    %c0_68 = arith.constant 0 : index
    %79 = vector.load %arg11[%c0_67, %c0_68] : memref<384x64xbf16, #tpu.memory_space<vmem>>, vector<384x64xbf16>
    %cst_69 = arith.constant dense<0.000000e+00> : vector<4x64xf32>
    %80 = tpu.matmul %78, %79, %cst_69 {dimension_numbers = #tpu.dot_dimension_numbers<[1], [0], [0], [1], [0, 0, 1, 1], [], []>} : vector<4x384xbf16>, vector<384x64xbf16>, vector<4x64xf32> -> vector<4x64xf32>
    %c0_70 = arith.constant 0 : index
    %c0_71 = arith.constant 0 : index
    %81 = vector.load %arg15[%c0_70, %c0_71] : memref<1x64xf32, #tpu.memory_space<vmem>>, vector<1x64xf32>
    %82 = vector.broadcast %81 : vector<1x64xf32> to vector<4x64xf32>
    %83 = arith.addf %80, %82 : vector<4x64xf32>
    %cst_72 = arith.constant 0.000000e+00 : f32
    %84 = vector.broadcast %cst_72 : f32 to vector<4x64xf32>
    %85 = arith.cmpf ogt, %83, %84 : vector<4x64xf32>
    %cst_73 = arith.constant 0.00999999977 : f32
    %86 = vector.broadcast %cst_73 : f32 to vector<4x64xf32>
    %87 = arith.mulf %86, %83 : vector<4x64xf32>
    %88 = arith.select %85, %83, %87 : vector<4x64xi1>, vector<4x64xf32>
    %89 = arith.truncf %88 : vector<4x64xf32> to vector<4x64xbf16>
    %c0_74 = arith.constant 0 : index
    %c0_75 = arith.constant 0 : index
    %90 = vector.load %arg16[%c0_74, %c0_75] : memref<2x4xbf16, #tpu.memory_space<vmem>>, vector<2x4xbf16>
    %cst_76 = arith.constant dense<0.000000e+00> : vector<2x64xf32>
    %91 = tpu.matmul %90, %89, %cst_76 {dimension_numbers = #tpu.dot_dimension_numbers<[1], [0], [0], [1], [0, 0, 1, 1], [], []>} : vector<2x4xbf16>, vector<4x64xbf16>, vector<2x64xf32> -> vector<2x64xf32>
    %92 = arith.truncf %91 : vector<2x64xf32> to vector<2x64xbf16>
    %c0_77 = arith.constant 0 : index
    %c0_78 = arith.constant 0 : index
    %93 = vector.load %arg17[%c0_77, %c0_78] : memref<64x1536xbf16, #tpu.memory_space<vmem>>, vector<64x1536xbf16>
    %cst_79 = arith.constant dense<0.000000e+00> : vector<2x1536xf32>
    %94 = tpu.matmul %92, %93, %cst_79 {dimension_numbers = #tpu.dot_dimension_numbers<[1], [0], [0], [1], [0, 0, 1, 1], [], []>} : vector<2x64xbf16>, vector<64x1536xbf16>, vector<2x1536xf32> -> vector<2x1536xf32>
    %c0_80 = arith.constant 0 : index
    %c0_81 = arith.constant 0 : index
    %95 = vector.load %arg2[%c0_80, %c0_81] : memref<2x384xf32, #tpu.memory_space<vmem>>, vector<2x384xf32>
    %96 = arith.truncf %95 : vector<2x384xf32> to vector<2x384xbf16>
    %c0_82 = arith.constant 0 : index
    %c0_83 = arith.constant 0 : index
    %97 = vector.load %arg18[%c0_82, %c0_83] : memref<384x1536xbf16, #tpu.memory_space<vmem>>, vector<384x1536xbf16>
    %cst_84 = arith.constant dense<0.000000e+00> : vector<2x1536xf32>
    %98 = tpu.matmul %96, %97, %cst_84 {dimension_numbers = #tpu.dot_dimension_numbers<[1], [0], [0], [1], [0, 0, 1, 1], [], []>} : vector<2x384xbf16>, vector<384x1536xbf16>, vector<2x1536xf32> -> vector<2x1536xf32>
    %99 = arith.addf %94, %98 : vector<2x1536xf32>
    %c0_85 = arith.constant 0 : index
    %c0_86 = arith.constant 0 : index
    %100 = vector.load %arg19[%c0_85, %c0_86] : memref<1x1536xf32, #tpu.memory_space<vmem>>, vector<1x1536xf32>
    %101 = vector.broadcast %100 : vector<1x1536xf32> to vector<2x1536xf32>
    %102 = arith.addf %99, %101 : vector<2x1536xf32>
    %103 = vector.extract_strided_slice %102 {offsets = [0, 0], sizes = [2, 384], strides = [1, 1]} : vector<2x1536xf32> to vector<2x384xf32>
    %104 = arith.negf %103 : vector<2x384xf32>
    %105 = math.exp %104 : vector<2x384xf32>
    %cst_87 = arith.constant 1.000000e+00 : f32
    %106 = vector.broadcast %cst_87 : f32 to vector<2x384xf32>
    %107 = arith.addf %106, %105 : vector<2x384xf32>
    %108 = arith.divf %106, %107 : vector<2x384xf32>
    %109 = vector.extract_strided_slice %102 {offsets = [0, 384], sizes = [2, 384], strides = [1, 1]} : vector<2x1536xf32> to vector<2x384xf32>
    %110 = arith.negf %109 : vector<2x384xf32>
    %111 = math.exp %110 : vector<2x384xf32>
    %cst_88 = arith.constant 1.000000e+00 : f32
    %112 = vector.broadcast %cst_88 : f32 to vector<2x384xf32>
    %113 = arith.addf %112, %111 : vector<2x384xf32>
    %114 = arith.divf %112, %113 : vector<2x384xf32>
    %115 = vector.extract_strided_slice %102 {offsets = [0, 768], sizes = [2, 384], strides = [1, 1]} : vector<2x1536xf32> to vector<2x384xf32>
    %116 = math.tanh %115 : vector<2x384xf32>
    %117 = vector.extract_strided_slice %102 {offsets = [0, 1152], sizes = [2, 384], strides = [1, 1]} : vector<2x1536xf32> to vector<2x384xf32>
    %118 = arith.negf %117 : vector<2x384xf32>
    %119 = math.exp %118 : vector<2x384xf32>
    %cst_89 = arith.constant 1.000000e+00 : f32
    %120 = vector.broadcast %cst_89 : f32 to vector<2x384xf32>
    %121 = arith.addf %120, %119 : vector<2x384xf32>
    %122 = arith.divf %120, %121 : vector<2x384xf32>
    %c0_90 = arith.constant 0 : index
    %c0_91 = arith.constant 0 : index
    %123 = vector.load %arg3[%c0_90, %c0_91] : memref<2x384xf32, #tpu.memory_space<vmem>>, vector<2x384xf32>
    %124 = arith.mulf %114, %123 : vector<2x384xf32>
    %125 = arith.mulf %108, %116 : vector<2x384xf32>
    %126 = arith.addf %124, %125 : vector<2x384xf32>
    %127 = math.tanh %126 : vector<2x384xf32>
    %128 = arith.mulf %122, %127 : vector<2x384xf32>
    %c0_92 = arith.constant 0 : index
    %c0_93 = arith.constant 0 : index
    %129 = vector.load %arg24[%c0_92, %c0_93] : memref<2x384xf32, #tpu.memory_space<vmem>>, vector<2x384xf32>
    tpu.vector_store %arg24[%c0_92, %c0_93], %126 {strides = array<i32>} : memref<2x384xf32, #tpu.memory_space<vmem>>, vector<2x384xf32>,
    %c0_94 = arith.constant 0 : index
    %c0_95 = arith.constant 0 : index
    %130 = vector.load %arg23[%c0_94, %c0_95] : memref<2x384xf32, #tpu.memory_space<vmem>>, vector<2x384xf32>
    tpu.vector_store %arg23[%c0_94, %c0_95], %128 {strides = array<i32>} : memref<2x384xf32, #tpu.memory_space<vmem>>, vector<2x384xf32>,
    %131 = arith.truncf %128 : vector<2x384xf32> to vector<2x384xbf16>
    %c0_96 = arith.constant 0 : index
    %c0_97 = arith.constant 0 : index
    %132 = vector.load %arg20[%c0_96, %c0_97] : memref<384x128xbf16, #tpu.memory_space<vmem>>, vector<384x128xbf16>
    %cst_98 = arith.constant dense<0.000000e+00> : vector<2x128xf32>
    %133 = tpu.matmul %131, %132, %cst_98 {dimension_numbers = #tpu.dot_dimension_numbers<[1], [0], [0], [1], [0, 0, 1, 1], [], []>} : vector<2x384xbf16>, vector<384x128xbf16>, vector<2x128xf32> -> vector<2x128xf32>
    %c0_99 = arith.constant 0 : index
    %c0_100 = arith.constant 0 : index
    %134 = vector.load %arg21[%c0_99, %c0_100] : memref<1x128xf32, #tpu.memory_space<vmem>>, vector<1x128xf32>
    %135 = vector.broadcast %134 : vector<1x128xf32> to vector<2x128xf32>
    %136 = arith.addf %133, %135 : vector<2x128xf32>
    %c0_101 = arith.constant 0 : index
    %c0_102 = arith.constant 0 : index
    %137 = vector.load %arg22[%c0_101, %c0_102] : memref<2x128xf32, #tpu.memory_space<vmem>>, vector<2x128xf32>
    tpu.vector_store %arg22[%c0_101, %c0_102], %136 {strides = array<i32>} : memref<2x128xf32, #tpu.memory_space<vmem>>, vector<2x128xf32>,
    return
  }
  func.func @transform_0(%arg0: i32) -> (i32, i32) {
    %c0_i32 = arith.constant 0 : i32
    %c0_i32_0 = arith.constant 0 : i32
    return %arg0, %c0_i32 : i32, i32
  }
  func.func @transform_1(%arg0: i32) -> (i32, i32) {
    %c0_i32 = arith.constant 0 : i32
    %c0_i32_0 = arith.constant 0 : i32
    return %arg0, %c0_i32 : i32, i32
  }
  func.func @transform_2(%arg0: i32) -> (i32, i32) {
    %c0_i32 = arith.constant 0 : i32
    %c0_i32_0 = arith.constant 0 : i32
    return %arg0, %c0_i32 : i32, i32
  }
  func.func @transform_3(%arg0: i32) -> (i32, i32, i32) {
    %c0_i32 = arith.constant 0 : i32
    %c0_i32_0 = arith.constant 0 : i32
    %c0_i32_1 = arith.constant 0 : i32
    %c0_i32_2 = arith.constant 0 : i32
    return %c0_i32, %c0_i32_0, %c0_i32_1 : i32, i32, i32
  }
  func.func @transform_4(%arg0: i32) -> (i32, i32, i32) {
    %c0_i32 = arith.constant 0 : i32
    %c0_i32_0 = arith.constant 0 : i32
    %c0_i32_1 = arith.constant 0 : i32
    %c0_i32_2 = arith.constant 0 : i32
    return %c0_i32, %c0_i32_0, %c0_i32_1 : i32, i32, i32
  }
  func.func @transform_5(%arg0: i32) -> (i32, i32, i32) {
    %c0_i32 = arith.constant 0 : i32
    %c0_i32_0 = arith.constant 0 : i32
    %c0_i32_1 = arith.constant 0 : i32
    %c0_i32_2 = arith.constant 0 : i32
    return %c0_i32, %c0_i32_0, %c0_i32_1 : i32, i32, i32
  }
  func.func @transform_6(%arg0: i32) -> (i32, i32, i32) {
    %c0_i32 = arith.constant 0 : i32
    %c0_i32_0 = arith.constant 0 : i32
    %c0_i32_1 = arith.constant 0 : i32
    %c0_i32_2 = arith.constant 0 : i32
    return %c0_i32, %c0_i32_0, %c0_i32_1 : i32, i32, i32
  }
  func.func @transform_7(%arg0: i32) -> (i32, i32) {
    %c0_i32 = arith.constant 0 : i32
    %c0_i32_0 = arith.constant 0 : i32
    %c0_i32_1 = arith.constant 0 : i32
    return %c0_i32, %c0_i32_0 : i32, i32
  }
  func.func @transform_8(%arg0: i32) -> (i32, i32) {
    %c0_i32 = arith.constant 0 : i32
    %c0_i32_0 = arith.constant 0 : i32
    %c0_i32_1 = arith.constant 0 : i32
    return %c0_i32, %c0_i32_0 : i32, i32
  }
  func.func @transform_9(%arg0: i32) -> (i32, i32) {
    %c0_i32 = arith.constant 0 : i32
    %c0_i32_0 = arith.constant 0 : i32
    %c0_i32_1 = arith.constant 0 : i32
    return %c0_i32, %c0_i32_0 : i32, i32
  }
  func.func @transform_10(%arg0: i32) -> (i32, i32) {
    %c0_i32 = arith.constant 0 : i32
    %c0_i32_0 = arith.constant 0 : i32
    %c0_i32_1 = arith.constant 0 : i32
    return %c0_i32, %c0_i32_0 : i32, i32
  }
  func.func @transform_11(%arg0: i32) -> (i32, i32) {
    %c0_i32 = arith.constant 0 : i32
    %c0_i32_0 = arith.constant 0 : i32
    %c0_i32_1 = arith.constant 0 : i32
    return %c0_i32, %c0_i32_0 : i32, i32
  }
  func.func @transform_12(%arg0: i32) -> (i32, i32) {
    %c0_i32 = arith.constant 0 : i32
    %c0_i32_0 = arith.constant 0 : i32
    %c0_i32_1 = arith.constant 0 : i32
    return %c0_i32, %c0_i32_0 : i32, i32
  }
  func.func @transform_13(%arg0: i32) -> (i32, i32) {
    %c0_i32 = arith.constant 0 : i32
    %c0_i32_0 = arith.constant 0 : i32
    %c0_i32_1 = arith.constant 0 : i32
    return %c0_i32, %c0_i32_0 : i32, i32
  }
  func.func @transform_14(%arg0: i32) -> (i32, i32) {
    %c0_i32 = arith.constant 0 : i32
    %c0_i32_0 = arith.constant 0 : i32
    %c0_i32_1 = arith.constant 0 : i32
    return %c0_i32, %c0_i32_0 : i32, i32
  }
  func.func @transform_15(%arg0: i32) -> (i32, i32) {
    %c0_i32 = arith.constant 0 : i32
    %c0_i32_0 = arith.constant 0 : i32
    %c0_i32_1 = arith.constant 0 : i32
    return %c0_i32, %c0_i32_0 : i32, i32
  }
  func.func @transform_16(%arg0: i32) -> (i32, i32) {
    %c0_i32 = arith.constant 0 : i32
    %c0_i32_0 = arith.constant 0 : i32
    %c0_i32_1 = arith.constant 0 : i32
    return %c0_i32, %c0_i32_0 : i32, i32
  }
  func.func @transform_17(%arg0: i32) -> (i32, i32) {
    %c0_i32 = arith.constant 0 : i32
    %c0_i32_0 = arith.constant 0 : i32
    %c0_i32_1 = arith.constant 0 : i32
    return %c0_i32, %c0_i32_0 : i32, i32
  }
  func.func @transform_18(%arg0: i32) -> (i32, i32) {
    %c0_i32 = arith.constant 0 : i32
    %c0_i32_0 = arith.constant 0 : i32
    %c0_i32_1 = arith.constant 0 : i32
    return %c0_i32, %c0_i32_0 : i32, i32
  }
  func.func @transform_19(%arg0: i32) -> (i32, i32) {
    %c0_i32 = arith.constant 0 : i32
    %c0_i32_0 = arith.constant 0 : i32
    %c0_i32_1 = arith.constant 0 : i32
    return %c0_i32, %c0_i32_0 : i32, i32
  }
  func.func @transform_20(%arg0: i32) -> (i32, i32) {
    %c0_i32 = arith.constant 0 : i32
    %c0_i32_0 = arith.constant 0 : i32
    %c0_i32_1 = arith.constant 0 : i32
    return %c0_i32, %c0_i32_0 : i32, i32
  }
  func.func @transform_21(%arg0: i32) -> (i32, i32) {
    %c0_i32 = arith.constant 0 : i32
    %c0_i32_0 = arith.constant 0 : i32
    return %arg0, %c0_i32 : i32, i32
  }
  func.func @transform_22(%arg0: i32) -> (i32, i32) {
    %c0_i32 = arith.constant 0 : i32
    %c0_i32_0 = arith.constant 0 : i32
    return %arg0, %c0_i32 : i32, i32
  }
  func.func @transform_23(%arg0: i32) -> (i32, i32) {
    %c0_i32 = arith.constant 0 : i32
    %c0_i32_0 = arith.constant 0 : i32
    return %arg0, %c0_i32 : i32, i32
  }
}

</mosaic_0001>

<bundles_post_ra>
// kernel: a2c_forward.1
= control target key start
LH: loop header
LB: loop body
LE: loop exit
PB: predicated region body
PF: predicated region fallthrough
CT: control target
= control target key end

     0   :  { %s10706_s0 = inlined_call_operand.vmem [shape: f32[64,128], index: 0, kind: input, shape index: {}]   ;;  %s10707_s1 = inlined_call_operand.vmem [shape: f32[2,384], index: 1, kind: input, shape index: {}, may-alias: {1,22}]   ;;  %s10708_s2 = inlined_call_operand.vmem [shape: f32[2,384], index: 2, kind: input, shape index: {}, may-alias: {2,23}]   ;;  %s10709_s3 = inlined_call_operand.hbm [shape: bf16[3,32,64], index: 3, kind: input, shape index: {}]   ;;  %s10710_s4 = inlined_call_operand.hbm [shape: bf16[3,16,32], index: 4, kind: input, shape index: {}]   ;;  %s10711_s5 = inlined_call_operand.hbm [shape: bf16[3,8,16], index: 5, kind: input, shape index: {}]   ;;  %s10712_s6 = inlined_call_operand.hbm [shape: bf16[3,4,8], index: 6, kind: input, shape index: {}]   ;;  %s10713_s7 = inlined_call_operand.hbm [shape: bf16[384,512], index: 7, kind: input, shape index: {}]   ;;  %s10714_s8 = inlined_call_operand.hbm [shape: bf16[1536,256], index: 8, kind: input, shape index: {}]   ;;  %s10715_s9 = inlined_call_operand.hbm [shape: bf16[768,128], index: 9, kind: input, shape index: {}]   ;;  %s10716_s10 = inlined_call_operand.vmem [shape: bf16[384,64], index: 10, kind: input, shape index: {}]   ;;  %s10717_s11 = inlined_call_operand.hbm [shape: f32[1,512], index: 11, kind: input, shape index: {}]   ;;  %s10718_s12 = inlined_call_operand.hbm [shape: f32[1,256], index: 12, kind: input, shape index: {}]   ;;  %s10719_s13 = inlined_call_operand.hbm [shape: f32[1,128], index: 13, kind: input, shape index: {}]   ;;  %s10720_s14 = inlined_call_operand.hbm [shape: f32[1,64], index: 14, kind: input, shape index: {}]   ;;  %s10721_s15 = inlined_call_operand.hbm [shape: bf16[2,4], index: 15, kind: input, shape index: {}]   ;;  %s10722_s16 = inlined_call_operand.hbm [shape: bf16[64,1536], index: 16, kind: input, shape index: {}]   ;;  %s10723_s17 = inlined_call_operand.hbm [shape: bf16[384,1536], index: 17, kind: input, shape index: {}]   ;;  %s10724_s18 = inlined_call_operand.hbm [shape: f32[1,1536], index: 18, kind: input, shape index: {}]   ;;  %s10725_s19 = inlined_call_operand.hbm [shape: bf16[384,128], index: 19, kind: input, shape index: {}]   ;;  %s10726_s20 = inlined_call_operand.hbm [shape: f32[1,128], index: 20, kind: input, shape index: {}]   ;;  %s10727_s21 = inlined_call_operand.vmem [shape: f32[2,128], index: 21, kind: output, shape index: {0}]   ;;  %s10728_s22 = inlined_call_operand.vmem [shape: f32[2,384], index: 22, kind: output, shape index: {1}, may-alias: {1,22}]   ;;  %s10729_s23 = inlined_call_operand.vmem [shape: f32[2,384], index: 23, kind: output, shape index: {2}, may-alias: {2,23}]  }
   0x1   :  { %10733 = sst [smem:[#allocation37_spill]] %s10706_s0 }
   0x2   :  { %10734 = sst [smem:[#allocation38_spill]] %s10707_s1 }
   0x3   :  { %10735 = sst [smem:[#allocation39_spill]] %s10708_s2 }
   0x4   :  { %10736 = sst [smem:[#allocation40_spill]] %s10709_s3 }
   0x5   :  { %10737 = sst [smem:[#allocation41_spill]] %s10710_s4 }
   0x6   :  { %10738 = sst [smem:[#allocation42_spill]] %s10711_s5 }
   0x7   :  { %10739 = sst [smem:[#allocation43_spill]] %s10712_s6 }
   0x8   :  { %10740 = sst [smem:[#allocation44_spill]] %s10713_s7 }
   0x9   :  { %10741 = sst [smem:[#allocation45_spill]] %s10727_s21 }
   0xa   :  { %29 = vsyncpa [#allocation3], 0 }
   0xb   :  { %30 = vsyncpa [#allocation5], 0 }
   0xc   :  { %31 = vsyncpa [#allocation8], 0 }
   0xd   :  { %32 = vsyncpa [#allocation11], 0 }
   0xe   :  { %33 = vsyncpa [#allocation14], 0 }
   0xf   :  { %34 = vsyncpa [#allocation17], 0 }
  0x10   :  { %35 = vsyncpa [#allocation20], 0 }
  0x11   :  { %36 = vsyncpa [#allocation23], 0 }
  0x12   :  { %37 = vsyncpa [#allocation26], 0  ;;  %s10051_s4 = smov [#allocation4]   ;;  %s10052_s24 = smov [#allocation7]  }
  0x13   :  { %s61_s30 = sshll.u32 %s10051_s4, 4  ;;  %s85_s25 = sshll.u32 %s10052_s24, 4  ;;  %s62_s30 = int_to_ptr.vmem [resolvable:$true] %s61_s30  ;;  %s86_s25 = int_to_ptr.vmem [resolvable:$true] %s85_s25 }
  0x14   :  { %s9701_s5 = scalar_lea.vmem %s62_s30, 384  ;;  %p9706_p1 = scmp.lt.s32.totalorder %s62_s30, %s62_s30 }
  0x15   :  { %p9702_p0 = scmp.ne.s32.totalorder %s62_s30, %s9701_s5  ;;  %p9707_p2 = scmp.lt.s32.totalorder %s9701_s5, %s9701_s5 }
  0x17   :  { %p9708_p3 = por %p9707_p2, %p9706_p1 }
  0x19   :  { %p9709_p4 = pnand %p9708_p3, %p9702_p0 }
  0x1b   :  { %9712 = shalt.err (!%p9709_p4)
}
  0x1c   :  { %s10731_s1 = smov 64   ;;  %s10054_s26 = smov 4  }
  0x1d   :  { %s10742_s27 = sld [smem:[#allocation41_spill]]  ;;  %s9721_s7 = scalar_lea.vmem %s86_s25, 96 }
  0x1e   :  { %p9722_p5 = scmp.ne.s32.totalorder %s86_s25, %s9721_s7  ;;  %p9726_p6 = scmp.lt.s32.totalorder %s86_s25, %s86_s25 }
  0x1f   :  { %p9727_p7 = scmp.lt.s32.totalorder %s9721_s7, %s9721_s7 }
  0x21   :  { %p9728_p8 = por %p9727_p7, %p9726_p6 }
  0x23   :  { %67 = dma.hbm_to_vmem [thread:$0]  %s10742_s27, 384, %s62_s30, [#allocation5], %s10731_s1, %s10731_s1, %s10054_s26  }
  0x24   :  { %p9729_p9 = pnand %p9728_p8, %p9722_p5 }
  0x26   :  { %9732 = shalt.err (!%p9729_p9)
}
  0x27   :  { %s10055_s28 = smov 32   ;;  %s10056_s29 = smov 2  }
  0x28   :  { %s10743_s4 = sld [smem:[#allocation43_spill]]  ;;  %s10057_s24 = smov [#allocation10]  }
  0x29   :  { %s109_s5 = sshll.u32 %s10057_s24, 4  ;;  %s110_s5 = int_to_ptr.vmem [resolvable:$true] %s109_s5 }
  0x2a   :  { %s9741_s21 = scalar_lea.vmem %s110_s5, 24576  ;;  %p9746_p11 = scmp.lt.s32.totalorder %s110_s5, %s110_s5 }
  0x2b   :  { %p9742_p10 = scmp.ne.s32.totalorder %s110_s5, %s9741_s21  ;;  %p9747_p12 = scmp.lt.s32.totalorder %s9741_s21, %s9741_s21 }
  0x2d   :  { %p9748_p13 = por %p9747_p12, %p9746_p11 }
  0x2e   :  { %91 = dma.hbm_to_vmem [thread:$0]  %s10743_s4, 96, %s86_s25, [#allocation8], %s10055_s28, %s10055_s28, %s10056_s29  }
  0x2f   :  { %p9749_p0 = pnand %p9748_p13, %p9742_p10 }
  0x31   :  { %9752 = shalt.err (!%p9749_p0)
}
  0x32   :  { %s10058_s30 = smov 128   ;;  %s10059_s2 = smov 8  }
  0x33   :  { %115 = dma.hbm_to_vmem [thread:$0]  %s10714_s8, 24576, %s110_s5, [#allocation11], %s10058_s30, %s10058_s30, %s10059_s2  }
  0x34   :  { %s10060_s7 = smov [#allocation13]   ;;  %s10061_s25 = smov [#allocation16]  }
  0x35   :  { %s136_s1 = sshll.u32 %s10060_s7, 4  ;;  %s156_s28 = sshll.u32 %s10061_s25, 4  ;;  %s137_s1 = int_to_ptr.vmem [resolvable:$true] %s136_s1  ;;  %s157_s28 = int_to_ptr.vmem [resolvable:$true] %s156_s28 }
  0x36   :  { %s9761_s29 = scalar_lea.vmem %s137_s1, 64  ;;  %p9766_p2 = scmp.lt.s32.totalorder %s137_s1, %s137_s1 }
  0x37   :  { %p9762_p1 = scmp.ne.s32.totalorder %s137_s1, %s9761_s29  ;;  %p9767_p3 = scmp.lt.s32.totalorder %s9761_s29, %s9761_s29 }
  0x39   :  { %p9768_p4 = por %p9767_p3, %p9766_p2 }
  0x3b   :  { %p9769_p5 = pnand %p9768_p4, %p9762_p1 }
  0x3d   :  { %9772 = shalt.err (!%p9769_p5)
}
  0x3e   :  { %139 = dma.hbm_to_vmem [thread:$0]  %s10717_s11, 64, %s137_s1, [#allocation14]  }
  0x3f   :  { %s9781_s0 = scalar_lea.vmem %s157_s28, 16  ;;  %s9785_s8 = scalar_lea.vmem %s157_s28, 32 }
  0x40   :  { %p9782_p6 = scmp.ne.s32.totalorder %s157_s28, %s9781_s0  ;;  %p9786_p7 = scmp.lt.s32.totalorder %s157_s28, %s157_s28 }
  0x41   :  { %p9787_p8 = scmp.lt.s32.totalorder %s9785_s8, %s9781_s0 }
  0x43   :  { %p9788_p9 = por %p9787_p8, %p9786_p7 }
  0x45   :  { %p9789_p10 = pnand %p9788_p9, %p9782_p6 }
  0x47   :  { %9792 = shalt.err (!%p9789_p10)
}
  0x48   :  { %159 = dma.hbm_to_vmem [thread:$0]  %s10719_s13, 16, %s157_s28, [#allocation17]  }
  0x49   :  { %s10062_s5 = smov [#allocation19]  }
  0x4a   :  { %s176_s30 = sshll.u32 %s10062_s5, 4  ;;  %s177_s30 = int_to_ptr.vmem [resolvable:$true] %s176_s30 }
  0x4b   :  { %s9801_s2 = scalar_lea.vmem %s177_s30, 16  ;;  %s9805_s6 = scalar_lea.vmem %s177_s30, 32 }
  0x4c   :  { %p9802_p11 = scmp.ne.s32.totalorder %s177_s30, %s9801_s2  ;;  %p9806_p12 = scmp.lt.s32.totalorder %s177_s30, %s177_s30 }
  0x4d   :  { %p9807_p13 = scmp.lt.s32.totalorder %s9805_s6, %s9801_s2 }
  0x4f   :  { %p9808_p0 = por %p9807_p13, %p9806_p12 }
  0x51   :  { %p9809_p1 = pnand %p9808_p0, %p9802_p11 }
  0x53   :  { %9812 = shalt.err (!%p9809_p1)
}
  0x54   :  { %179 = dma.hbm_to_vmem [thread:$0]  %s10721_s15, 16, %s177_s30, [#allocation20]  }
  0x55   :  { %s10063_s27 = smov [#allocation22]   ;;  %s10064_s25 = smov [#allocation25]  }
  0x56   :  { %s197_s7 = sshll.u32 %s10063_s27, 4  ;;  %s219_s29 = sshll.u32 %s10064_s25, 4  ;;  %s198_s7 = int_to_ptr.vmem [resolvable:$true] %s197_s7  ;;  %s220_s29 = int_to_ptr.vmem [resolvable:$true] %s219_s29 }
  0x57   :  { %s9821_s13 = scalar_lea.vmem %s198_s7, 36864  ;;  %p9826_p3 = scmp.lt.s32.totalorder %s198_s7, %s198_s7 }
  0x58   :  { %p9822_p2 = scmp.ne.s32.totalorder %s198_s7, %s9821_s13  ;;  %p9827_p4 = scmp.lt.s32.totalorder %s9821_s13, %s9821_s13 }
  0x5a   :  { %p9828_p5 = por %p9827_p4, %p9826_p3 }
  0x5c   :  { %p9829_p6 = pnand %p9828_p5, %p9822_p2 }
  0x5e   :  { %9832 = shalt.err (!%p9829_p6)
}
  0x5f   :  { %s10065_s28 = smov 768   ;;  %s10066_s21 = smov 48  }
  0x60   :  { %203 = dma.hbm_to_vmem [thread:$0]  %s10723_s17, 36864, %s198_s7, [#allocation23], %s10065_s28, %s10065_s28, %s10066_s21  }
  0x61   :  { %s9841_s0 = scalar_lea.vmem %s220_s29, 3072  ;;  %p9846_p8 = scmp.lt.s32.totalorder %s220_s29, %s220_s29 }
  0x62   :  { %p9842_p7 = scmp.ne.s32.totalorder %s220_s29, %s9841_s0  ;;  %p9847_p9 = scmp.lt.s32.totalorder %s9841_s0, %s9841_s0 }
  0x64   :  { %p9848_p10 = por %p9847_p9, %p9846_p8 }
  0x66   :  { %p9849_p11 = pnand %p9848_p10, %p9842_p7 }
  0x68   :  { %9852 = shalt.err (!%p9849_p11)
}
  0x69   :  { %s10744_s8 = smov 64   ;;  %s10067_s5 = smov [#allocation2]  }
  0x6a   :  { %225 = dma.hbm_to_vmem [thread:$0]  %s10725_s19, 3072, %s220_s29, [#allocation26], %s10744_s8, %s10744_s8, %s10054_s26  }
  0x6b   :  { %s49_s30 = sshll.u32 %s10067_s5, 4  ;;  %s10068_s2 = smov [#allocation6]   ;;  %s50_s30 = int_to_ptr.vmem [resolvable:$true] %s49_s30 }
  0x6c   :  { %s73_s6 = sshll.u32 %s10068_s2, 4  ;;  %s9861_s17 = scalar_lea.vmem %s50_s30, 768  ;;  %s74_s6 = int_to_ptr.vmem [resolvable:$true] %s73_s6 }
  0x6d   :  { %p9862_p12 = scmp.ne.s32.totalorder %s50_s30, %s9861_s17  ;;  %p9866_p13 = scmp.lt.s32.totalorder %s50_s30, %s50_s30 }
  0x6e   :  { %p9867_p0 = scmp.lt.s32.totalorder %s9861_s17, %s9861_s17 }
  0x70   :  { %p9868_p1 = por %p9867_p0, %p9866_p13 }
  0x72   :  { %p9869_p2 = pnand %p9868_p1, %p9862_p12 }
  0x74   :  { %9872 = shalt.err (!%p9869_p2)
}
  0x75   :  { %s10745_s27 = sld [smem:[#allocation40_spill]]  ;;  %s9881_s19 = scalar_lea.vmem %s74_s6, 192 }
  0x76   :  { %p9882_p3 = scmp.ne.s32.totalorder %s74_s6, %s9881_s19  ;;  %p9886_p4 = scmp.lt.s32.totalorder %s74_s6, %s74_s6 }
  0x77   :  { %p9887_p5 = scmp.lt.s32.totalorder %s9881_s19, %s9881_s19 }
  0x79   :  { %p9888_p6 = por %p9887_p5, %p9886_p4 }
  0x7b   :  { %55 = dma.hbm_to_vmem [thread:$0]  %s10745_s27, 768, %s50_s30, [#allocation3], %s10744_s8, %s10744_s8, %s10054_s26  }
  0x7c   :  { %p9889_p7 = pnand %p9888_p6, %p9882_p3 }
  0x7e   :  { %9892 = shalt.err (!%p9889_p7)
}
  0x7f   :  { %s10746_s29 = sld [smem:[#allocation42_spill]]  ;;  %s10069_s13 = smov [#allocation9]  }
  0x80   :  { %s97_s3 = sshll.u32 %s10069_s13, 4  ;;  %s98_s3 = int_to_ptr.vmem [resolvable:$true] %s97_s3 }
  0x81   :  { %s9901_s15 = scalar_lea.vmem %s98_s3, 12288  ;;  %p9906_p9 = scmp.lt.s32.totalorder %s98_s3, %s98_s3 }
  0x82   :  { %p9902_p8 = scmp.ne.s32.totalorder %s98_s3, %s9901_s15  ;;  %p9907_p10 = scmp.lt.s32.totalorder %s9901_s15, %s9901_s15 }
  0x84   :  { %p9908_p11 = por %p9907_p10, %p9906_p9 }
  0x85   :  { %79 = dma.hbm_to_vmem [thread:$0]  %s10746_s29, 192, %s74_s6, [#allocation5], %s10744_s8, %s10744_s8, %s10054_s26  }
  0x86   :  { %p9909_p12 = pnand %p9908_p11, %p9902_p8 }
  0x88   :  { %9912 = shalt.err (!%p9909_p12)
}
  0x89   :  { %s10070_s0 = smov 256   ;;  %s10071_s4 = smov 16  }
  0x8a   :  { %s10747_s30 = sld [smem:[#allocation44_spill]]  ;;  %s10072_s2 = smov [#allocation12]  }
  0x8b   :  { %s121_s17 = sshll.u32 %s10072_s2, 4  ;;  %s10073_s6 = smov [#allocation15]   ;;  %s122_s17 = int_to_ptr.vmem [resolvable:$true] %s121_s17 }
  0x8c   :  { %s146_s11 = sshll.u32 %s10073_s6, 4  ;;  %s9921_s1 = scalar_lea.vmem %s122_s17, 6144  ;;  %s147_s11 = int_to_ptr.vmem [resolvable:$true] %s146_s11 }
  0x8d   :  { %p9922_p13 = scmp.ne.s32.totalorder %s122_s17, %s9921_s1  ;;  %p9926_p0 = scmp.lt.s32.totalorder %s122_s17, %s122_s17 }
  0x8e   :  { %p9927_p1 = scmp.lt.s32.totalorder %s9921_s1, %s9921_s1 }
  0x90   :  { %103 = dma.hbm_to_vmem [thread:$0]  %s10747_s30, 12288, %s98_s3, [#allocation8], %s10070_s0, %s10070_s0, %s10071_s4  }
  0x91   :  { %p9928_p2 = por %p9927_p1, %p9926_p0 }
  0x93   :  { %p9929_p3 = pnand %p9928_p2, %p9922_p13 }
  0x95   :  { %9932 = shalt.err (!%p9929_p3)
}
  0x96   :  { %127 = dma.hbm_to_vmem [thread:$0]  %s10715_s9, 6144, %s122_s17, [#allocation11], %s10744_s8, %s10744_s8, %s10054_s26  }
  0x97   :  { %s9941_s7 = scalar_lea.vmem %s147_s11, 32  ;;  %p9946_p5 = scmp.lt.s32.totalorder %s147_s11, %s147_s11 }
  0x98   :  { %p9942_p4 = scmp.ne.s32.totalorder %s147_s11, %s9941_s7  ;;  %p9947_p6 = scmp.lt.s32.totalorder %s9941_s7, %s9941_s7 }
  0x9a   :  { %p9948_p7 = por %p9947_p6, %p9946_p5 }
  0x9c   :  { %p9949_p8 = pnand %p9948_p7, %p9942_p4 }
  0x9e   :  { %9952 = shalt.err (!%p9949_p8)
}
  0x9f   :  { %149 = dma.hbm_to_vmem [thread:$0]  %s10718_s12, 32, %s147_s11, [#allocation14]  }
  0xa0   :  { %s10074_s13 = smov [#allocation18]   ;;  %s10075_s15 = smov [#allocation21]  }
  0xa1   :  { %s166_s3 = sshll.u32 %s10074_s13, 4  ;;  %s185_s0 = sshll.u32 %s10075_s15, 4  ;;  %s167_s3 = int_to_ptr.vmem [resolvable:$true] %s166_s3  ;;  %s186_s0 = int_to_ptr.vmem [resolvable:$true] %s185_s0 }
  0xa2   :  { %s9961_s4 = scalar_lea.vmem %s167_s3, 16  ;;  %s9965_s9 = scalar_lea.vmem %s167_s3, 32 }
  0xa3   :  { %p9962_p9 = scmp.ne.s32.totalorder %s167_s3, %s9961_s4  ;;  %p9966_p10 = scmp.lt.s32.totalorder %s167_s3, %s167_s3 }
  0xa4   :  { %p9967_p11 = scmp.lt.s32.totalorder %s9965_s9, %s9961_s4 }
  0xa6   :  { %p9968_p12 = por %p9967_p11, %p9966_p10 }
  0xa8   :  { %p9969_p13 = pnand %p9968_p12, %p9962_p9 }
  0xaa   :  { %9972 = shalt.err (!%p9969_p13)
}
  0xab   :  { %169 = dma.hbm_to_vmem [thread:$0]  %s10720_s14, 16, %s167_s3, [#allocation17]  }
  0xac   :  { %s9981_s24 = scalar_lea.vmem %s186_s0, 6144  ;;  %p9986_p1 = scmp.lt.s32.totalorder %s186_s0, %s186_s0 }
  0xad   :  { %p9982_p0 = scmp.ne.s32.totalorder %s186_s0, %s9981_s24  ;;  %p9987_p2 = scmp.lt.s32.totalorder %s9981_s24, %s9981_s24 }
  0xaf   :  { %p9988_p3 = por %p9987_p2, %p9986_p1 }
  0xb1   :  { %p9989_p4 = pnand %p9988_p3, %p9982_p0 }
  0xb3   :  { %9992 = shalt.err (!%p9989_p4)
}
  0xb4   :  { %191 = dma.hbm_to_vmem [thread:$0]  %s10722_s16, 6144, %s186_s0, [#allocation20], %s10065_s28, %s10065_s28, %s10066_s21  }
  0xb5   :  { %s10076_s30 = smov [#allocation24]   ;;  %s10077_s17 = smov [#allocation27]  }
  0xb6   :  { %s210_s2 = sshll.u32 %s10076_s30, 4  ;;  %s232_s14 = sshll.u32 %s10077_s17, 4  ;;  %s211_s2 = int_to_ptr.vmem [resolvable:$true] %s210_s2  ;;  %s233_s14 = int_to_ptr.vmem [resolvable:$true] %s232_s14 }
  0xb7   :  { %s10001_s6 = scalar_lea.vmem %s211_s2, 192  ;;  %p10006_p6 = scmp.lt.s32.totalorder %s211_s2, %s211_s2 }
  0xb8   :  { %p10002_p5 = scmp.ne.s32.totalorder %s211_s2, %s10001_s6  ;;  %p10007_p7 = scmp.lt.s32.totalorder %s10001_s6, %s10001_s6 }
  0xba   :  { %p10008_p8 = por %p10007_p7, %p10006_p6 }
  0xbc   :  { %p10009_p9 = pnand %p10008_p8, %p10002_p5 }
  0xbe   :  { %10012 = shalt.err (!%p10009_p9)
}
  0xbf   :  { %213 = dma.hbm_to_vmem [thread:$0]  %s10724_s18, 192, %s211_s2, [#allocation23]  }
  0xc0   :  { %s10021_s27 = scalar_lea.vmem %s233_s14, 16  ;;  %s10025_s16 = scalar_lea.vmem %s233_s14, 32 }
  0xc1   :  { %p10022_p10 = scmp.ne.s32.totalorder %s233_s14, %s10021_s27  ;;  %p10026_p11 = scmp.lt.s32.totalorder %s233_s14, %s233_s14 }
  0xc2   :  { %p10027_p12 = scmp.lt.s32.totalorder %s10025_s16, %s10021_s27 }
  0xc4   :  { %p10028_p13 = por %p10027_p12, %p10026_p11 }
  0xc6   :  { %p10029_p0 = pnand %p10028_p13, %p10022_p10 }
  0xc8   :  { %10032 = shalt.err (!%p10029_p0)
}
  0xc9   :  { %235 = dma.hbm_to_vmem [thread:$0]  %s10726_s20, 16, %s233_s14, [#allocation26]  }
  0xca   :  { %10033 = dma.done.wait [#allocation3], 768  }
  0xcb   :  { %10034 = vsyncadd [#allocation3], 4294966528 }
  0xcc   :  { %10035 = dma.done.wait [#allocation5], 576  }
  0xcd   :  { %10036 = vsyncadd [#allocation5], 4294966720 }
  0xce   :  { %10037 = dma.done.wait [#allocation8], 12384  }
  0xcf   :  { %10038 = vsyncadd [#allocation8], 4294954912 }
  0xd0   :  { %10039 = dma.done.wait [#allocation11], 30720  }
  0xd1   :  { %10040 = vsyncadd [#allocation11], 4294936576 }
  0xd2   :  { %10041 = dma.done.wait [#allocation14], 96  }
  0xd3   :  { %10042 = vsyncadd [#allocation14], 4294967200 }
  0xd4   :  { %10043 = dma.done.wait [#allocation17], 32  }
  0xd5   :  { %10044 = vsyncadd [#allocation17], 4294967264 }
  0xd6   :  { %10045 = dma.done.wait [#allocation20], 6160  }
  0xd7   :  { %10046 = vsyncadd [#allocation20], 4294961136 }
  0xd8   :  { %10047 = dma.done.wait [#allocation23], 37056  }
  0xd9   :  { %10048 = vsyncadd [#allocation23], 4294930240 }
  0xda   :  { %10049 = dma.done.wait [#allocation26], 3088  }
  0xdb   :  { %10050 = vsyncadd [#allocation26], 4294964208  ;;  %s10748_s19 = sld [smem:[#allocation37_spill]]  ;;  %v8602_v8 = vld [vmem:[#allocation2] sm:$0xff]   ;;  %vm314_vm0 = vcmask 523264   ;;  %v8603_v9 = vld [vmem:[#allocation2 + $0x10] sm:$0xff]  }
  0xdc   :  { %8479 = vmatprep.mubr.msk.bf16.mxu0 %vm314_vm0, %v8602_v8  ;;  %8491 = vmatprep.mubr.msk.bf16.mxu1 %vm314_vm0, %v8603_v9  ;;  %v8610_v14 = vld [vmem:[#allocation9 + $0xe4] ss:$16 sps:$4 sm:$0xff]   ;;  %v8608_v18 = vld [vmem:[#allocation9 + $0xe0] ss:$16 sps:$4 sm:$0xff]   ;;  %v8673_v60 = vld [vmem:[#allocation9 + $0x2ec] ss:$16 sps:$4 sm:$0xff]  }
  0xdd   :  { %v8604_v15 = vld [vmem:[#allocation2 + $0x8] sm:$0xff]   ;;  %v8605_v16 = vld [vmem:[#allocation2 + $0x18] sm:$0xff]   ;;  %v8606_v17 = vld [vmem:[#allocation2 + $0x20] sm:$0xff]   ;;  %vm1389_vm9 = vcmask 261120   ;;  %s10749_s9 = sld [smem:[#allocation38_spill]] }
  0xde   :  { %v8613_v19 = vld [vmem:[#allocation9 + $0xc4] ss:$16 sps:$4 sm:$0xff]   ;;  %v8611_v20 = vld [vmem:[#allocation9 + $0xc0] ss:$16 sps:$4 sm:$0xff]   ;;  %s10750_s8 = sld [smem:[#allocation39_spill]] }
  0xdf   :  { %v8616_v21 = vld [vmem:[#allocation9 + $0xa4] ss:$16 sps:$4 sm:$0xff]   ;;  %v8614_v22 = vld [vmem:[#allocation9 + $0xa0] ss:$16 sps:$4 sm:$0xff]   ;;  %s10751_s17 = sld [smem:[#allocation45_spill]] }
  0xe0   :  { %v8619_v23 = vld [vmem:[#allocation9 + $0x84] ss:$16 sps:$4 sm:$0xff]   ;;  %v8617_v24 = vld [vmem:[#allocation9 + $0x80] ss:$16 sps:$4 sm:$0xff]  }
  0xe1   :  { %v294_v0 = vld [vmem:[%s10748_s19 + $0x30] sm:$0xff]  ;;  %v295_v1 = vld [vmem:[%s10748_s19 + $0x38] sm:$0xff]  ;;  %v292_v2 = vld [vmem:[%s10748_s19 + $0x20] sm:$0xff] }
  0xe2   :  { %v299_v3 = vpack.c.bf16 %v295_v1, %v294_v0  ;;  %v293_v4 = vld [vmem:[%s10748_s19 + $0x28] sm:$0xff]  ;;  %v290_v6 = vld [vmem:[%s10748_s19 + $0x10] sm:$0xff]  ;;  %v291_v7 = vld [vmem:[%s10748_s19 + $0x18] sm:$0xff] }
  0xe3   :  { %v298_v5 = vpack.c.bf16 %v293_v4, %v292_v2  ;;  %v297_v10 = vpack.c.bf16 %v291_v7, %v290_v6  ;;  %v288_v11 = vld [vmem:[%s10748_s19] sm:$0xff]  ;;  %v289_v12 = vld [vmem:[%s10748_s19 + $0x8] sm:$0xff]  ;;  %v10078_v4 = vmov 0  }
  0xe4   :  { %8471 = vmatprep.subr.bf16.mxu0 %v299_v3  ;;  %8483 = vmatprep.subr.bf16.mxu1 %v299_v3  ;;  %v296_v13 = vpack.c.bf16 %v289_v12, %v288_v11  ;;  %v8607_v25 = vld [vmem:[#allocation2 + $0x28] sm:$0xff]   ;;  %v8671_v11 = vld [vmem:[#allocation9 + $0x2e8] ss:$16 sps:$4 sm:$0xff]  }
  0xe5   :  { %8472 = vmatpush3.bf16.msra.mxu0 %v299_v3  ;;  %8484 = vmatpush3.bf16.msra.mxu1 %v299_v3  ;;  %v8622_v26 = vld [vmem:[#allocation9 + $0x64] ss:$16 sps:$4 sm:$0xff]   ;;  %v8644_v28 = vld [vmem:[#allocation9 + $0x2e0] ss:$16 sps:$4 sm:$0xff]  }
  0xe6   :  { %8473 = vmatprep.subr.bf16.mxu0 %v298_v5  ;;  %8485 = vmatprep.subr.bf16.mxu1 %v298_v5  ;;  %v8646_v27 = vld [vmem:[#allocation9 + $0x2e4] ss:$16 sps:$4 sm:$0xff]   ;;  %v8620_v29 = vld [vmem:[#allocation9 + $0x60] ss:$16 sps:$4 sm:$0xff]  }
  0xe7   :  { %v8652_v30 = vld [vmem:[#allocation9 + $0x2c4] ss:$16 sps:$4 sm:$0xff]   ;;  %v8650_v32 = vld [vmem:[#allocation9 + $0x2c0] ss:$16 sps:$4 sm:$0xff]  }
  0xe8   :  { %v8625_v31 = vld [vmem:[#allocation9 + $0x44] ss:$16 sps:$4 sm:$0xff]   ;;  %v8623_v33 = vld [vmem:[#allocation9 + $0x40] ss:$16 sps:$4 sm:$0xff]  }
  0xe9   :  { %8474 = vmatpush3.bf16.msra.mxu0 %v298_v5  ;;  %8486 = vmatpush3.bf16.msra.mxu1 %v298_v5  ;;  %v8628_v34 = vld [vmem:[#allocation9 + $0x24] ss:$16 sps:$4 sm:$0xff]   ;;  %v8626_v35 = vld [vmem:[#allocation9 + $0x20] ss:$16 sps:$4 sm:$0xff]  }
  0xea   :  { %8475 = vmatprep.subr.bf16.mxu0 %v297_v10  ;;  %8487 = vmatprep.subr.bf16.mxu1 %v297_v10  ;;  %v8631_v36 = vld [vmem:[#allocation9 + $0x4] ss:$16 sps:$4 sm:$0xff]   ;;  %v8629_v37 = vld [vmem:[#allocation9] ss:$16 sps:$4 sm:$0xff]  }
  0xeb   :  { %v8634_v38 = vld [vmem:[#allocation9 + $0x1e4] ss:$16 sps:$4 sm:$0xff]   ;;  %v8632_v39 = vld [vmem:[#allocation9 + $0x1e0] ss:$16 sps:$4 sm:$0xff]  }
  0xec   :  { %v8637_v40 = vld [vmem:[#allocation9 + $0x1c4] ss:$16 sps:$4 sm:$0xff]   ;;  %v8635_v41 = vld [vmem:[#allocation9 + $0x1c0] ss:$16 sps:$4 sm:$0xff]  }
  0xed   :  { %8476 = vmatpush3.bf16.msra.mxu0 %v297_v10  ;;  %8488 = vmatpush3.bf16.msra.mxu1 %v297_v10  ;;  %v8640_v42 = vld [vmem:[#allocation9 + $0x1a4] ss:$16 sps:$4 sm:$0xff]   ;;  %v8638_v43 = vld [vmem:[#allocation9 + $0x1a0] ss:$16 sps:$4 sm:$0xff]  }
  0xee   :  { %8477 = vmatprep.subr.bf16.mxu0 %v296_v13  ;;  %8489 = vmatprep.subr.bf16.mxu1 %v296_v13  ;;  %v8643_v44 = vld [vmem:[#allocation9 + $0x184] ss:$16 sps:$4 sm:$0xff]   ;;  %v8641_v45 = vld [vmem:[#allocation9 + $0x180] ss:$16 sps:$4 sm:$0xff]  }
  0xef   :  { %v8649_v46 = vld [vmem:[#allocation9 + $0x164] ss:$16 sps:$4 sm:$0xff]   ;;  %v8647_v47 = vld [vmem:[#allocation9 + $0x160] ss:$16 sps:$4 sm:$0xff]  }
  0xf0   :  { %v8655_v48 = vld [vmem:[#allocation9 + $0x144] ss:$16 sps:$4 sm:$0xff]   ;;  %v8653_v49 = vld [vmem:[#allocation9 + $0x140] ss:$16 sps:$4 sm:$0xff]  }
  0xf1   :  { %8478 = vmatpush3.bf16.msra.mxu0 %v296_v13  ;;  %8490 = vmatpush3.bf16.msra.mxu1 %v296_v13  ;;  %v8658_v50 = vld [vmem:[#allocation9 + $0x2a4] ss:$16 sps:$4 sm:$0xff]   ;;  %v8656_v51 = vld [vmem:[#allocation9 + $0x2a0] ss:$16 sps:$4 sm:$0xff]  }
  0xf2   :  { %8495 = vmatprep.subr.bf16.mxu0 %v299_v3  ;;  %1114 = vmatprep.subr.bf16.mxu1 %v8610_v14  ;;  %v8661_v52 = vld [vmem:[#allocation9 + $0x124] ss:$16 sps:$4 sm:$0xff]   ;;  %v8659_v53 = vld [vmem:[#allocation9 + $0x120] ss:$16 sps:$4 sm:$0xff]   ;;  %v8679_v14 = vld [vmem:[#allocation9 + $0x2cc] ss:$16 sps:$4 sm:$0xff]  }
  0xf3   :  { %v8664_v54 = vld [vmem:[#allocation9 + $0x284] ss:$16 sps:$4 sm:$0xff]   ;;  %v8662_v55 = vld [vmem:[#allocation9 + $0x280] ss:$16 sps:$4 sm:$0xff]  }
  0xf4   :  { %8480 = vmatmul.mubr.msk.bf16.vlgmr.msra.gmra.mxu0 %vm314_vm0, %v8604_v15  ;;  %8492 = vmatmul.mubr.msk.bf16.vlgmr.msra.gmra.mxu1 %vm314_vm0, %v8605_v16  ;;  %v8667_v56 = vld [vmem:[#allocation9 + $0x104] ss:$16 sps:$4 sm:$0xff]   ;;  %v8665_v57 = vld [vmem:[#allocation9 + $0x100] ss:$16 sps:$4 sm:$0xff]  }
  0xf5   :  { %8496 = vmatpush3.bf16.msra.mxu0 %v299_v3  ;;  %8503 = vmatprep.mubr.msk.bf16.mxu0 %vm314_vm0, %v8606_v17  ;;  %v8670_v58 = vld [vmem:[#allocation9 + $0x264] ss:$16 sps:$4 sm:$0xff]   ;;  %v8668_v59 = vld [vmem:[#allocation9 + $0x260] ss:$16 sps:$4 sm:$0xff]   ;;  %v8694_v3 = vld [vmem:[#allocation9 + $0xec] ss:$16 sps:$4 sm:$0xff]  }
  0xf6   :  { %8497 = vmatprep.subr.bf16.mxu0 %v298_v5  ;;  %1115 = vmatpush1.bf16.msra.mxu1 %v8608_v18  ;;  %v8674_v61 = vld [vmem:[#allocation9 + $0x240] ss:$16 sps:$4 sm:$0xff]   ;;  %v8676_v62 = vld [vmem:[#allocation9 + $0x244] ss:$16 sps:$4 sm:$0xff]   ;;  %v8677_v18 = vld [vmem:[#allocation9 + $0x2c8] ss:$16 sps:$4 sm:$0xff]  }
  0xf7   :  { %1116 = vmatprep.subr.bf16.mxu1 %v8613_v19  ;;  %v8682_v63 = vld [vmem:[#allocation9 + $0x224] ss:$16 sps:$4 sm:$0xff]   ;;  %v8680_v0 = vld [vmem:[#allocation9 + $0x220] ss:$16 sps:$4 sm:$0xff]   ;;  %v8685_v19 = vld [vmem:[#allocation9 + $0x2ac] ss:$16 sps:$4 sm:$0xff]  }
  0xf8   :  { %v8688_v1 = vld [vmem:[#allocation9 + $0x204] ss:$16 sps:$4 sm:$0xff]   ;;  %v8686_v2 = vld [vmem:[#allocation9 + $0x200] ss:$16 sps:$4 sm:$0xff]  }
  0xf9   :  { %8498 = vmatpush3.bf16.msra.mxu0 %v298_v5 }
  0xfa   :  { %8499 = vmatprep.subr.bf16.mxu0 %v297_v10  ;;  %1117 = vmatpush1.bf16.msra.mxu1 %v8611_v20  ;;  %v8683_v20 = vld [vmem:[#allocation9 + $0x2a8] ss:$16 sps:$4 sm:$0xff]  }
  0xfb   :  { %1118 = vmatprep.subr.bf16.mxu1 %v8616_v21  ;;  %v8691_v21 = vld [vmem:[#allocation9 + $0x28c] ss:$16 sps:$4 sm:$0xff]  }
  0xfd   :  { %8500 = vmatpush3.bf16.msra.mxu0 %v297_v10 }
  0xfe   :  { %8501 = vmatprep.subr.bf16.mxu0 %v296_v13  ;;  %1119 = vmatpush1.bf16.msra.mxu1 %v8614_v22 }
  0xff   :  { %1120 = vmatprep.subr.bf16.mxu1 %v8619_v23 }
 0x101   :  { %8502 = vmatpush3.bf16.msra.mxu0 %v296_v13 }
 0x102   :  { %1121 = vmatpush1.bf16.msra.mxu1 %v8617_v24  ;;  %1167 = vmatprep.subr.bf16.mxu0 %v8646_v27  ;;  %v8689_v24 = vld [vmem:[#allocation9 + $0x288] ss:$16 sps:$4 sm:$0xff]  }
 0x103   :  { %1122 = vmatprep.subr.bf16.mxu1 %v8622_v26  ;;  %v8697_v26 = vld [vmem:[#allocation9 + $0x26c] ss:$16 sps:$4 sm:$0xff]  }
 0x104   :  { %8504 = vmatmul.mubr.msk.bf16.vlgmr.msra.gmra.mxu0 %vm314_vm0, %v8607_v25 }
 0x105   :  { %1168 = vmatpush1.bf16.msra.mxu0 %v8644_v28  ;;  %1199 = vmatprep.mubr.bf16.mxu0 %v10078_v4  ;;  %v8692_v28 = vld [vmem:[#allocation9 + $0xe8] ss:$16 sps:$4 sm:$0xff]  }
 0x106   :  { %1123 = vmatpush1.bf16.msra.mxu1 %v8620_v29  ;;  %1169 = vmatprep.subr.bf16.mxu0 %v8652_v30  ;;  %v8695_v29 = vld [vmem:[#allocation9 + $0x268] ss:$16 sps:$4 sm:$0xff]   ;;  %v8700_v30 = vld [vmem:[#allocation9 + $0xcc] ss:$16 sps:$4 sm:$0xff]  }
 0x107   :  { %1124 = vmatprep.subr.bf16.mxu1 %v8625_v31 }
 0x109   :  { %1170 = vmatpush1.bf16.msra.mxu0 %v8650_v32  ;;  %v8703_v32 = vld [vmem:[#allocation9 + $0x24c] ss:$16 sps:$4 sm:$0xff]  }
 0x10a   :  { %1125 = vmatpush1.bf16.msra.mxu1 %v8623_v33  ;;  %1171 = vmatprep.subr.bf16.mxu0 %v8658_v50  ;;  %v8722_v50 = vld [vmem:[#allocation9 + $0x28] ss:$16 sps:$4 sm:$0xff]  }
 0x10b   :  { %1126 = vmatprep.subr.bf16.mxu1 %v8628_v34  ;;  %v8698_v34 = vld [vmem:[#allocation9 + $0xc8] ss:$16 sps:$4 sm:$0xff]  }
 0x10d   :  { %1172 = vmatpush1.bf16.msra.mxu0 %v8656_v51  ;;  %v8727_v51 = vld [vmem:[#allocation9 + $0xc] ss:$16 sps:$4 sm:$0xff]  }
 0x10e   :  { %1127 = vmatpush1.bf16.msra.mxu1 %v8626_v35  ;;  %1173 = vmatprep.subr.bf16.mxu0 %v8664_v54  ;;  %v8701_v35 = vld [vmem:[#allocation9 + $0x248] ss:$16 sps:$4 sm:$0xff]  }
 0x10f   :  { %1128 = vmatprep.subr.bf16.mxu1 %v8631_v36  ;;  %v8706_v36 = vld [vmem:[#allocation9 + $0xac] ss:$16 sps:$4 sm:$0xff]   ;;  %v8728_v54 = vld [vmem:[#allocation9 + $0x1e8] ss:$16 sps:$4 sm:$0xff]  }
 0x111   :  { %1174 = vmatpush1.bf16.msra.mxu0 %v8662_v55  ;;  %v8733_v55 = vld [vmem:[#allocation9 + $0x1cc] ss:$16 sps:$4 sm:$0xff]  }
 0x112   :  { %1129 = vmatpush1.bf16.msra.mxu1 %v8629_v37  ;;  %1175 = vmatprep.subr.bf16.mxu0 %v8670_v58  ;;  %v8709_v37 = vld [vmem:[#allocation9 + $0x22c] ss:$16 sps:$4 sm:$0xff]   ;;  %v8734_v58 = vld [vmem:[#allocation9 + $0x1a8] ss:$16 sps:$4 sm:$0xff]  }
 0x113   :  { %1130 = vmatprep.subr.bf16.mxu1 %v8634_v38  ;;  %v8704_v38 = vld [vmem:[#allocation9 + $0xa8] ss:$16 sps:$4 sm:$0xff]  }
 0x115   :  { %1176 = vmatpush1.bf16.msra.mxu0 %v8668_v59  ;;  %v8739_v59 = vld [vmem:[#allocation9 + $0x18c] ss:$16 sps:$4 sm:$0xff]  }
 0x116   :  { %1131 = vmatpush2.bf16.msra.mxu1 %v8632_v39  ;;  %1177 = vmatprep.subr.bf16.mxu0 %v8676_v62  ;;  %v8707_v39 = vld [vmem:[#allocation9 + $0x228] ss:$16 sps:$4 sm:$0xff]  }
 0x117   :  { %1132 = vmatprep.subr.bf16.mxu1 %v8637_v40  ;;  %v8712_v40 = vld [vmem:[#allocation9 + $0x8c] ss:$16 sps:$4 sm:$0xff]   ;;  %v8740_v62 = vld [vmem:[#allocation9 + $0x168] ss:$16 sps:$4 sm:$0xff]  }
 0x119   :  { %1178 = vmatpush1.bf16.msra.mxu0 %v8674_v61  ;;  %v8742_v61 = vld [vmem:[#allocation9 + $0x16c] ss:$16 sps:$4 sm:$0xff]  }
 0x11a   :  { %1133 = vmatpush2.bf16.msra.mxu1 %v8635_v41  ;;  %1179 = vmatprep.subr.bf16.mxu0 %v8682_v63  ;;  %v8715_v41 = vld [vmem:[#allocation9 + $0x20c] ss:$16 sps:$4 sm:$0xff]  }
 0x11b   :  { %1134 = vmatprep.subr.bf16.mxu1 %v8640_v42  ;;  %v8745_v63 = vld [vmem:[#allocation9 + $0x14c] ss:$16 sps:$4 sm:$0xff]  }
 0x11d   :  { %1180 = vmatpush1.bf16.msra.mxu0 %v8680_v0  ;;  %v8743_v0 = vld [vmem:[#allocation9 + $0x148] ss:$16 sps:$4 sm:$0xff]  }
 0x11e   :  { %1135 = vmatpush2.bf16.msra.mxu1 %v8638_v43  ;;  %1181 = vmatprep.subr.bf16.mxu0 %v8688_v1  ;;  %v8710_v43 = vld [vmem:[#allocation9 + $0x88] ss:$16 sps:$4 sm:$0xff]   ;;  %v8748_v1 = vld [vmem:[#allocation9 + $0x12c] ss:$16 sps:$4 sm:$0xff]  }
 0x11f   :  { %1136 = vmatprep.subr.bf16.mxu1 %v8643_v44  ;;  %v8713_v44 = vld [vmem:[#allocation9 + $0x208] ss:$16 sps:$4 sm:$0xff]  }
 0x121   :  { %1182 = vmatpush1.bf16.msra.mxu0 %v8686_v2  ;;  %v8746_v2 = vld [vmem:[#allocation9 + $0x128] ss:$16 sps:$4 sm:$0xff]  }
 0x122   :  { %1137 = vmatpush2.bf16.msra.mxu1 %v8641_v45  ;;  %1220 = vmatprep.subr.bf16.mxu0 %v8694_v3  ;;  %v8718_v45 = vld [vmem:[#allocation9 + $0x6c] ss:$16 sps:$4 sm:$0xff]  }
 0x123   :  { %1138 = vmatprep.subr.bf16.mxu1 %v8649_v46  ;;  %v8716_v46 = vld [vmem:[#allocation9 + $0x68] ss:$16 sps:$4 sm:$0xff]   ;;  %v8751_v3 = vld [vmem:[#allocation9 + $0x10c] ss:$16 sps:$4 sm:$0xff]  }
 0x126   :  { %1139 = vmatpush2.bf16.msra.mxu1 %v8647_v47  ;;  %v8721_v47 = vld [vmem:[#allocation9 + $0x4c] ss:$16 sps:$4 sm:$0xff]  }
 0x127   :  { %1140 = vmatprep.subr.bf16.mxu1 %v8655_v48  ;;  %v8719_v48 = vld [vmem:[#allocation9 + $0x48] ss:$16 sps:$4 sm:$0xff]  }
 0x12a   :  { %1141 = vmatpush2.bf16.msra.mxu1 %v8653_v49  ;;  %v8724_v49 = vld [vmem:[#allocation9 + $0x2c] ss:$16 sps:$4 sm:$0xff]  }
 0x12b   :  { %1142 = vmatprep.subr.bf16.mxu1 %v8661_v52  ;;  %v8725_v52 = vld [vmem:[#allocation9 + $0x8] ss:$16 sps:$4 sm:$0xff]  }
 0x12e   :  { %1143 = vmatpush2.bf16.msra.mxu1 %v8659_v53  ;;  %v8730_v53 = vld [vmem:[#allocation9 + $0x1ec] ss:$16 sps:$4 sm:$0xff]  }
 0x12f   :  { %1144 = vmatprep.subr.bf16.mxu1 %v8667_v56  ;;  %v8731_v56 = vld [vmem:[#allocation9 + $0x1c8] ss:$16 sps:$4 sm:$0xff]  }
 0x132   :  { %1145 = vmatpush2.bf16.msra.mxu1 %v8665_v57  ;;  %v8736_v57 = vld [vmem:[#allocation9 + $0x1ac] ss:$16 sps:$4 sm:$0xff]  }
 0x133   :  { %1273 = vmatprep.subr.bf16.mxu1 %v8673_v60  ;;  %v8737_v60 = vld [vmem:[#allocation9 + $0x188] ss:$16 sps:$4 sm:$0xff]  }
 0x1b4   :  { %v8481_v5 = vpop.f32.mrf.mxu0  ;;  %v8493_v6 = vpop.f32.mrf.mxu1 }
 0x1b6   :  { %v355_v7 = vpop.f32.mrf.mxu0  ;;  %v425_v8 = vpop.f32.mrf.mxu1 }
 0x1b8   :  { %v8482_v9 = vpop.f32.mrf.mxu0  ;;  %v8494_v10 = vpop.f32.mrf.mxu1 }
 0x1b9   :  { %v10305_v15 = vpack.c.bf16 %v8494_v10, %v8493_v6  ;;  %v10311_v22 = vpack.c.bf16 %v8482_v9, %v8481_v5  ;;  %v8749_v5 = vld [vmem:[#allocation9 + $0x108] ss:$16 sps:$4 sm:$0xff]   ;;  %v614_v10 = vlaneseq }
 0x1ba   :  { %v358_v12 = vpop.f32.mrf.mxu0  ;;  %v428_v13 = vpop.f32.mrf.mxu1 }
 0x1bb   :  { %v10307_v16 = vpack.c.bf16 %v358_v12, %v355_v7  ;;  %v511_v17 = vpack.c.bf16 %v428_v13, %v425_v8  ;;  %v10322_v12 = vshrl.u32 %v614_v10, 7  ;;  %v8761_v10 = vld [vmem:[#allocation10 + $0x50] ss:$8 sps:$4 sm:$0xff]  }
 0x1bd   :  { %1146 = vmatprep.mubr.bf16.mxu1 %v511_v17 }
 0x1be   :  { %1147 = vmatmul.mubr.bf16.vlgmr.msra.gmra.mxu1 %v10307_v16 }
 0x1bf   :  { %1274 = vmatpush1.bf16.msra.mxu1 %v8671_v11  ;;  %1156 = vmatprep.mubr.bf16.mxu1 %v10305_v15 }
 0x1c0   :  { %1275 = vmatprep.subr.bf16.mxu1 %v8679_v14  ;;  %v10325_v14 = vsub.s32 1, %v10322_v12 }
 0x1c3   :  { %1276 = vmatpush1.bf16.msra.mxu1 %v8677_v18 }
 0x1c4   :  { %v8505_v23 = vpop.f32.mrf.mxu0  ;;  %1277 = vmatprep.subr.bf16.mxu1 %v8685_v19  ;;  %v10330_v19 = vld [vmem:[#allocation13] sm:$0xf] }
 0x1c6   :  { %v495_v25 = vpop.f32.mrf.mxu0  ;;  %1157 = vmatmul.mubr.bf16.gmra.mxu1 %v10311_v22 }
 0x1c7   :  { %1278 = vmatpush1.bf16.msra.mxu1 %v8683_v20  ;;  %1305 = vmatprep.mubr.bf16.mxu1 %v10078_v4  ;;  %v621_v20 = vrot.slane %v10330_v19, %v10325_v14 }
 0x1c8   :  { %v8506_v27 = vpop.f32.mrf.mxu0  ;;  %1279 = vmatprep.subr.bf16.mxu1 %v8691_v21 }
 0x1c9   :  { %v515_v42 = vpack.c.bf16 %v8506_v27, %v8505_v23 }
 0x1ca   :  { %v498_v31 = vpop.f32.mrf.mxu0 }
 0x1cb   :  { %v512_v33 = vpack.c.bf16 %v498_v31, %v495_v25  ;;  %1280 = vmatpush1.bf16.msra.mxu1 %v8689_v24 }
 0x1cc   :  { %1281 = vmatprep.subr.bf16.mxu1 %v8697_v26 }
 0x1cd   :  { %1200 = vmatmul.mubr.bf16.vlgmr.msra.gmra.mxu0 %v512_v33 }
 0x1ce   :  { %1221 = vmatpush1.bf16.msra.mxu0 %v8692_v28  ;;  %1209 = vmatprep.mubr.bf16.mxu0 %v10078_v4 }
 0x1cf   :  { %1282 = vmatpush1.bf16.msra.mxu1 %v8695_v29  ;;  %1222 = vmatprep.subr.bf16.mxu0 %v8700_v30 }
 0x1d0   :  { %1283 = vmatprep.subr.bf16.mxu1 %v8703_v32 }
 0x1d2   :  { %1223 = vmatpush1.bf16.msra.mxu0 %v8698_v34 }
 0x1d3   :  { %1284 = vmatpush1.bf16.msra.mxu1 %v8701_v35  ;;  %1224 = vmatprep.subr.bf16.mxu0 %v8706_v36 }
 0x1d4   :  { %1285 = vmatprep.subr.bf16.mxu1 %v8709_v37 }
 0x1d5   :  { %1210 = vmatmul.mubr.bf16.gmra.mxu0 %v515_v42 }
 0x1d6   :  { %1225 = vmatpush1.bf16.msra.mxu0 %v8704_v38  ;;  %1252 = vmatprep.mubr.bf16.mxu0 %v511_v17 }
 0x1d7   :  { %1286 = vmatpush1.bf16.msra.mxu1 %v8707_v39  ;;  %1226 = vmatprep.subr.bf16.mxu0 %v8712_v40 }
 0x1d8   :  { %1287 = vmatprep.subr.bf16.mxu1 %v8715_v41 }
 0x1da   :  { %1227 = vmatpush1.bf16.msra.mxu0 %v8710_v43 }
 0x1db   :  { %1288 = vmatpush1.bf16.msra.mxu1 %v8713_v44  ;;  %1228 = vmatprep.subr.bf16.mxu0 %v8718_v45 }
 0x1de   :  { %1229 = vmatpush1.bf16.msra.mxu0 %v8716_v46  ;;  %1306 = vmatmul.mubr.bf16.vlgmr.msra.gmra.mxu1 %v512_v33 }
 0x1df   :  { %1230 = vmatprep.subr.bf16.mxu0 %v8721_v47  ;;  %1315 = vmatprep.mubr.bf16.mxu1 %v10078_v4 }
 0x1e2   :  { %1231 = vmatpush1.bf16.msra.mxu0 %v8719_v48 }
 0x1e3   :  { %1232 = vmatprep.subr.bf16.mxu0 %v8724_v49 }
 0x1e6   :  { %1233 = vmatpush1.bf16.msra.mxu0 %v8722_v50  ;;  %1316 = vmatmul.mubr.bf16.gmra.mxu1 %v515_v42 }
 0x1e7   :  { %1234 = vmatprep.subr.bf16.mxu0 %v8727_v51  ;;  %1425 = vmatprep.mubr.bf16.mxu1 %v10078_v4 }
 0x1ea   :  { %1235 = vmatpush1.bf16.msra.mxu0 %v8725_v52 }
 0x1eb   :  { %1236 = vmatprep.subr.bf16.mxu0 %v8730_v53 }
 0x1ee   :  { %1237 = vmatpush2.bf16.msra.mxu0 %v8728_v54 }
 0x1ef   :  { %1238 = vmatprep.subr.bf16.mxu0 %v8733_v55 }
 0x1f2   :  { %1239 = vmatpush2.bf16.msra.mxu0 %v8731_v56 }
 0x1f3   :  { %1240 = vmatprep.subr.bf16.mxu0 %v8736_v57 }
 0x1f6   :  { %1241 = vmatpush2.bf16.msra.mxu0 %v8734_v58 }
 0x1f7   :  { %1242 = vmatprep.subr.bf16.mxu0 %v8739_v59 }
 0x1fa   :  { %1243 = vmatpush2.bf16.msra.mxu0 %v8737_v60 }
 0x1fb   :  { %1244 = vmatprep.subr.bf16.mxu0 %v8742_v61 }
 0x1fe   :  { %1245 = vmatpush2.bf16.msra.mxu0 %v8740_v62 }
 0x1ff   :  { %1246 = vmatprep.subr.bf16.mxu0 %v8745_v63 }
 0x202   :  { %1247 = vmatpush2.bf16.msra.mxu0 %v8743_v0 }
 0x203   :  { %1248 = vmatprep.subr.bf16.mxu0 %v8748_v1  ;;  %v10336_v1 = vld [vmem:[#allocation4 + $0x8] sm:$0xff]  }
 0x206   :  { %1249 = vmatpush2.bf16.msra.mxu0 %v8746_v2  ;;  %v10338_v2 = vld [vmem:[#allocation4] sm:$0xff]  }
 0x207   :  { %1250 = vmatprep.subr.bf16.mxu0 %v8751_v3  ;;  %v8757_v3 = vld [vmem:[#allocation10 + $0x74] ss:$8 sps:$4 sm:$0xff]  }
 0x20a   :  { %1251 = vmatpush2.bf16.msra.mxu0 %v8749_v5  ;;  %v10346_v5 = vld [vmem:[#allocation4 + $0x10] sm:$0xff]  }
 0x20d   :  { %1253 = vmatmul.mubr.bf16.vlgmr.msra.gmra.mxu0 %v10307_v16 }
 0x20e   :  { %1262 = vmatprep.mubr.bf16.mxu0 %v10305_v15  ;;  %v10328_v15 = vsub.s32 0, %v10322_v12 }
 0x210   :  { %v617_v23 = vrot.slane %v10330_v19, %v10328_v15 }
 0x215   :  { %1263 = vmatmul.mubr.bf16.gmra.mxu0 %v10311_v22 }
 0x216   :  { %1522 = vmatprep.mubr.bf16.mxu0 %v10078_v4 }
 0x27e   :  { %v1148_v6 = vpop.f32.mrf.mxu1 }
 0x27f   :  { %v1149_v40 = vadd.f32 %v1148_v6, %v617_v23  ;;  %v8755_v6 = vld [vmem:[#allocation10 + $0x70] ss:$8 sps:$4 sm:$0xff]  }
 0x280   :  { %v1150_v7 = vpop.f32.mrf.mxu1 }
 0x281   :  { %v1151_v31 = vadd.f32 %v1150_v7, %v621_v20  ;;  %v8760_v7 = vld [vmem:[#allocation10 + $0x64] ss:$8 sps:$4 sm:$0xff]  }
 0x282   :  { %v1152_v8 = vpop.f32.mrf.mxu1 }
 0x283   :  { %v1153_v34 = vadd.f32 %v1152_v8, %v617_v23  ;;  %v8758_v8 = vld [vmem:[#allocation10 + $0x60] ss:$8 sps:$4 sm:$0xff]  }
 0x284   :  { %v1154_v9 = vpop.f32.mrf.mxu1 }
 0x285   :  { %v1155_v24 = vadd.f32 %v1154_v9, %v621_v20  ;;  %v8763_v9 = vld [vmem:[#allocation10 + $0x54] ss:$8 sps:$4 sm:$0xff]  }
 0x286   :  { %v1158_v11 = vpop.f32.mrf.mxu1 }
 0x287   :  { %v1159_v27 = vadd.f32 %v1158_v11, %v617_v23  ;;  %v8766_v11 = vld [vmem:[#allocation10 + $0x44] ss:$8 sps:$4 sm:$0xff]  }
 0x288   :  { %v1160_v17 = vpop.f32.mrf.mxu1 }
 0x289   :  { %v1161_v26 = vadd.f32 %v1160_v17, %v621_v20  ;;  %v8769_v17 = vld [vmem:[#allocation10 + $0x34] ss:$8 sps:$4 sm:$0xff]  }
 0x28a   :  { %v1162_v21 = vpop.f32.mrf.mxu1 }
 0x28b   :  { %v1163_v32 = vadd.f32 %v1162_v21, %v617_v23  ;;  %v8770_v21 = vld [vmem:[#allocation10 + $0x20] ss:$8 sps:$4 sm:$0xff]  }
 0x28c   :  { %v1164_v28 = vpop.f32.mrf.mxu1 }
 0x28d   :  { %v1201_v13 = vpop.f32.mrf.mxu0  ;;  %v1165_v37 = vadd.f32 %v1164_v28, %v621_v20 }
 0x28e   :  { %v1202_v47 = vadd.f32 %v1201_v13, %v1149_v40  ;;  %v8764_v13 = vld [vmem:[#allocation10 + $0x40] ss:$8 sps:$4 sm:$0xff]  }
 0x28f   :  { %v1203_v16 = vpop.f32.mrf.mxu0 }
 0x290   :  { %v1204_v38 = vadd.f32 %v1203_v16, %v1151_v31  ;;  %v1342_v56 = vmul.f32 0.01, %v1202_v47  ;;  %vm1326_vm8 = vcmp.gt.f32.partialorder %v1202_v47, 0.0  ;;  %v8767_v16 = vld [vmem:[#allocation10 + $0x30] ss:$8 sps:$4 sm:$0xff]  }
 0x291   :  { %v1205_v18 = vpop.f32.mrf.mxu0 }
 0x292   :  { %v1206_v41 = vadd.f32 %v1205_v18, %v1153_v34  ;;  %v1343_v49 = vmul.f32 0.01, %v1204_v38  ;;  %vm1327_vm6 = vcmp.gt.f32.partialorder %v1204_v38, 0.0  ;;  %v1358_v63 = vsel %vm1326_vm8, %v1202_v47, %v1342_v56  ;;  %v8772_v18 = vld [vmem:[#allocation10 + $0x24] ss:$8 sps:$4 sm:$0xff]  }
 0x293   :  { %v1207_v22 = vpop.f32.mrf.mxu0  ;;  %vm10080_vm8 = vmmov 0  }
 0x294   :  { %v1208_v29 = vadd.f32 %v1207_v22, %v1155_v24  ;;  %v1346_v51 = vmul.f32 0.01, %v1206_v41  ;;  %vm1330_vm7 = vcmp.gt.f32.partialorder %v1206_v41, 0.0  ;;  %v1359_v60 = vsel %vm1327_vm6, %v1204_v38, %v1343_v49  ;;  %v8775_v22 = vld [vmem:[#allocation10 + $0x14] ss:$8 sps:$4 sm:$0xff]  }
 0x295   :  { %v1211_v25 = vpop.f32.mrf.mxu0  ;;  %v8773_v24 = vld [vmem:[#allocation10 + $0x10] ss:$8 sps:$4 sm:$0xff]  }
 0x296   :  { %v1212_v35 = vadd.f32 %v1211_v25, %v1159_v27  ;;  %v1347_v42 = vmul.f32 0.01, %v1208_v29  ;;  %vm1331_vm2 = vcmp.gt.f32.partialorder %v1208_v29, 0.0  ;;  %v1362_v61 = vsel %vm1330_vm7, %v1206_v41, %v1346_v51  ;;  %v8778_v25 = vld [vmem:[#allocation10 + $0x4] ss:$8 sps:$4 sm:$0xff]  }
 0x297   :  { %v1213_v30 = vpop.f32.mrf.mxu0  ;;  %v1374_v0 = vpack.c.bf16 %v1362_v61, %v1358_v63  ;;  %v8776_v27 = vld [vmem:[#allocation10] ss:$8 sps:$4 sm:$0xff]   ;;  %v8785_v49 = vld [vmem:[#allocation10 + $0xd0] ss:$8 sps:$4 sm:$0xff]   ;;  %vm3122_vm7 = vcmask 130048  }
 0x298   :  { %v1214_v33 = vadd.f32 %v1213_v30, %v1161_v26  ;;  %v1350_v48 = vmul.f32 0.01, %v1212_v35  ;;  %vm1334_vm4 = vcmp.gt.f32.partialorder %v1212_v35, 0.0  ;;  %v1363_v55 = vsel %vm1331_vm2, %v1208_v29, %v1347_v42  ;;  %v8781_v29 = vld [vmem:[#allocation10 + $0xf4] ss:$8 sps:$4 sm:$0xff]  }
 0x299   :  { %v1215_v36 = vpop.f32.mrf.mxu0  ;;  %v1375_v62 = vpack.c.bf16 %v1363_v55, %v1359_v60  ;;  %v8787_v42 = vld [vmem:[#allocation10 + $0xd4] ss:$8 sps:$4 sm:$0xff]  }
 0x29a   :  { %v1216_v39 = vadd.f32 %v1215_v36, %v1163_v32  ;;  %v1351_v44 = vmul.f32 0.01, %v1214_v33  ;;  %vm1335_vm3 = vcmp.gt.f32.partialorder %v1214_v33, 0.0  ;;  %v1366_v57 = vsel %vm1334_vm4, %v1212_v35, %v1350_v48  ;;  %v8779_v32 = vld [vmem:[#allocation10 + $0xf0] ss:$8 sps:$4 sm:$0xff]  }
 0x29b   :  { %v1217_v43 = vpop.f32.mrf.mxu0  ;;  %v8784_v35 = vld [vmem:[#allocation10 + $0xe4] ss:$8 sps:$4 sm:$0xff]  }
 0x29c   :  { %vm1338_vm1 = vcmp.gt.f32.partialorder %v1216_v39, 0.0  ;;  %v1354_v45 = vmul.f32 0.01, %v1216_v39  ;;  %v1218_v46 = vadd.f32 %v1217_v43, %v1165_v37  ;;  %v1367_v53 = vsel %vm1335_vm3, %v1214_v33, %v1351_v44 }
 0x29d   :  { %v10353_v33 = vsub.s32 3, %v10322_v12  ;;  %v10356_v37 = vsub.s32 2, %v10322_v12 }
 0x29e   :  { %vm1339_vm5 = vcmp.gt.f32.partialorder %v1218_v46, 0.0  ;;  %v1355_v50 = vmul.f32 0.01, %v1218_v46  ;;  %v1370_v52 = vsel %vm1338_vm1, %v1216_v39, %v1354_v45  ;;  %v10350_v20 = vpop.f32.mrf.mxu1  ;;  %v8782_v39 = vld [vmem:[#allocation10 + $0xe0] ss:$8 sps:$4 sm:$0xff]  }
 0x29f   :  { %v1378_v59 = vpack.c.bf16 %v1370_v52, %v1366_v57  ;;  %v629_v40 = vrot.slane %v10330_v19, %v10353_v33  ;;  %v625_v44 = vrot.slane %v10330_v19, %v10356_v37  ;;  %v8790_v52 = vld [vmem:[#allocation10 + $0xc4] ss:$8 sps:$4 sm:$0xff]   ;;  %v8788_v19 = vld [vmem:[#allocation10 + $0xc0] ss:$8 sps:$4 sm:$0xff]  }
 0x2a0   :  { %v1371_v54 = vsel %vm1339_vm5, %v1218_v46, %v1355_v50  ;;  %v1309_v23 = vpop.f32.mrf.mxu1 }
 0x2a1   :  { %v1379_v58 = vpack.c.bf16 %v1371_v54, %v1367_v53 }
 0x2a2   :  { %v1311_v26 = vpop.f32.mrf.mxu1 }
 0x2a3   :  { %1405 = vmatprep.subr.bf16.mxu1 %v1379_v58  ;;  %1502 = vmatprep.subr.bf16.mxu0 %v1379_v58 }
 0x2a4   :  { %1406 = vmatpush1.bf16.msra.mxu1 %v1378_v59  ;;  %1503 = vmatpush1.bf16.msra.mxu0 %v1378_v59  ;;  %v1313_v30 = vpop.f32.mrf.mxu1 }
 0x2a5   :  { %1407 = vmatprep.subr.bf16.mxu1 %v1375_v62  ;;  %1504 = vmatprep.subr.bf16.mxu0 %v1375_v62 }
 0x2a6   :  { %v1317_v36 = vpop.f32.mrf.mxu1 }
 0x2a8   :  { %1408 = vmatpush1.bf16.msra.mxu1 %v1374_v0  ;;  %1505 = vmatpush1.bf16.msra.mxu0 %v1374_v0  ;;  %v1319_v43 = vpop.f32.mrf.mxu1 }
 0x2a9   :  { %1599 = vmatprep.subr.bf16.mxu0 %v1379_v58 }
 0x2aa   :  { %v1321_v53 = vpop.f32.mrf.mxu1 }
 0x2ab   :  { %7663 = vmatmul.mubr.msk.bf16.vlgmr.msra.gmra.mxu0 %vm1389_vm9, %v10336_v1  ;;  %7660 = vmatmul.mubr.msk.bf16.vlgmr.msra.gmra.mxu1 %vm1389_vm9, %v10338_v2 }
 0x2ac   :  { %1600 = vmatpush1.bf16.msra.mxu0 %v1378_v59  ;;  %1468 = vmatprep.mubr.bf16.mxu1 %v10078_v4 }
 0x2ad   :  { %1601 = vmatprep.subr.bf16.mxu0 %v1375_v62  ;;  %1619 = vmatprep.mubr.bf16.mxu0 %v10078_v4 }
 0x2b0   :  { %1602 = vmatpush1.bf16.msra.mxu0 %v1374_v0  ;;  %v8793_v0 = vld [vmem:[#allocation10 + $0xb4] ss:$8 sps:$4 sm:$0xff]  }
 0x2b1   :  { %2849 = vmatprep.subr.bf16.mxu0 %v8757_v3  ;;  %v1323_v3 = vpop.f32.mrf.mxu1 }
 0x2b3   :  { %7666 = vmatmul.mubr.msk.bf16.vlgmr.msra.gmra.mxu0 %vm1389_vm9, %v10346_v5 }
 0x2b4   :  { %2850 = vmatpush1.bf16.msra.mxu0 %v8755_v6 }
 0x2b5   :  { %2851 = vmatprep.subr.bf16.mxu0 %v8760_v7 }
 0x2b8   :  { %2852 = vmatpush1.bf16.msra.mxu0 %v8758_v8  ;;  %v8791_v8 = vld [vmem:[#allocation10 + $0xb0] ss:$8 sps:$4 sm:$0xff]  }
 0x2b9   :  { %2853 = vmatprep.subr.bf16.mxu0 %v8763_v9 }
 0x2bc   :  { %2854 = vmatpush1.bf16.msra.mxu0 %v8761_v10 }
 0x2bd   :  { %2855 = vmatprep.subr.bf16.mxu0 %v8766_v11 }
 0x2c0   :  { %2856 = vmatpush1.bf16.msra.mxu0 %v8764_v13 }
 0x2c1   :  { %2857 = vmatprep.subr.bf16.mxu0 %v8769_v17 }
 0x2c4   :  { %2858 = vmatpush1.bf16.msra.mxu0 %v8767_v16  ;;  %v8796_v16 = vld [vmem:[#allocation10 + $0xa4] ss:$8 sps:$4 sm:$0xff]  }
 0x2c5   :  { %2859 = vmatprep.subr.bf16.mxu0 %v8772_v18 }
 0x2c8   :  { %2860 = vmatpush1.bf16.msra.mxu0 %v8770_v21 }
 0x2c9   :  { %2861 = vmatprep.subr.bf16.mxu0 %v8775_v22 }
 0x2cc   :  { %2862 = vmatpush1.bf16.msra.mxu0 %v8773_v24 }
 0x2cd   :  { %v1254_v28 = vpop.f32.mrf.mxu0  ;;  %2863 = vmatprep.subr.bf16.mxu0 %v8778_v25 }
 0x2ce   :  { %v1255_v59 = vadd.f32 %v1254_v28, %v625_v44 }
 0x2cf   :  { %v1256_v31 = vpop.f32.mrf.mxu0 }
 0x2d0   :  { %2864 = vmatpush1.bf16.msra.mxu0 %v8776_v27  ;;  %v1257_v50 = vadd.f32 %v1256_v31, %v629_v40  ;;  %v1308_v13 = vadd.f32 %v10350_v20, %v1255_v59  ;;  %v8857_v59 = vld [vmem:[#allocation10 + $0x1e0] ss:$8 sps:$4 sm:$0xff]  }
 0x2d1   :  { %v1258_v34 = vpop.f32.mrf.mxu0  ;;  %2865 = vmatprep.subr.bf16.mxu0 %v8781_v29  ;;  %v8794_v29 = vld [vmem:[#allocation10 + $0xa0] ss:$8 sps:$4 sm:$0xff]  }
 0x2d2   :  { %v1259_v54 = vadd.f32 %v1258_v34, %v625_v44  ;;  %v1310_v62 = vadd.f32 %v1309_v23, %v1257_v50  ;;  %v1344_v27 = vmul.f32 0.01, %v1308_v13  ;;  %vm1328_vm2 = vcmp.gt.f32.partialorder %v1308_v13, 0.0  ;;  %v8827_v50 = vld [vmem:[#allocation10 + $0x130] ss:$8 sps:$4 sm:$0xff]  }
 0x2d3   :  { %v1260_v38 = vpop.f32.mrf.mxu0 }
 0x2d4   :  { %2866 = vmatpush2.bf16.msra.mxu0 %v8779_v32  ;;  %v1261_v45 = vadd.f32 %v1260_v38, %v629_v40  ;;  %v1312_v6 = vadd.f32 %v1311_v26, %v1259_v54  ;;  %v1345_v18 = vmul.f32 0.01, %v1310_v62  ;;  %vm1329_vm15 = vcmp.gt.f32.partialorder %v1310_v62, 0.0  ;;  %v8797_v38 = vld [vmem:[#allocation10 + $0x90] ss:$8 sps:$4 sm:$0xff]  }
 0x2d5   :  { %v1264_v41 = vpop.f32.mrf.mxu0  ;;  %2867 = vmatprep.subr.bf16.mxu0 %v8784_v35  ;;  %v1360_v35 = vsel %vm1328_vm2, %v1308_v13, %v1344_v27  ;;  %v8847_v54 = vld [vmem:[#allocation10 + $0x104] ss:$8 sps:$4 sm:$0xff]  }
 0x2d6   :  { %v1265_v47 = vadd.f32 %v1264_v41, %v625_v44  ;;  %v1314_v56 = vadd.f32 %v1313_v30, %v1261_v45  ;;  %v1348_v22 = vmul.f32 0.01, %v1312_v6  ;;  %vm1332_vm1 = vcmp.gt.f32.partialorder %v1312_v6, 0.0  ;;  %v8802_v41 = vld [vmem:[#allocation10 + $0x84] ss:$8 sps:$4 sm:$0xff]  }
 0x2d7   :  { %v1266_v46 = vpop.f32.mrf.mxu0  ;;  %v1361_v31 = vsel %vm1329_vm15, %v1310_v62, %v1345_v18  ;;  %v8809_v45 = vld [vmem:[#allocation10 + $0x160] ss:$8 sps:$4 sm:$0xff]  }
 0x2d8   :  { %v1267_v48 = vadd.f32 %v1266_v46, %v629_v40  ;;  %2868 = vmatpush2.bf16.msra.mxu0 %v8782_v39  ;;  %v1318_v60 = vadd.f32 %v1317_v36, %v1265_v47  ;;  %v1349_v9 = vmul.f32 0.01, %v1314_v56  ;;  %vm1333_vm11 = vcmp.gt.f32.partialorder %v1314_v56, 0.0  ;;  %v8799_v39 = vld [vmem:[#allocation10 + $0x94] ss:$8 sps:$4 sm:$0xff]  }
 0x2d9   :  { %v1268_v51 = vpop.f32.mrf.mxu0  ;;  %2869 = vmatprep.subr.bf16.mxu0 %v8787_v42  ;;  %v1364_v32 = vsel %vm1332_vm1, %v1312_v6, %v1348_v22  ;;  %v8808_v42 = vld [vmem:[#allocation10 + $0x274] ss:$8 sps:$4 sm:$0xff]   ;;  %v8815_v47 = vld [vmem:[#allocation10 + $0x150] ss:$8 sps:$4 sm:$0xff]   ;;  %v8869_v62 = vld [vmem:[#allocation10 + $0x1c0] ss:$8 sps:$4 sm:$0xff]  }
 0x2da   :  { %v1269_v55 = vadd.f32 %v1268_v51, %v625_v44  ;;  %v1320_v57 = vadd.f32 %v1319_v43, %v1267_v48  ;;  %v1352_v17 = vmul.f32 0.01, %v1318_v60  ;;  %vm1336_vm13 = vcmp.gt.f32.partialorder %v1318_v60, 0.0  ;;  %v8803_v43 = vld [vmem:[#allocation10 + $0x170] ss:$8 sps:$4 sm:$0xff]  }
 0x2db   :  { %v1270_v58 = vpop.f32.mrf.mxu0  ;;  %v1365_v26 = vsel %vm1333_vm11, %v1314_v56, %v1349_v9  ;;  %v1376_v36 = vpack.c.bf16 %v1364_v32, %v1360_v35  ;;  %v8811_v44 = vld [vmem:[#allocation10 + $0x164] ss:$8 sps:$4 sm:$0xff]   ;;  %v8817_v46 = vld [vmem:[#allocation10 + $0x154] ss:$8 sps:$4 sm:$0xff]   ;;  %v8821_v48 = vld [vmem:[#allocation10 + $0x140] ss:$8 sps:$4 sm:$0xff]  }
 0x2dc   :  { %v1322_v61 = vadd.f32 %v1321_v53, %v1269_v55  ;;  %2870 = vmatpush2.bf16.msra.mxu0 %v8785_v49  ;;  %v1271_v63 = vadd.f32 %v1270_v58, %v629_v40  ;;  %v1353_v10 = vmul.f32 0.01, %v1320_v57  ;;  %vm1337_vm12 = vcmp.gt.f32.partialorder %v1320_v57, 0.0  ;;  %v8800_v40 = vld [vmem:[#allocation10 + $0x80] ss:$8 sps:$4 sm:$0xff]  }
 0x2dd   :  { %2871 = vmatprep.subr.bf16.mxu0 %v8790_v52  ;;  %v1368_v20 = vsel %vm1336_vm13, %v1318_v60, %v1352_v17  ;;  %v1377_v34 = vpack.c.bf16 %v1365_v26, %v1361_v31  ;;  %v8829_v49 = vld [vmem:[#allocation10 + $0x134] ss:$8 sps:$4 sm:$0xff]   ;;  %v8835_v51 = vld [vmem:[#allocation10 + $0x124] ss:$8 sps:$4 sm:$0xff]   ;;  %v8833_v52 = vld [vmem:[#allocation10 + $0x120] ss:$8 sps:$4 sm:$0xff]  }
 0x2de   :  { %v1356_v7 = vmul.f32 0.01, %v1322_v61  ;;  %vm1340_vm10 = vcmp.gt.f32.partialorder %v1322_v61, 0.0  ;;  %v1324_v11 = vadd.f32 %v1323_v3, %v1271_v63  ;;  %v1369_v24 = vsel %vm1337_vm12, %v1320_v57, %v1353_v10  ;;  %v8839_v53 = vld [vmem:[#allocation10 + $0x110] ss:$8 sps:$4 sm:$0xff]  }
 0x2df   :  { %v8845_v55 = vld [vmem:[#allocation10 + $0x100] ss:$8 sps:$4 sm:$0xff]   ;;  %v8853_v56 = vld [vmem:[#allocation10 + $0x1f4] ss:$8 sps:$4 sm:$0xff]   ;;  %v8851_v57 = vld [vmem:[#allocation10 + $0x1f0] ss:$8 sps:$4 sm:$0xff]  }
 0x2e0   :  { %2872 = vmatpush2.bf16.msra.mxu0 %v8788_v19  ;;  %vm1341_vm14 = vcmp.gt.f32.partialorder %v1324_v11, 0.0  ;;  %v1357_v21 = vmul.f32 0.01, %v1324_v11  ;;  %v1372_v23 = vsel %vm1340_vm10, %v1322_v61, %v1356_v7  ;;  %v8859_v58 = vld [vmem:[#allocation10 + $0x1e4] ss:$8 sps:$4 sm:$0xff]   ;;  %vm3785_vm10 = vcmask 1043456  }
 0x2e1   :  { %2873 = vmatprep.subr.bf16.mxu0 %v8793_v0  ;;  %v1380_v30 = vpack.c.bf16 %v1372_v23, %v1368_v20  ;;  %v8865_v60 = vld [vmem:[#allocation10 + $0x1d4] ss:$8 sps:$4 sm:$0xff]   ;;  %v8863_v61 = vld [vmem:[#allocation10 + $0x1d0] ss:$8 sps:$4 sm:$0xff]   ;;  %v8871_v19 = vld [vmem:[#allocation10 + $0x1c4] ss:$8 sps:$4 sm:$0xff]  }
 0x2e2   :  { %v1373_v25 = vsel %vm1341_vm14, %v1324_v11, %v1357_v21  ;;  %v8877_v63 = vld [vmem:[#allocation10 + $0x1b4] ss:$8 sps:$4 sm:$0xff]   ;;  %v8875_v0 = vld [vmem:[#allocation10 + $0x1b0] ss:$8 sps:$4 sm:$0xff]   ;;  %v8883_v3 = vld [vmem:[#allocation10 + $0x1a4] ss:$8 sps:$4 sm:$0xff]  }
 0x2e3   :  { %v1381_v28 = vpack.c.bf16 %v1373_v25, %v1369_v24  ;;  %v8881_v6 = vld [vmem:[#allocation10 + $0x1a0] ss:$8 sps:$4 sm:$0xff]   ;;  %v8889_v7 = vld [vmem:[#allocation10 + $0x194] ss:$8 sps:$4 sm:$0xff]   ;;  %v8895_v9 = vld [vmem:[#allocation10 + $0x184] ss:$8 sps:$4 sm:$0xff]  }
 0x2e4   :  { %2874 = vmatpush2.bf16.msra.mxu0 %v8791_v8  ;;  %v8887_v8 = vld [vmem:[#allocation10 + $0x190] ss:$8 sps:$4 sm:$0xff]   ;;  %v8893_v10 = vld [vmem:[#allocation10 + $0x180] ss:$8 sps:$4 sm:$0xff]   ;;  %v8901_v11 = vld [vmem:[#allocation10 + $0x374] ss:$8 sps:$4 sm:$0xff]  }
 0x2e5   :  { %2875 = vmatprep.subr.bf16.mxu0 %v8796_v16  ;;  %1448 = vmatprep.subr.bf16.mxu1 %v1381_v28  ;;  %v8806_v20 = vld [vmem:[#allocation10 + $0x270] ss:$8 sps:$4 sm:$0xff]   ;;  %v8812_v32 = vld [vmem:[#allocation10 + $0x260] ss:$8 sps:$4 sm:$0xff]   ;;  %vm3781_vm11 = vcmask 64512   ;;  %vm4210_vm13 = vcmask 1041408  }
 0x2e6   :  { %1449 = vmatpush1.bf16.msra.mxu1 %v1380_v30  ;;  %vm4206_vm14 = vcmask 31744  }
 0x2e7   :  { %1450 = vmatprep.subr.bf16.mxu1 %v1377_v34 }
 0x2e8   :  { %2876 = vmatpush2.bf16.msra.mxu0 %v8794_v29  ;;  %v8814_v29 = vld [vmem:[#allocation10 + $0x264] ss:$8 sps:$4 sm:$0xff]  }
 0x2e9   :  { %2877 = vmatprep.subr.bf16.mxu0 %v8799_v39  ;;  %v8826_v39 = vld [vmem:[#allocation10 + $0x244] ss:$8 sps:$4 sm:$0xff]  }
 0x2ea   :  { %1451 = vmatpush1.bf16.msra.mxu1 %v1376_v36 }
 0x2eb   :  { %1545 = vmatprep.subr.bf16.mxu1 %v1381_v28 }
 0x2ec   :  { %2878 = vmatpush2.bf16.msra.mxu0 %v8797_v38  ;;  %v8818_v38 = vld [vmem:[#allocation10 + $0x250] ss:$8 sps:$4 sm:$0xff]  }
 0x2ed   :  { %7661 = vmatmul.mubr.msk.bf16.vlgmr.msra.gmra.mxu1 %vm1389_vm9, %v10338_v2  ;;  %2879 = vmatprep.subr.bf16.mxu0 %v8802_v41  ;;  %v8805_v2 = vld [vmem:[#allocation10 + $0x174] ss:$8 sps:$4 sm:$0xff]  }
 0x2ee   :  { %1546 = vmatpush1.bf16.msra.mxu1 %v1380_v30  ;;  %1565 = vmatprep.mubr.bf16.mxu1 %v10078_v4  ;;  %v8832_v41 = vld [vmem:[#allocation10 + $0x234] ss:$8 sps:$4 sm:$0xff]  }
 0x2ef   :  { %1547 = vmatprep.subr.bf16.mxu1 %v1377_v34 }
 0x2f0   :  { %2880 = vmatpush2.bf16.msra.mxu0 %v8800_v40  ;;  %v8824_v40 = vld [vmem:[#allocation10 + $0x240] ss:$8 sps:$4 sm:$0xff]  }
 0x2f1   :  { %2935 = vmatprep.subr.bf16.mxu0 %v8808_v42  ;;  %v8830_v42 = vld [vmem:[#allocation10 + $0x230] ss:$8 sps:$4 sm:$0xff]  }
 0x2f2   :  { %1548 = vmatpush1.bf16.msra.mxu1 %v1376_v36 }
 0x2f3   :  { %1642 = vmatprep.subr.bf16.mxu1 %v1381_v28 }
 0x2f5   :  { %7664 = vmatmul.mubr.msk.bf16.vlgmr.msra.gmra.mxu1 %vm1389_vm9, %v10336_v1  ;;  %v8823_v1 = vld [vmem:[#allocation10 + $0x144] ss:$8 sps:$4 sm:$0xff]  }
 0x2f6   :  { %1643 = vmatpush1.bf16.msra.mxu1 %v1380_v30  ;;  %1662 = vmatprep.mubr.bf16.mxu1 %v10078_v4 }
 0x2f7   :  { %1644 = vmatprep.subr.bf16.mxu1 %v1377_v34  ;;  %v8820_v34 = vld [vmem:[#allocation10 + $0x254] ss:$8 sps:$4 sm:$0xff]  }
 0x2fa   :  { %1645 = vmatpush1.bf16.msra.mxu1 %v1376_v36 }
 0x2fb   :  { %2892 = vmatprep.subr.bf16.mxu1 %v8805_v2  ;;  %v8838_v2 = vld [vmem:[#allocation10 + $0x224] ss:$8 sps:$4 sm:$0xff]  }
 0x2fd   :  { %7667 = vmatmul.mubr.msk.bf16.vlgmr.msra.gmra.mxu1 %vm1389_vm9, %v10346_v5  ;;  %v8841_v5 = vld [vmem:[#allocation10 + $0x114] ss:$8 sps:$4 sm:$0xff]  }
 0x2fe   :  { %2893 = vmatpush1.bf16.msra.mxu1 %v8803_v43  ;;  %v8836_v43 = vld [vmem:[#allocation10 + $0x220] ss:$8 sps:$4 sm:$0xff]  }
 0x2ff   :  { %2894 = vmatprep.subr.bf16.mxu1 %v8811_v44  ;;  %v8844_v44 = vld [vmem:[#allocation10 + $0x214] ss:$8 sps:$4 sm:$0xff]  }
 0x302   :  { %2895 = vmatpush1.bf16.msra.mxu1 %v8809_v45  ;;  %v8842_v45 = vld [vmem:[#allocation10 + $0x210] ss:$8 sps:$4 sm:$0xff]  }
 0x303   :  { %2896 = vmatprep.subr.bf16.mxu1 %v8817_v46  ;;  %v8850_v46 = vld [vmem:[#allocation10 + $0x204] ss:$8 sps:$4 sm:$0xff]  }
 0x306   :  { %2897 = vmatpush1.bf16.msra.mxu1 %v8815_v47  ;;  %v8848_v47 = vld [vmem:[#allocation10 + $0x200] ss:$8 sps:$4 sm:$0xff]  }
 0x307   :  { %2898 = vmatprep.subr.bf16.mxu1 %v8823_v1  ;;  %v8856_v1 = vld [vmem:[#allocation10 + $0x2f4] ss:$8 sps:$4 sm:$0xff]  }
 0x30a   :  { %2899 = vmatpush1.bf16.msra.mxu1 %v8821_v48  ;;  %v8854_v48 = vld [vmem:[#allocation10 + $0x2f0] ss:$8 sps:$4 sm:$0xff]  }
 0x30b   :  { %2900 = vmatprep.subr.bf16.mxu1 %v8829_v49  ;;  %v8862_v49 = vld [vmem:[#allocation10 + $0x2e4] ss:$8 sps:$4 sm:$0xff]  }
 0x30e   :  { %2901 = vmatpush1.bf16.msra.mxu1 %v8827_v50  ;;  %v8860_v50 = vld [vmem:[#allocation10 + $0x2e0] ss:$8 sps:$4 sm:$0xff]  }
 0x30f   :  { %2902 = vmatprep.subr.bf16.mxu1 %v8835_v51  ;;  %v8868_v51 = vld [vmem:[#allocation10 + $0x2d4] ss:$8 sps:$4 sm:$0xff]  }
 0x312   :  { %2903 = vmatpush1.bf16.msra.mxu1 %v8833_v52  ;;  %v8866_v52 = vld [vmem:[#allocation10 + $0x2d0] ss:$8 sps:$4 sm:$0xff]  }
 0x313   :  { %2904 = vmatprep.subr.bf16.mxu1 %v8841_v5  ;;  %v8874_v5 = vld [vmem:[#allocation10 + $0x2c4] ss:$8 sps:$4 sm:$0xff]  }
 0x316   :  { %2905 = vmatpush1.bf16.msra.mxu1 %v8839_v53  ;;  %v8872_v53 = vld [vmem:[#allocation10 + $0x2c0] ss:$8 sps:$4 sm:$0xff]  }
 0x317   :  { %2906 = vmatprep.subr.bf16.mxu1 %v8847_v54  ;;  %v8880_v54 = vld [vmem:[#allocation10 + $0x2b4] ss:$8 sps:$4 sm:$0xff]  }
 0x31a   :  { %2907 = vmatpush1.bf16.msra.mxu1 %v8845_v55  ;;  %v8878_v55 = vld [vmem:[#allocation10 + $0x2b0] ss:$8 sps:$4 sm:$0xff]  }
 0x31b   :  { %2908 = vmatprep.subr.bf16.mxu1 %v8853_v56  ;;  %v8886_v56 = vld [vmem:[#allocation10 + $0x2a4] ss:$8 sps:$4 sm:$0xff]  }
 0x31e   :  { %2909 = vmatpush2.bf16.msra.mxu1 %v8851_v57  ;;  %v8884_v57 = vld [vmem:[#allocation10 + $0x2a0] ss:$8 sps:$4 sm:$0xff]  }
 0x31f   :  { %2910 = vmatprep.subr.bf16.mxu1 %v8859_v58  ;;  %v8892_v58 = vld [vmem:[#allocation10 + $0x294] ss:$8 sps:$4 sm:$0xff]  }
 0x322   :  { %2911 = vmatpush2.bf16.msra.mxu1 %v8857_v59  ;;  %v8890_v59 = vld [vmem:[#allocation10 + $0x290] ss:$8 sps:$4 sm:$0xff]  }
 0x323   :  { %2912 = vmatprep.subr.bf16.mxu1 %v8865_v60  ;;  %v8898_v60 = vld [vmem:[#allocation10 + $0x284] ss:$8 sps:$4 sm:$0xff]  }
 0x326   :  { %2913 = vmatpush2.bf16.msra.mxu1 %v8863_v61 }
 0x327   :  { %2914 = vmatprep.subr.bf16.mxu1 %v8871_v19  ;;  %v8896_v19 = vld [vmem:[#allocation10 + $0x280] ss:$8 sps:$4 sm:$0xff]  }
 0x32a   :  { %2915 = vmatpush2.bf16.msra.mxu1 %v8869_v62  ;;  %v8904_v62 = vld [vmem:[#allocation10 + $0x474] ss:$8 sps:$4 sm:$0xff]  }
 0x32b   :  { %2916 = vmatprep.subr.bf16.mxu1 %v8877_v63 }
 0x32e   :  { %2917 = vmatpush2.bf16.msra.mxu1 %v8875_v0 }
 0x32f   :  { %2918 = vmatprep.subr.bf16.mxu1 %v8883_v3 }
 0x332   :  { %2919 = vmatpush2.bf16.msra.mxu1 %v8881_v6  ;;  %v8902_v6 = vld [vmem:[#allocation10 + $0x470] ss:$8 sps:$4 sm:$0xff]  }
 0x333   :  { %2920 = vmatprep.subr.bf16.mxu1 %v8889_v7 }
 0x336   :  { %2921 = vmatpush2.bf16.msra.mxu1 %v8887_v8  ;;  %v8910_v8 = vld [vmem:[#allocation10 + $0x464] ss:$8 sps:$4 sm:$0xff]  }
 0x337   :  { %2922 = vmatprep.subr.bf16.mxu1 %v8895_v9 }
 0x33a   :  { %2923 = vmatpush2.bf16.msra.mxu1 %v8893_v10 }
 0x33b   :  { %2978 = vmatprep.subr.bf16.mxu1 %v8901_v11  ;;  %v8899_v11 = vld [vmem:[#allocation10 + $0x370] ss:$8 sps:$4 sm:$0xff]  }
 0x36b   :  { %v1427_v13 = vpop.f32.mrf.mxu1  ;;  %v10372_v17 = vpop.f32.mrf.mxu0 }
 0x36d   :  { %v1429_v16 = vpop.f32.mrf.mxu1  ;;  %v1526_v18 = vpop.f32.mrf.mxu0 }
 0x36f   :  { %v1431_v21 = vpop.f32.mrf.mxu1  ;;  %v10374_v22 = vpop.f32.mrf.mxu0 }
 0x370   :  { %v1677_v23 = vpack.c.bf16 %v10374_v22, %v10372_v17  ;;  %v1673_v24 = vpack.c.bf16 %v1431_v21, %v1427_v13  ;;  %v8922_v22 = vld [vmem:[#allocation10 + $0x444] ss:$8 sps:$4 sm:$0xff]  }
 0x371   :  { %v1433_v25 = vpop.f32.mrf.mxu1  ;;  %v1530_v26 = vpop.f32.mrf.mxu0 }
 0x372   :  { %v1674_v27 = vpack.c.bf16 %v1433_v25, %v1429_v16  ;;  %v1678_v28 = vpack.c.bf16 %v1530_v26, %v1526_v18  ;;  %v8907_v16 = vld [vmem:[#allocation10 + $0x364] ss:$8 sps:$4 sm:$0xff]   ;;  %v8908_v18 = vld [vmem:[#allocation10 + $0x460] ss:$8 sps:$4 sm:$0xff]  }
 0x373   :  { %v10378_v30 = vpop.f32.mrf.mxu0  ;;  %v8905_v26 = vld [vmem:[#allocation10 + $0x360] ss:$8 sps:$4 sm:$0xff]  }
 0x374   :  { %2881 = vmatprep.mubr.bf16.mxu0 %v1674_v27  ;;  %v8913_v27 = vld [vmem:[#allocation10 + $0x354] ss:$8 sps:$4 sm:$0xff]  }
 0x375   :  { %2882 = vmatmul.mubr.bf16.vlgmr.msra.gmra.mxu0 %v1673_v24  ;;  %v10380_v31 = vpop.f32.mrf.mxu0  ;;  %v8916_v24 = vld [vmem:[#allocation10 + $0x454] ss:$8 sps:$4 sm:$0xff]  }
 0x376   :  { %2936 = vmatpush1.bf16.msra.mxu0 %v8806_v20  ;;  %2967 = vmatprep.mubr.bf16.mxu0 %v1678_v28  ;;  %v8914_v20 = vld [vmem:[#allocation10 + $0x450] ss:$8 sps:$4 sm:$0xff]  }
 0x377   :  { %2937 = vmatprep.subr.bf16.mxu0 %v8814_v29  ;;  %v10382_v35 = vpop.f32.mrf.mxu0  ;;  %v8911_v28 = vld [vmem:[#allocation10 + $0x350] ss:$8 sps:$4 sm:$0xff]  }
 0x378   :  { %v1681_v36 = vpack.c.bf16 %v10382_v35, %v10378_v30  ;;  %v9006_v30 = vld [vmem:[#allocation10 + $0x544] ss:$8 sps:$4 sm:$0xff]   ;;  %v9004_v35 = vld [vmem:[#allocation10 + $0x540] ss:$8 sps:$4 sm:$0xff]  }
 0x379   :  { %v1627_v63 = vpop.f32.mrf.mxu0 }
 0x37a   :  { %2938 = vmatpush1.bf16.msra.mxu0 %v8812_v32  ;;  %v1682_v7 = vpack.c.bf16 %v1627_v63, %v10380_v31  ;;  %v8919_v31 = vld [vmem:[#allocation10 + $0x344] ss:$8 sps:$4 sm:$0xff]   ;;  %v8920_v32 = vld [vmem:[#allocation10 + $0x440] ss:$8 sps:$4 sm:$0xff]   ;;  %v8961_v63 = vld [vmem:[#allocation10 + $0x3d4] ss:$8 sps:$4 sm:$0xff]  }
 0x37b   :  { %2939 = vmatprep.subr.bf16.mxu0 %v8820_v34 }
 0x37e   :  { %2940 = vmatpush1.bf16.msra.mxu0 %v8818_v38  ;;  %v8928_v38 = vld [vmem:[#allocation10 + $0x434] ss:$8 sps:$4 sm:$0xff]  }
 0x37f   :  { %2941 = vmatprep.subr.bf16.mxu0 %v8826_v39 }
 0x382   :  { %2942 = vmatpush1.bf16.msra.mxu0 %v8824_v40  ;;  %v8917_v40 = vld [vmem:[#allocation10 + $0x340] ss:$8 sps:$4 sm:$0xff]  }
 0x383   :  { %2943 = vmatprep.subr.bf16.mxu0 %v8832_v41  ;;  %v8925_v41 = vld [vmem:[#allocation10 + $0x334] ss:$8 sps:$4 sm:$0xff]  }
 0x386   :  { %2944 = vmatpush1.bf16.msra.mxu0 %v8830_v42  ;;  %v8926_v42 = vld [vmem:[#allocation10 + $0x430] ss:$8 sps:$4 sm:$0xff]  }
 0x387   :  { %2945 = vmatprep.subr.bf16.mxu0 %v8838_v2 }
 0x38a   :  { %2946 = vmatpush1.bf16.msra.mxu0 %v8836_v43  ;;  %v8934_v43 = vld [vmem:[#allocation10 + $0x424] ss:$8 sps:$4 sm:$0xff]  }
 0x38b   :  { %2947 = vmatprep.subr.bf16.mxu0 %v8844_v44 }
 0x38e   :  { %2948 = vmatpush1.bf16.msra.mxu0 %v8842_v45  ;;  %v8923_v45 = vld [vmem:[#allocation10 + $0x330] ss:$8 sps:$4 sm:$0xff]  }
 0x38f   :  { %2949 = vmatprep.subr.bf16.mxu0 %v8850_v46  ;;  %v8931_v46 = vld [vmem:[#allocation10 + $0x324] ss:$8 sps:$4 sm:$0xff]  }
 0x392   :  { %2950 = vmatpush1.bf16.msra.mxu0 %v8848_v47  ;;  %v8932_v47 = vld [vmem:[#allocation10 + $0x420] ss:$8 sps:$4 sm:$0xff]  }
 0x393   :  { %2951 = vmatprep.subr.bf16.mxu0 %v8856_v1  ;;  %v8940_v1 = vld [vmem:[#allocation10 + $0x414] ss:$8 sps:$4 sm:$0xff]  }
 0x396   :  { %2952 = vmatpush2.bf16.msra.mxu0 %v8854_v48  ;;  %v8929_v48 = vld [vmem:[#allocation10 + $0x320] ss:$8 sps:$4 sm:$0xff]  }
 0x397   :  { %2953 = vmatprep.subr.bf16.mxu0 %v8862_v49  ;;  %v8937_v49 = vld [vmem:[#allocation10 + $0x314] ss:$8 sps:$4 sm:$0xff]  }
 0x39a   :  { %2954 = vmatpush2.bf16.msra.mxu0 %v8860_v50  ;;  %v8938_v50 = vld [vmem:[#allocation10 + $0x410] ss:$8 sps:$4 sm:$0xff]  }
 0x39b   :  { %2955 = vmatprep.subr.bf16.mxu0 %v8868_v51  ;;  %v8946_v51 = vld [vmem:[#allocation10 + $0x404] ss:$8 sps:$4 sm:$0xff]  }
 0x39e   :  { %2956 = vmatpush2.bf16.msra.mxu0 %v8866_v52  ;;  %v8935_v52 = vld [vmem:[#allocation10 + $0x310] ss:$8 sps:$4 sm:$0xff]  }
 0x39f   :  { %2957 = vmatprep.subr.bf16.mxu0 %v8874_v5  ;;  %v8943_v5 = vld [vmem:[#allocation10 + $0x304] ss:$8 sps:$4 sm:$0xff]  }
 0x3a2   :  { %2958 = vmatpush2.bf16.msra.mxu0 %v8872_v53  ;;  %v8944_v53 = vld [vmem:[#allocation10 + $0x400] ss:$8 sps:$4 sm:$0xff]  }
 0x3a3   :  { %2959 = vmatprep.subr.bf16.mxu0 %v8880_v54  ;;  %v8952_v54 = vld [vmem:[#allocation10 + $0x4f4] ss:$8 sps:$4 sm:$0xff]  }
 0x3a6   :  { %2960 = vmatpush2.bf16.msra.mxu0 %v8878_v55  ;;  %v8941_v55 = vld [vmem:[#allocation10 + $0x300] ss:$8 sps:$4 sm:$0xff]  }
 0x3a7   :  { %2961 = vmatprep.subr.bf16.mxu0 %v8886_v56  ;;  %v8949_v56 = vld [vmem:[#allocation10 + $0x3f4] ss:$8 sps:$4 sm:$0xff]  }
 0x3aa   :  { %2962 = vmatpush2.bf16.msra.mxu0 %v8884_v57  ;;  %v8950_v57 = vld [vmem:[#allocation10 + $0x4f0] ss:$8 sps:$4 sm:$0xff]  }
 0x3ab   :  { %2963 = vmatprep.subr.bf16.mxu0 %v8892_v58  ;;  %v8958_v58 = vld [vmem:[#allocation10 + $0x4e4] ss:$8 sps:$4 sm:$0xff]  }
 0x3ad   :  { %v1470_v61 = vpop.f32.mrf.mxu1 }
 0x3ae   :  { %2964 = vmatpush2.bf16.msra.mxu0 %v8890_v59  ;;  %v8947_v59 = vld [vmem:[#allocation10 + $0x3f0] ss:$8 sps:$4 sm:$0xff]  }
 0x3af   :  { %2965 = vmatprep.subr.bf16.mxu0 %v8898_v60  ;;  %v1472_v0 = vpop.f32.mrf.mxu1  ;;  %v8955_v60 = vld [vmem:[#allocation10 + $0x3e4] ss:$8 sps:$4 sm:$0xff]  }
 0x3b1   :  { %v1474_v3 = vpop.f32.mrf.mxu1 }
 0x3b2   :  { %2966 = vmatpush2.bf16.msra.mxu0 %v8896_v19  ;;  %v1675_v13 = vpack.c.bf16 %v1474_v3, %v1470_v61  ;;  %v8956_v61 = vld [vmem:[#allocation10 + $0x4e0] ss:$8 sps:$4 sm:$0xff]   ;;  %v8964_v19 = vld [vmem:[#allocation10 + $0x4d4] ss:$8 sps:$4 sm:$0xff]   ;;  %v8970_v3 = vld [vmem:[#allocation10 + $0x4c4] ss:$8 sps:$4 sm:$0xff]  }
 0x3b3   :  { %3021 = vmatprep.subr.bf16.mxu0 %v8904_v62  ;;  %v1476_v9 = vpop.f32.mrf.mxu1  ;;  %v8953_v62 = vld [vmem:[#allocation10 + $0x3e0] ss:$8 sps:$4 sm:$0xff]  }
 0x3b4   :  { %v1676_v10 = vpack.c.bf16 %v1476_v9, %v1472_v0  ;;  %v8962_v0 = vld [vmem:[#allocation10 + $0x4d0] ss:$8 sps:$4 sm:$0xff]   ;;  %v8976_v9 = vld [vmem:[#allocation10 + $0x4b4] ss:$8 sps:$4 sm:$0xff]  }
 0x3b5   :  { %2968 = vmatmul.mubr.bf16.vlgmr.msra.gmra.mxu0 %v1677_v23  ;;  %v10390_v21 = vpop.f32.mrf.mxu1 }
 0x3b6   :  { %3022 = vmatpush1.bf16.msra.mxu0 %v8902_v6  ;;  %3053 = vmatprep.mubr.bf16.mxu0 %v1682_v7  ;;  %v8959_v6 = vld [vmem:[#allocation10 + $0x3d0] ss:$8 sps:$4 sm:$0xff]   ;;  %v8967_v7 = vld [vmem:[#allocation10 + $0x3c4] ss:$8 sps:$4 sm:$0xff]  }
 0x3b7   :  { %2924 = vmatprep.mubr.bf16.mxu1 %v1676_v10  ;;  %3023 = vmatprep.subr.bf16.mxu0 %v8910_v8  ;;  %v1569_v25 = vpop.f32.mrf.mxu1  ;;  %v8968_v8 = vld [vmem:[#allocation10 + $0x4c0] ss:$8 sps:$4 sm:$0xff]  }
 0x3b8   :  { %2925 = vmatmul.mubr.bf16.vlgmr.msra.gmra.mxu1 %v1675_v13  ;;  %v8965_v10 = vld [vmem:[#allocation10 + $0x3c0] ss:$8 sps:$4 sm:$0xff]   ;;  %v8974_v13 = vld [vmem:[#allocation10 + $0x4b0] ss:$8 sps:$4 sm:$0xff]  }
 0x3b9   :  { %2979 = vmatpush1.bf16.msra.mxu1 %v8899_v11  ;;  %v10392_v17 = vpop.f32.mrf.mxu1  ;;  %v8973_v11 = vld [vmem:[#allocation10 + $0x3b4] ss:$8 sps:$4 sm:$0xff]  }
 0x3ba   :  { %2980 = vmatprep.subr.bf16.mxu1 %v8907_v16  ;;  %3024 = vmatpush1.bf16.msra.mxu0 %v8908_v18  ;;  %v8982_v16 = vld [vmem:[#allocation10 + $0x4a4] ss:$8 sps:$4 sm:$0xff]   ;;  %v8971_v18 = vld [vmem:[#allocation10 + $0x3b0] ss:$8 sps:$4 sm:$0xff]  }
 0x3bb   :  { %3025 = vmatprep.subr.bf16.mxu0 %v8916_v24  ;;  %v1573_v23 = vpop.f32.mrf.mxu1  ;;  %v8979_v24 = vld [vmem:[#allocation10 + $0x3a4] ss:$8 sps:$4 sm:$0xff]  }
 0x3bc   :  { %v1680_v29 = vpack.c.bf16 %v1573_v23, %v1569_v25  ;;  %v8980_v25 = vld [vmem:[#allocation10 + $0x4a0] ss:$8 sps:$4 sm:$0xff]   ;;  %v8994_v23 = vld [vmem:[#allocation10 + $0x484] ss:$8 sps:$4 sm:$0xff]  }
 0x3bd   :  { %2981 = vmatpush1.bf16.msra.mxu1 %v8905_v26  ;;  %v10394_v34 = vpop.f32.mrf.mxu1  ;;  %v8988_v26 = vld [vmem:[#allocation10 + $0x494] ss:$8 sps:$4 sm:$0xff]  }
 0x3be   :  { %2982 = vmatprep.subr.bf16.mxu1 %v8913_v27  ;;  %3026 = vmatpush1.bf16.msra.mxu0 %v8914_v20  ;;  %v8977_v27 = vld [vmem:[#allocation10 + $0x3a0] ss:$8 sps:$4 sm:$0xff]   ;;  %v8985_v20 = vld [vmem:[#allocation10 + $0x394] ss:$8 sps:$4 sm:$0xff]  }
 0x3bf   :  { %3027 = vmatprep.subr.bf16.mxu0 %v8922_v22  ;;  %3010 = vmatprep.mubr.bf16.mxu1 %v1680_v29  ;;  %v10396_v39 = vpop.f32.mrf.mxu1  ;;  %v8986_v22 = vld [vmem:[#allocation10 + $0x490] ss:$8 sps:$4 sm:$0xff]   ;;  %v8991_v29 = vld [vmem:[#allocation10 + $0x384] ss:$8 sps:$4 sm:$0xff]  }
 0x3c1   :  { %2983 = vmatpush1.bf16.msra.mxu1 %v8911_v28  ;;  %v10398_v2 = vpop.f32.mrf.mxu1  ;;  %v8983_v28 = vld [vmem:[#allocation10 + $0x390] ss:$8 sps:$4 sm:$0xff]  }
 0x3c2   :  { %2984 = vmatprep.subr.bf16.mxu1 %v8919_v31  ;;  %3028 = vmatpush1.bf16.msra.mxu0 %v8920_v32  ;;  %v1683_v44 = vpack.c.bf16 %v10398_v2, %v10394_v34  ;;  %v8992_v31 = vld [vmem:[#allocation10 + $0x480] ss:$8 sps:$4 sm:$0xff]  }
 0x3c3   :  { %3029 = vmatprep.subr.bf16.mxu0 %v8928_v38  ;;  %v8989_v32 = vld [vmem:[#allocation10 + $0x380] ss:$8 sps:$4 sm:$0xff]   ;;  %v8997_v38 = vld [vmem:[#allocation10 + $0x574] ss:$8 sps:$4 sm:$0xff]  }
 0x3c5   :  { %2985 = vmatpush1.bf16.msra.mxu1 %v8917_v40  ;;  %v1670_v40 = vpop.f32.mrf.mxu1 }
 0x3c6   :  { %2986 = vmatprep.subr.bf16.mxu1 %v8925_v41  ;;  %3030 = vmatpush1.bf16.msra.mxu0 %v8926_v42  ;;  %v8995_v41 = vld [vmem:[#allocation10 + $0x570] ss:$8 sps:$4 sm:$0xff]   ;;  %v1684_v42 = vpack.c.bf16 %v1670_v40, %v10396_v39  ;;  %v9010_v39 = vld [vmem:[#allocation10 + $0x520] ss:$8 sps:$4 sm:$0xff]  }
 0x3c7   :  { %3031 = vmatprep.subr.bf16.mxu0 %v8934_v43  ;;  %v1679_v43 = vpack.c.bf16 %v10392_v17, %v10390_v21  ;;  %v9007_v21 = vld [vmem:[#allocation10 + $0x530] ss:$8 sps:$4 sm:$0xff]   ;;  %v9012_v17 = vld [vmem:[#allocation10 + $0x524] ss:$8 sps:$4 sm:$0xff]  }
 0x3c9   :  { %2987 = vmatpush1.bf16.msra.mxu1 %v8923_v45  ;;  %v9000_v45 = vld [vmem:[#allocation10 + $0x564] ss:$8 sps:$4 sm:$0xff]  }
 0x3ca   :  { %2988 = vmatprep.subr.bf16.mxu1 %v8931_v46  ;;  %3032 = vmatpush1.bf16.msra.mxu0 %v8932_v47  ;;  %v8998_v46 = vld [vmem:[#allocation10 + $0x560] ss:$8 sps:$4 sm:$0xff]   ;;  %v9003_v47 = vld [vmem:[#allocation10 + $0x554] ss:$8 sps:$4 sm:$0xff]  }
 0x3cb   :  { %3033 = vmatprep.subr.bf16.mxu0 %v8940_v1  ;;  %v9001_v1 = vld [vmem:[#allocation10 + $0x550] ss:$8 sps:$4 sm:$0xff]  }
 0x3cd   :  { %2989 = vmatpush1.bf16.msra.mxu1 %v8929_v48  ;;  %v9015_v48 = vld [vmem:[#allocation10 + $0x514] ss:$8 sps:$4 sm:$0xff]  }
 0x3ce   :  { %2990 = vmatprep.subr.bf16.mxu1 %v8937_v49  ;;  %3034 = vmatpush1.bf16.msra.mxu0 %v8938_v50  ;;  %v9013_v49 = vld [vmem:[#allocation10 + $0x510] ss:$8 sps:$4 sm:$0xff]   ;;  %v9018_v50 = vld [vmem:[#allocation10 + $0x504] ss:$8 sps:$4 sm:$0xff]  }
 0x3cf   :  { %3035 = vmatprep.subr.bf16.mxu0 %v8946_v51  ;;  %v9016_v51 = vld [vmem:[#allocation10 + $0x500] ss:$8 sps:$4 sm:$0xff]  }
 0x3d1   :  { %2991 = vmatpush1.bf16.msra.mxu1 %v8935_v52  ;;  %v9021_v52 = vld [vmem:[#allocation10 + $0x5f4] ss:$8 sps:$4 sm:$0xff]  }
 0x3d2   :  { %2992 = vmatprep.subr.bf16.mxu1 %v8943_v5  ;;  %3036 = vmatpush1.bf16.msra.mxu0 %v8944_v53  ;;  %v9019_v5 = vld [vmem:[#allocation10 + $0x5f0] ss:$8 sps:$4 sm:$0xff]   ;;  %v9024_v53 = vld [vmem:[#allocation10 + $0x5e4] ss:$8 sps:$4 sm:$0xff]  }
 0x3d3   :  { %3037 = vmatprep.subr.bf16.mxu0 %v8952_v54  ;;  %v9022_v54 = vld [vmem:[#allocation10 + $0x5e0] ss:$8 sps:$4 sm:$0xff]  }
 0x3d5   :  { %2993 = vmatpush1.bf16.msra.mxu1 %v8941_v55  ;;  %v9027_v55 = vld [vmem:[#allocation10 + $0x5d4] ss:$8 sps:$4 sm:$0xff]  }
 0x3d6   :  { %2994 = vmatprep.subr.bf16.mxu1 %v8949_v56  ;;  %3038 = vmatpush2.bf16.msra.mxu0 %v8950_v57  ;;  %v9025_v56 = vld [vmem:[#allocation10 + $0x5d0] ss:$8 sps:$4 sm:$0xff]   ;;  %v9030_v57 = vld [vmem:[#allocation10 + $0x5c4] ss:$8 sps:$4 sm:$0xff]  }
 0x3d7   :  { %3039 = vmatprep.subr.bf16.mxu0 %v8958_v58  ;;  %v9028_v58 = vld [vmem:[#allocation10 + $0x5c0] ss:$8 sps:$4 sm:$0xff]  }
 0x3d9   :  { %2995 = vmatpush2.bf16.msra.mxu1 %v8947_v59  ;;  %v9033_v59 = vld [vmem:[#allocation10 + $0x5b4] ss:$8 sps:$4 sm:$0xff]  }
 0x3da   :  { %2996 = vmatprep.subr.bf16.mxu1 %v8955_v60  ;;  %3040 = vmatpush2.bf16.msra.mxu0 %v8956_v61  ;;  %v9031_v60 = vld [vmem:[#allocation10 + $0x5b0] ss:$8 sps:$4 sm:$0xff]   ;;  %v9036_v61 = vld [vmem:[#allocation10 + $0x5a4] ss:$8 sps:$4 sm:$0xff]  }
 0x3db   :  { %3041 = vmatprep.subr.bf16.mxu0 %v8964_v19  ;;  %v9034_v19 = vld [vmem:[#allocation10 + $0x5a0] ss:$8 sps:$4 sm:$0xff]  }
 0x3dd   :  { %2997 = vmatpush2.bf16.msra.mxu1 %v8953_v62  ;;  %v9039_v62 = vld [vmem:[#allocation10 + $0x594] ss:$8 sps:$4 sm:$0xff]  }
 0x3de   :  { %2998 = vmatprep.subr.bf16.mxu1 %v8961_v63  ;;  %3042 = vmatpush2.bf16.msra.mxu0 %v8962_v0  ;;  %v9037_v63 = vld [vmem:[#allocation10 + $0x590] ss:$8 sps:$4 sm:$0xff]   ;;  %v9042_v0 = vld [vmem:[#allocation10 + $0x584] ss:$8 sps:$4 sm:$0xff]  }
 0x3df   :  { %3043 = vmatprep.subr.bf16.mxu0 %v8970_v3  ;;  %v9040_v3 = vld [vmem:[#allocation10 + $0x580] ss:$8 sps:$4 sm:$0xff]  }
 0x3e1   :  { %2999 = vmatpush2.bf16.msra.mxu1 %v8959_v6 }
 0x3e2   :  { %3000 = vmatprep.subr.bf16.mxu1 %v8967_v7  ;;  %3044 = vmatpush2.bf16.msra.mxu0 %v8968_v8 }
 0x3e3   :  { %3045 = vmatprep.subr.bf16.mxu0 %v8976_v9 }
 0x3e5   :  { %3001 = vmatpush2.bf16.msra.mxu1 %v8965_v10 }
 0x3e6   :  { %3002 = vmatprep.subr.bf16.mxu1 %v8973_v11  ;;  %3046 = vmatpush2.bf16.msra.mxu0 %v8974_v13 }
 0x3e7   :  { %3047 = vmatprep.subr.bf16.mxu0 %v8982_v16 }
 0x3e9   :  { %3003 = vmatpush2.bf16.msra.mxu1 %v8971_v18 }
 0x3ea   :  { %3004 = vmatprep.subr.bf16.mxu1 %v8979_v24  ;;  %3048 = vmatpush2.bf16.msra.mxu0 %v8980_v25  ;;  %v1877_v24 = vld [vmem:[#allocation15] sm:$0x3] }
 0x3eb   :  { %3049 = vmatprep.subr.bf16.mxu0 %v8988_v26 }
 0x3ed   :  { %3005 = vmatpush2.bf16.msra.mxu1 %v8977_v27  ;;  %v1886_v27 = vrot.slane %v1877_v24, %v10325_v14 }
 0x3ee   :  { %3006 = vmatprep.subr.bf16.mxu1 %v8985_v20  ;;  %3050 = vmatpush2.bf16.msra.mxu0 %v8986_v22  ;;  %v1882_v20 = vrot.slane %v1877_v24, %v10328_v15  ;;  %v9048_v24 = vld [vmem:[#allocation12 + $0x30] sm:$0xff]  }
 0x3ef   :  { %3051 = vmatprep.subr.bf16.mxu0 %v8994_v23 }
 0x3f1   :  { %3007 = vmatpush2.bf16.msra.mxu1 %v8983_v28 }
 0x3f2   :  { %3008 = vmatprep.subr.bf16.mxu1 %v8991_v29  ;;  %3052 = vmatpush2.bf16.msra.mxu0 %v8992_v31 }
 0x3f5   :  { %3009 = vmatpush2.bf16.msra.mxu1 %v8989_v32  ;;  %3054 = vmatmul.mubr.bf16.vlgmr.msra.gmra.mxu0 %v1681_v36  ;;  %v9009_v36 = vld [vmem:[#allocation10 + $0x534] ss:$8 sps:$4 sm:$0xff]  }
 0x3f6   :  { %3064 = vmatprep.subr.bf16.mxu1 %v8997_v38  ;;  %3158 = vmatprep.mubr.bf16.mxu0 %v10078_v4 }
 0x3f8   :  { %3011 = vmatmul.mubr.bf16.vlgmr.msra.gmra.mxu1 %v1679_v43 }
 0x3f9   :  { %3065 = vmatpush1.bf16.msra.mxu1 %v8995_v41  ;;  %3096 = vmatprep.mubr.bf16.mxu1 %v1684_v42 }
 0x3fa   :  { %3066 = vmatprep.subr.bf16.mxu1 %v9000_v45 }
 0x3fd   :  { %3067 = vmatpush1.bf16.msra.mxu1 %v8998_v46 }
 0x3fe   :  { %3068 = vmatprep.subr.bf16.mxu1 %v9003_v47 }
 0x401   :  { %3069 = vmatpush1.bf16.msra.mxu1 %v9001_v1 }
 0x402   :  { %3070 = vmatprep.subr.bf16.mxu1 %v9006_v30 }
 0x405   :  { %3071 = vmatpush1.bf16.msra.mxu1 %v9004_v35 }
 0x406   :  { %3072 = vmatprep.subr.bf16.mxu1 %v9009_v36 }
 0x409   :  { %3073 = vmatpush1.bf16.msra.mxu1 %v9007_v21 }
 0x40a   :  { %3074 = vmatprep.subr.bf16.mxu1 %v9012_v17 }
 0x40d   :  { %3075 = vmatpush1.bf16.msra.mxu1 %v9010_v39 }
 0x40e   :  { %3076 = vmatprep.subr.bf16.mxu1 %v9015_v48 }
 0x411   :  { %3077 = vmatpush1.bf16.msra.mxu1 %v9013_v49 }
 0x412   :  { %3078 = vmatprep.subr.bf16.mxu1 %v9018_v50 }
 0x415   :  { %3079 = vmatpush1.bf16.msra.mxu1 %v9016_v51 }
 0x416   :  { %3080 = vmatprep.subr.bf16.mxu1 %v9021_v52 }
 0x419   :  { %3081 = vmatpush2.bf16.msra.mxu1 %v9019_v5 }
 0x41a   :  { %3082 = vmatprep.subr.bf16.mxu1 %v9024_v53 }
 0x41d   :  { %3083 = vmatpush2.bf16.msra.mxu1 %v9022_v54 }
 0x41e   :  { %3084 = vmatprep.subr.bf16.mxu1 %v9027_v55 }
 0x421   :  { %3085 = vmatpush2.bf16.msra.mxu1 %v9025_v56 }
 0x422   :  { %3086 = vmatprep.subr.bf16.mxu1 %v9030_v57 }
 0x425   :  { %3087 = vmatpush2.bf16.msra.mxu1 %v9028_v58 }
 0x426   :  { %3088 = vmatprep.subr.bf16.mxu1 %v9033_v59 }
 0x429   :  { %3089 = vmatpush2.bf16.msra.mxu1 %v9031_v60 }
 0x42a   :  { %3090 = vmatprep.subr.bf16.mxu1 %v9036_v61 }
 0x42d   :  { %3091 = vmatpush2.bf16.msra.mxu1 %v9034_v19 }
 0x42e   :  { %3092 = vmatprep.subr.bf16.mxu1 %v9039_v62 }
 0x431   :  { %3093 = vmatpush2.bf16.msra.mxu1 %v9037_v63 }
 0x432   :  { %3094 = vmatprep.subr.bf16.mxu1 %v9042_v0 }
 0x435   :  { %3095 = vmatpush2.bf16.msra.mxu1 %v9040_v3  ;;  %v2883_v6 = vpop.f32.mrf.mxu0 }
 0x436   :  { %v2884_v22 = vadd.f32 %v2883_v6, %v1882_v20 }
 0x437   :  { %v2885_v7 = vpop.f32.mrf.mxu0 }
 0x438   :  { %3097 = vmatmul.mubr.bf16.vlgmr.msra.gmra.mxu1 %v1683_v44  ;;  %v2886_v44 = vadd.f32 %v2885_v7, %v1886_v27 }
 0x439   :  { %3204 = vmatprep.mubr.bf16.mxu1 %v10078_v4  ;;  %v2887_v8 = vpop.f32.mrf.mxu0 }
 0x43a   :  { %v2888_v29 = vadd.f32 %v2887_v8, %v1882_v20  ;;  %v9043_v8 = vld [vmem:[#allocation12 + $0x78] sm:$0xff]   ;;  %v9049_v20 = vld [vmem:[#allocation12 + $0xf0] sm:$0xff]  }
 0x43b   :  { %v2889_v10 = vpop.f32.mrf.mxu0 }
 0x43c   :  { %v2890_v38 = vadd.f32 %v2889_v10, %v1886_v27  ;;  %v3121_v10 = vld [vmem:[#allocation6] sm:$0xf]  ;;  %v9047_v27 = vld [vmem:[#allocation12 + $0xb8] sm:$0xff]  }
 0x475   :  { %v2969_v13 = vpop.f32.mrf.mxu0 }
 0x477   :  { %v2971_v18 = vpop.f32.mrf.mxu0 }
 0x478   :  { %v2926_v9 = vpop.f32.mrf.mxu1 }
 0x479   :  { %v2973_v26 = vpop.f32.mrf.mxu0  ;;  %v2927_v32 = vadd.f32 %v2926_v9, %v2884_v22  ;;  %v9053_v22 = vld [vmem:[#allocation12 + $0xe8] sm:$0xff]  }
 0x47a   :  { %v2928_v11 = vpop.f32.mrf.mxu1 }
 0x47b   :  { %v2975_v2 = vpop.f32.mrf.mxu0  ;;  %v2929_v31 = vadd.f32 %v2928_v11, %v2886_v44  ;;  %v2970_v46 = vadd.f32 %v2969_v13, %v2927_v32  ;;  %v3168_v11 = vld [vmem:[#allocation6 + $0x4] sm:$0xf]  ;;  %v9044_v13 = vld [vmem:[#allocation12 + $0x38] sm:$0xff]  }
 0x47c   :  { %v2930_v16 = vpop.f32.mrf.mxu1  ;;  %v9051_v44 = vld [vmem:[#allocation12 + $0xb0] sm:$0xff]   ;;  %v9060_v32 = vld [vmem:[#allocation12 + $0x18] sm:$0xff]  }
 0x47d   :  { %v2931_v40 = vadd.f32 %v2930_v16, %v2888_v29  ;;  %v2972_v43 = vadd.f32 %v2971_v18, %v2929_v31  ;;  %v9045_v16 = vld [vmem:[#allocation12 + $0xf8] sm:$0xff]   ;;  %v9046_v18 = vld [vmem:[#allocation12 + $0x70] sm:$0xff]   ;;  %v9055_v29 = vld [vmem:[#allocation12 + $0xa8] sm:$0xff]  }
 0x47e   :  { %v2932_v25 = vpop.f32.mrf.mxu1  ;;  %v9057_v31 = vld [vmem:[#allocation12 + $0xe0] sm:$0xff]  }
 0x47f   :  { %v2933_v45 = vadd.f32 %v2932_v25, %v2890_v38  ;;  %v2974_v47 = vadd.f32 %v2973_v26, %v2931_v40  ;;  %v9050_v25 = vld [vmem:[#allocation12 + $0x68] sm:$0xff]   ;;  %v3214_v26 = vld [vmem:[#allocation6 + $0x8] sm:$0xf]  ;;  %v9059_v40 = vld [vmem:[#allocation12 + $0xa0] sm:$0xff]  }
 0x480   :  { %v9062_v38 = vld [vmem:[#allocation12 + $0x50] sm:$0xff]  }
 0x481   :  { %v2976_v21 = vadd.f32 %v2975_v2, %v2933_v45  ;;  %v9054_v2 = vld [vmem:[#allocation12 + $0x60] sm:$0xff]   ;;  %v9063_v45 = vld [vmem:[#allocation12 + $0x98] sm:$0xff]  }
 0x4b5   :  { %v3055_v28 = vpop.f32.mrf.mxu0 }
 0x4b7   :  { %v3057_v42 = vpop.f32.mrf.mxu0 }
 0x4b8   :  { %v3012_v34 = vpop.f32.mrf.mxu1 }
 0x4b9   :  { %v3013_v30 = vadd.f32 %v3012_v34, %v2970_v46  ;;  %v3059_v36 = vpop.f32.mrf.mxu0  ;;  %v9052_v34 = vld [vmem:[#allocation12 + $0x28] sm:$0xff]   ;;  %v9065_v46 = vld [vmem:[#allocation12 + $0xd0] sm:$0xff]  }
 0x4ba   :  { %v3014_v23 = vpop.f32.mrf.mxu1 }
 0x4bb   :  { %v3015_v1 = vadd.f32 %v3014_v23, %v2972_v43  ;;  %v3056_v50 = vadd.f32 %v3055_v28, %v3013_v30  ;;  %v3061_v51 = vpop.f32.mrf.mxu0  ;;  %v9056_v23 = vld [vmem:[#allocation12 + $0x20] sm:$0xff]   ;;  %v9058_v28 = vld [vmem:[#allocation12 + $0x58] sm:$0xff]   ;;  %v9066_v43 = vld [vmem:[#allocation12 + $0x48] sm:$0xff]  }
 0x4bc   :  { %v3016_v41 = vpop.f32.mrf.mxu1  ;;  %v9069_v30 = vld [vmem:[#allocation12 + $0xc8] sm:$0xff]  }
 0x4bd   :  { %v3017_v17 = vadd.f32 %v3016_v41, %v2974_v47  ;;  %v3058_v48 = vadd.f32 %v3057_v42, %v3015_v1  ;;  %v9061_v41 = vld [vmem:[#allocation12 + $0xd8] sm:$0xff]   ;;  %v9064_v42 = vld [vmem:[#allocation12 + $0x10] sm:$0xff]   ;;  %v9068_v47 = vld [vmem:[#allocation12 + $0x8] sm:$0xff]  }
 0x4be   :  { %v3018_v35 = vpop.f32.mrf.mxu1  ;;  %v9067_v1 = vld [vmem:[#allocation12 + $0x90] sm:$0xff]  }
 0x4bf   :  { %v3019_v49 = vadd.f32 %v3018_v35, %v2976_v21  ;;  %v3060_v5 = vadd.f32 %v3059_v36, %v3017_v17  ;;  %v9070_v35 = vld [vmem:[#allocation12 + $0x40] sm:$0xff]   ;;  %v9071_v36 = vld [vmem:[#allocation12 + $0x88] sm:$0xff]  }
 0x4c0   :  { %v9072_v21 = vld [vmem:[#allocation12] sm:$0xff]  }
 0x4c1   :  { %v3062_v56 = vadd.f32 %v3061_v51, %v3019_v49  ;;  %v9073_v17 = vld [vmem:[#allocation12 + $0xc0] sm:$0xff]  }
 0x4f8   :  { %v3098_v39 = vpop.f32.mrf.mxu1 }
 0x4f9   :  { %v3099_v54 = vadd.f32 %v3098_v39, %v3056_v50  ;;  %v9074_v39 = vld [vmem:[#allocation12 + $0x80] sm:$0xff]  }
 0x4fa   :  { %v3100_v52 = vpop.f32.mrf.mxu1 }
 0x4fb   :  { %v3101_v53 = vadd.f32 %v3100_v52, %v3058_v48  ;;  %v3111_v19 = vmul.f32 0.01, %v3099_v54  ;;  %vm3107_vm5 = vcmp.gt.f32.partialorder %v3099_v54, 0.0  ;;  %v9075_v48 = vld [vmem:[#allocation12 + $0x178] sm:$0xff]  }
 0x4fc   :  { %v3102_v55 = vpop.f32.mrf.mxu1 }
 0x4fd   :  { %v3103_v57 = vadd.f32 %v3102_v55, %v3060_v5  ;;  %v3112_v59 = vmul.f32 0.01, %v3101_v53  ;;  %vm3108_vm4 = vcmp.gt.f32.partialorder %v3101_v53, 0.0  ;;  %v3115_v6 = vsel %vm3107_vm5, %v3099_v54, %v3111_v19  ;;  %v9076_v55 = vld [vmem:[#allocation12 + $0x138] sm:$0xff]   ;;  %v9078_v19 = vld [vmem:[#allocation12 + $0x130] sm:$0xff]  }
 0x4fe   :  { %v3104_v58 = vpop.f32.mrf.mxu1 }
 0x4ff   :  { %vm3109_vm3 = vcmp.gt.f32.partialorder %v3103_v57, 0.0  ;;  %v3113_v60 = vmul.f32 0.01, %v3103_v57  ;;  %v3105_v61 = vadd.f32 %v3104_v58, %v3062_v56  ;;  %v3116_v0 = vsel %vm3108_vm4, %v3101_v53, %v3112_v59  ;;  %v9077_v58 = vld [vmem:[#allocation12 + $0x170] sm:$0xff]  }
 0x501   :  { %vm3110_vm6 = vcmp.gt.f32.partialorder %v3105_v61, 0.0  ;;  %v3114_v62 = vmul.f32 0.01, %v3105_v61  ;;  %v3117_v63 = vsel %vm3109_vm3, %v3103_v57, %v3113_v60 }
 0x502   :  { %v3119_v9 = vpack.c.bf16 %v3117_v63, %v3115_v6 }
 0x503   :  { %v3118_v3 = vsel %vm3110_vm6, %v3105_v61, %v3114_v62  ;;  %v9079_v62 = vld [vmem:[#allocation12 + $0x168] sm:$0xff]  }
 0x504   :  { %v3120_v7 = vpack.c.bf16 %v3118_v3, %v3116_v0  ;;  %v9080_v3 = vld [vmem:[#allocation12 + $0x128] sm:$0xff]  }
 0x506   :  { %3140 = vmatprep.subr.bf16.mxu0 %v3120_v7  ;;  %3186 = vmatprep.subr.bf16.mxu1 %v3120_v7 }
 0x507   :  { %3141 = vmatpush1.bf16.msra.mxu0 %v3119_v9  ;;  %3187 = vmatpush1.bf16.msra.mxu1 %v3119_v9 }
 0x508   :  { %3232 = vmatprep.subr.bf16.mxu0 %v3120_v7  ;;  %8335 = vmatprep.subr.bf16.mxu1 %v9043_v8  ;;  %v9081_v7 = vld [vmem:[#allocation12 + $0x160] sm:$0xff]  }
 0x50a   :  { %7860 = vmatmul.mubr.msk.bf16.vlgmr.msra.gmra.mxu0 %vm3122_vm7, %v3121_v10  ;;  %7861 = vmatmul.mubr.msk.bf16.vlgmr.msra.gmra.mxu1 %vm3122_vm7, %v3168_v11  ;;  %v9082_v10 = vld [vmem:[#allocation12 + $0x120] sm:$0xff]   ;;  %v9083_v11 = vld [vmem:[#allocation12 + $0x158] sm:$0xff]  }
 0x50b   :  { %3233 = vmatpush1.bf16.msra.mxu0 %v3119_v9  ;;  %3250 = vmatprep.mubr.bf16.mxu0 %v10078_v4 }
 0x50c   :  { %8336 = vmatpush3.bf16.msra.mxu1 %v9044_v13  ;;  %8357 = vmatprep.subr.bf16.mxu0 %v9045_v16  ;;  %v9084_v13 = vld [vmem:[#allocation12 + $0x118] sm:$0xff]   ;;  %v9085_v16 = vld [vmem:[#allocation12 + $0x150] sm:$0xff]  }
 0x50d   :  { %8337 = vmatprep.subr.bf16.mxu1 %v9046_v18  ;;  %v9086_v18 = vld [vmem:[#allocation12 + $0x110] sm:$0xff]  }
 0x510   :  { %8338 = vmatpush3.bf16.msra.mxu1 %v9048_v24  ;;  %v9087_v24 = vld [vmem:[#allocation12 + $0x148] sm:$0xff]  }
 0x511   :  { %8339 = vmatprep.subr.bf16.mxu1 %v9050_v25  ;;  %v9088_v25 = vld [vmem:[#allocation12 + $0x108] sm:$0xff]  }
 0x512   :  { %7862 = vmatmul.mubr.msk.bf16.vlgmr.msra.gmra.mxu0 %vm3122_vm7, %v3214_v26  ;;  %v9089_v26 = vld [vmem:[#allocation12 + $0x140] sm:$0xff]  }
 0x513   :  { %8358 = vmatpush3.bf16.msra.mxu0 %v9047_v27  ;;  %v9090_v27 = vld [vmem:[#allocation12 + $0x100] sm:$0xff]  }
 0x514   :  { %8359 = vmatprep.subr.bf16.mxu0 %v9049_v20  ;;  %8340 = vmatpush3.bf16.msra.mxu1 %v9052_v34  ;;  %v10079_v34 = vmov 0.0  }
 0x515   :  { %8341 = vmatprep.subr.bf16.mxu1 %v9054_v2  ;;  %v9096_v2 = vld [vmem:[%s10716_s10 + $0xb8] sm:$0xff]  }
 0x517   :  { %8360 = vmatpush3.bf16.msra.mxu0 %v9051_v44  ;;  %v9099_v44 = vld [vmem:[%s10716_s10 + $0xb0] sm:$0xff]  }
 0x518   :  { %8361 = vmatprep.subr.bf16.mxu0 %v9053_v22  ;;  %8342 = vmatpush3.bf16.msra.mxu1 %v9056_v23  ;;  %v9102_v22 = vld [vmem:[%s10716_s10 + $0xa8] sm:$0xff]  }
 0x519   :  { %8343 = vmatprep.subr.bf16.mxu1 %v9058_v28 }
 0x51b   :  { %8362 = vmatpush3.bf16.msra.mxu0 %v9055_v29 }
 0x51c   :  { %8363 = vmatprep.subr.bf16.mxu0 %v9057_v31  ;;  %8344 = vmatpush3.bf16.msra.mxu1 %v9060_v32 }
 0x51d   :  { %8345 = vmatprep.subr.bf16.mxu1 %v9062_v38 }
 0x51f   :  { %8364 = vmatpush3.bf16.msra.mxu0 %v9059_v40 }
 0x520   :  { %8365 = vmatprep.subr.bf16.mxu0 %v9061_v41  ;;  %8346 = vmatpush3.bf16.msra.mxu1 %v9064_v42 }
 0x521   :  { %8347 = vmatprep.subr.bf16.mxu1 %v9066_v43  ;;  %v7863_v43 = vld [vmem:[#allocation16] ss:$0 sm:$0xff] }
 0x523   :  { %8366 = vmatpush3.bf16.msra.mxu0 %v9063_v45 }
 0x524   :  { %8367 = vmatprep.subr.bf16.mxu0 %v9065_v46  ;;  %8348 = vmatpush3.bf16.msra.mxu1 %v9068_v47 }
 0x525   :  { %8349 = vmatprep.subr.bf16.mxu1 %v9070_v35 }
 0x527   :  { %8368 = vmatpush3.bf16.msra.mxu0 %v9067_v1 }
 0x528   :  { %8369 = vmatprep.subr.bf16.mxu0 %v9069_v30  ;;  %8350 = vmatpush3.bf16.msra.mxu1 %v9072_v21 }
 0x529   :  { %8379 = vmatprep.subr.bf16.mxu1 %v9075_v48 }
 0x52b   :  { %8370 = vmatpush3.bf16.msra.mxu0 %v9071_v36 }
 0x52c   :  { %8371 = vmatprep.subr.bf16.mxu0 %v9073_v17 }
 0x52f   :  { %8372 = vmatpush3.bf16.msra.mxu0 %v9074_v39 }
 0x530   :  { %8507 = vmatprep.subr.bf16.mxu0 %v10079_v34 }
 0x5ca   :  { %v3160_v49 = vpop.f32.mrf.mxu0  ;;  %v3206_v50 = vpop.f32.mrf.mxu1 }
 0x5cb   :  { %v3261_v52 = vpack.c.bf16 %v3206_v50, %v3206_v50  ;;  %v3259_v56 = vpack.c.bf16 %v3160_v49, %v3160_v49 }
 0x5cc   :  { %v3162_v51 = vpop.f32.mrf.mxu0  ;;  %v3208_v5 = vpop.f32.mrf.mxu1 }
 0x5cd   :  { %v3260_v53 = vpack.c.bf16 %v3162_v51, %v3162_v51  ;;  %v3262_v54 = vpack.c.bf16 %v3208_v5, %v3208_v5  ;;  %v3780_v51 = vld [vmem:[#allocation7] sm:$0x3]  ;;  %v9091_v5 = vld [vmem:[%s10716_s10 + $0x78] sm:$0xff]  }
 0x5ce   :  { %v3164_v57 = vpop.f32.mrf.mxu0  ;;  %v3210_v59 = vpop.f32.mrf.mxu1 }
 0x5cf   :  { %3688 = vmatprep.mubr.bf16.mxu1 %v3260_v53  ;;  %3728 = vmatprep.mubr.bf16.mxu0 %v3262_v54  ;;  %v3875_v53 = vld [vmem:[#allocation7 + $0x4] sm:$0x3]  ;;  %v9095_v57 = vld [vmem:[%s10716_s10 + $0x68] sm:$0xff]   ;;  %v9098_v59 = vld [vmem:[%s10716_s10 + $0x60] sm:$0xff]  }
 0x5d0   :  { %v3165_v60 = vpop.f32.mrf.mxu0  ;;  %3689 = vmatmul.mubr.bf16.vlgmr.msra.gmra.mxu1 %v3259_v56  ;;  %3729 = vmatmul.mubr.bf16.vlgmr.msra.gmra.mxu0 %v3261_v52  ;;  %v3211_v61 = vpop.f32.mrf.mxu1  ;;  %v3830_v52 = vld [vmem:[#allocation7 + $0x2] sm:$0x3]  ;;  %v9092_v54 = vld [vmem:[%s10716_s10 + $0x38] sm:$0xff]  }
 0x5d1   :  { %8380 = vmatpush3.bf16.msra.mxu1 %v9076_v55  ;;  %8509 = vmatprep.mubr.msk.bf16.mxu0 %vm10080_vm8, %v10079_v34  ;;  %v9093_v55 = vld [vmem:[%s10716_s10 + $0x70] sm:$0xff]   ;;  %v9100_v60 = vld [vmem:[%s10716_s10 + $0x20] sm:$0xff]   ;;  %v9101_v61 = vld [vmem:[%s10716_s10 + $0x58] sm:$0xff]  }
 0x5d2   :  { %8381 = vmatprep.subr.bf16.mxu1 %v9077_v58  ;;  %v3252_v63 = vpop.f32.mrf.mxu0  ;;  %v9094_v56 = vld [vmem:[%s10716_s10 + $0x30] sm:$0xff]   ;;  %v9097_v58 = vld [vmem:[%s10716_s10 + $0x28] sm:$0xff]  }
 0x5d3   :  { %v3263_v20 = vpack.c.bf16 %v3252_v63, %v3252_v63  ;;  %v9105_v63 = vld [vmem:[%s10716_s10 + $0xa0] sm:$0xff]  }
 0x5d4   :  { %v3254_v0 = vpop.f32.mrf.mxu0 }
 0x5d5   :  { %8382 = vmatpush3.bf16.msra.mxu1 %v9078_v19  ;;  %v3264_v6 = vpack.c.bf16 %v3254_v0, %v3254_v0  ;;  %v9103_v19 = vld [vmem:[%s10716_s10 + $0x18] sm:$0xff]   ;;  %v9106_v0 = vld [vmem:[%s10716_s10 + $0x10] sm:$0xff]  }
 0x5d6   :  { %8383 = vmatprep.subr.bf16.mxu1 %v9079_v62  ;;  %v3256_v8 = vpop.f32.mrf.mxu0  ;;  %v9104_v62 = vld [vmem:[%s10716_s10 + $0x50] sm:$0xff]  }
 0x5d7   :  { %3768 = vmatprep.mubr.bf16.mxu1 %v3264_v6  ;;  %v9108_v6 = vld [vmem:[%s10716_s10 + $0x98] sm:$0xff]   ;;  %v9110_v8 = vld [vmem:[%s10716_s10 + $0x40] sm:$0xff]  }
 0x5d8   :  { %v3257_v9 = vpop.f32.mrf.mxu0 }
 0x5d9   :  { %8384 = vmatpush3.bf16.msra.mxu1 %v9080_v3  ;;  %v9107_v3 = vld [vmem:[%s10716_s10 + $0x48] sm:$0xff]   ;;  %v9111_v9 = vld [vmem:[%s10716_s10 + $0x90] sm:$0xff]  }
 0x5da   :  { %8385 = vmatprep.subr.bf16.mxu1 %v9081_v7  ;;  %v9109_v7 = vld [vmem:[%s10716_s10 + $0x8] sm:$0xff]  }
 0x5dd   :  { %8386 = vmatpush3.bf16.msra.mxu1 %v9082_v10  ;;  %v9112_v10 = vld [vmem:[%s10716_s10] sm:$0xff]  }
 0x5de   :  { %8387 = vmatprep.subr.bf16.mxu1 %v9083_v11  ;;  %v9113_v11 = vld [vmem:[%s10716_s10 + $0x88] sm:$0xff]  }
 0x5e1   :  { %8388 = vmatpush3.bf16.msra.mxu1 %v9084_v13  ;;  %v9114_v13 = vld [vmem:[%s10716_s10 + $0x80] sm:$0xff]  }
 0x5e2   :  { %8389 = vmatprep.subr.bf16.mxu1 %v9085_v16  ;;  %v9117_v16 = vld [vmem:[#allocation22 + $0x2a4] ss:$48 sps:$4 sm:$0xff]  }
 0x5e5   :  { %8390 = vmatpush3.bf16.msra.mxu1 %v9086_v18  ;;  %v10081_v18 = vmov 1983009808  }
 0x5e6   :  { %8391 = vmatprep.subr.bf16.mxu1 %v9087_v24  ;;  %v4307_v24 = vunpack.c.l.s4 %v10081_v18  ;;  %v9168_v18 = vld [vmem:[#allocation22 + $0x84c] ss:$48 sps:$4 sm:$0xff]  }
 0x5e9   :  { %8392 = vmatpush3.bf16.msra.mxu1 %v9088_v25 }
 0x5ea   :  { %8393 = vmatprep.subr.bf16.mxu1 %v9089_v26  ;;  %v4308_v26 = vunpack.c.0.s8 %v4307_v24  ;;  %v9166_v24 = vld [vmem:[#allocation22 + $0x848] ss:$48 sps:$4 sm:$0xff]  }
 0x5ed   :  { %8394 = vmatpush3.bf16.msra.mxu1 %v9090_v27 }
 0x5ee   :  { %8525 = vmatprep.subr.bf16.mxu1 %v10079_v34 }
 0x5f0   :  { %3769 = vmatmul.mubr.bf16.vlgmr.msra.gmra.mxu1 %v3263_v20 }
 0x5f1   :  { %8541 = vmatprep.mubr.msk.bf16.mxu1 %vm10080_vm8, %v10079_v34  ;;  %8526 = vmatpush3.bf16.msra.mxu1 %v9096_v2  ;;  %v10512_v2 = vsub.s32 %v4308_v26, %v10322_v12  ;;  %v9169_v26 = vld [vmem:[#allocation22 + $0x7e8] ss:$48 sps:$4 sm:$0xff]  }
 0x5f2   :  { %8527 = vmatprep.subr.bf16.mxu1 %v10079_v34 }
 0x5f5   :  { %8528 = vmatpush3.bf16.msra.mxu1 %v9099_v44  ;;  %v10517_v44 = vld [vmem:[%s10749_s9] sm:$0x3f] }
 0x5f6   :  { %8529 = vmatprep.subr.bf16.mxu1 %v10079_v34 }
 0x5f9   :  { %8530 = vmatpush3.bf16.msra.mxu1 %v9102_v22 }
 0x5fa   :  { %8531 = vmatprep.subr.bf16.mxu1 %v10079_v34 }
 0x5fd   :  { %8532 = vmatpush3.bf16.msra.mxu1 %v9105_v63  ;;  %v9153_v63 = vld [vmem:[#allocation22 + $0x424] ss:$48 sps:$4 sm:$0xff]  }
 0x5fe   :  { %8533 = vmatprep.subr.bf16.mxu1 %v10079_v34 }
 0x601   :  { %8534 = vmatpush3.bf16.msra.mxu1 %v9108_v6  ;;  %v9154_v6 = vld [vmem:[#allocation22 + $0x3c0] ss:$48 sps:$4 sm:$0xff]  }
 0x602   :  { %8535 = vmatprep.subr.bf16.mxu1 %v10079_v34 }
 0x605   :  { %8536 = vmatpush3.bf16.msra.mxu1 %v9111_v9  ;;  %v9162_v9 = vld [vmem:[#allocation22 + $0x304] ss:$48 sps:$4 sm:$0xff]  }
 0x606   :  { %8537 = vmatprep.subr.bf16.mxu1 %v10079_v34 }
 0x609   :  { %8538 = vmatpush3.bf16.msra.mxu1 %v9113_v11  ;;  %v9165_v11 = vld [vmem:[#allocation22 + $0x8ac] ss:$48 sps:$4 sm:$0xff]  }
 0x60a   :  { %8539 = vmatprep.subr.bf16.mxu1 %v10079_v34 }
 0x60d   :  { %8540 = vmatpush3.bf16.msra.mxu1 %v9114_v13 }
 0x60e   :  { %6055 = vmatprep.subr.bf16.mxu1 %v9117_v16  ;;  %v9163_v16 = vld [vmem:[#allocation22 + $0x8a8] ss:$48 sps:$4 sm:$0xff]  }
 0x690   :  { %v8351_v23 = vpop.f32.mrf.mxu1  ;;  %v8373_v28 = vpop.f32.mrf.mxu0 }
 0x692   :  { %v8352_v29 = vpop.f32.mrf.mxu1  ;;  %v8374_v31 = vpop.f32.mrf.mxu0 }
 0x693   :  { %v8353_v42 = vadd.f32 %v8352_v29, %v8351_v23  ;;  %v8375_v46 = vadd.f32 %v8374_v31, %v8373_v28  ;;  %v10521_v28 = vrot.slane %v10517_v44, %v10512_v2 }
 0x694   :  { %v8354_v32 = vpop.f32.mrf.mxu1  ;;  %v8376_v38 = vpop.f32.mrf.mxu0 }
 0x695   :  { %v3691_v45 = vadd.f32 %v8353_v42, %v7863_v43  ;;  %v9115_v43 = vld [vmem:[#allocation22 + $0x2a0] ss:$48 sps:$4 sm:$0xff]   ;;  %v10532_v13 = vpack.c.bf16 %v10521_v28, %v10521_v28 }
 0x696   :  { %v8355_v40 = vpop.f32.mrf.mxu1  ;;  %v8377_v41 = vpop.f32.mrf.mxu0 }
 0x697   :  { %v3731_v30 = vadd.f32 %v8375_v46, %v3691_v45  ;;  %v4320_v40 = vcombine.high %v10521_v28, %v10521_v28  ;;  %v9180_v28 = vld [vmem:[#allocation22 + $0x6cc] ss:$48 sps:$4 sm:$0xff]  }
 0x699   :  { %v10527_v45 = vpack.c.bf16 %v4320_v40, %v4320_v40  ;;  %v9186_v40 = vld [vmem:[#allocation22 + $0x60c] ss:$48 sps:$4 sm:$0xff]  }
 0x6b0   :  { %v8395_v47 = vpop.f32.mrf.mxu1 }
 0x6b2   :  { %v8396_v1 = vpop.f32.mrf.mxu1 }
 0x6b3   :  { %v8397_v35 = vadd.f32 %v8396_v1, %v8395_v47  ;;  %v9120_v47 = vld [vmem:[#allocation22 + $0x244] ss:$48 sps:$4 sm:$0xff]  }
 0x6b4   :  { %v8398_v36 = vpop.f32.mrf.mxu1 }
 0x6b5   :  { %v3771_v21 = vadd.f32 %v8397_v35, %v3731_v30  ;;  %v9118_v35 = vld [vmem:[#allocation22 + $0x240] ss:$48 sps:$4 sm:$0xff]   ;;  %v9123_v36 = vld [vmem:[#allocation22 + $0x1e4] ss:$48 sps:$4 sm:$0xff]  }
 0x6b6   :  { %v8399_v17 = vpop.f32.mrf.mxu1 }
 0x6b7   :  { %vm3776_vm9 = vcmp.gt.f32.partialorder %v3771_v21, 0.0  ;;  %v3777_v39 = vmul.f32 0.01, %v3771_v21  ;;  %v9121_v17 = vld [vmem:[#allocation22 + $0x1e0] ss:$48 sps:$4 sm:$0xff]  }
 0x6b9   :  { %v3778_v48 = vsel %vm3776_vm9, %v3771_v21, %v3777_v39  ;;  %v9126_v39 = vld [vmem:[#allocation22 + $0x184] ss:$48 sps:$4 sm:$0xff]  }
 0x6ba   :  { %v3779_v49 = vpack.c.bf16 %v3778_v48, %v3778_v48  ;;  %v9124_v48 = vld [vmem:[#allocation22 + $0x180] ss:$48 sps:$4 sm:$0xff]  }
 0x6bc   :  { %v3787_v50 = vsel %vm3785_vm10, %v3779_v49, 0  ;;  %v9129_v49 = vld [vmem:[#allocation22 + $0x124] ss:$48 sps:$4 sm:$0xff]  }
 0x6bd   :  { %8508 = vmatpush3.bf16.msra.mxu0 %v3787_v50 }
 0x6be   :  { %8513 = vmatprep.subr.bf16.mxu0 %v10079_v34 }
 0x6c0   :  { %8510 = vmatmul.mubr.msk.bf16.vlgmr.msra.gmra.mxu0 %vm3781_vm11, %v3780_v51  ;;  %v9132_v51 = vld [vmem:[#allocation22 + $0xc4] ss:$48 sps:$4 sm:$0xff]  }
 0x6c1   :  { %8514 = vmatpush3.bf16.msra.mxu0 %v3787_v50  ;;  %8515 = vmatprep.mubr.msk.bf16.mxu0 %vm10080_vm8, %v10079_v34 }
 0x6c2   :  { %8519 = vmatprep.subr.bf16.mxu0 %v10079_v34 }
 0x6c8   :  { %8516 = vmatmul.mubr.msk.bf16.vlgmr.msra.gmra.mxu0 %vm3781_vm11, %v3830_v52  ;;  %v9130_v52 = vld [vmem:[#allocation22 + $0xc0] ss:$48 sps:$4 sm:$0xff]  }
 0x6c9   :  { %8520 = vmatpush3.bf16.msra.mxu0 %v3787_v50  ;;  %8521 = vmatprep.mubr.msk.bf16.mxu0 %vm10080_vm8, %v10079_v34  ;;  %v9127_v50 = vld [vmem:[#allocation22 + $0x120] ss:$48 sps:$4 sm:$0xff]  }
 0x6ca   :  { %8407 = vmatprep.subr.bf16.mxu0 %v9091_v5  ;;  %v9135_v5 = vld [vmem:[#allocation22 + $0x64] ss:$48 sps:$4 sm:$0xff]  }
 0x6d0   :  { %8522 = vmatmul.mubr.msk.bf16.vlgmr.msra.gmra.mxu0 %vm3781_vm11, %v3875_v53  ;;  %v9133_v53 = vld [vmem:[#allocation22 + $0x60] ss:$48 sps:$4 sm:$0xff]  }
 0x6d1   :  { %8408 = vmatpush3.bf16.msra.mxu0 %v9092_v54  ;;  %v9138_v54 = vld [vmem:[#allocation22 + $0x4] ss:$48 sps:$4 sm:$0xff]  }
 0x6d2   :  { %8409 = vmatprep.subr.bf16.mxu0 %v9093_v55  ;;  %v9136_v55 = vld [vmem:[#allocation22] ss:$48 sps:$4 sm:$0xff]  }
 0x6d5   :  { %8410 = vmatpush3.bf16.msra.mxu0 %v9094_v56  ;;  %v9141_v56 = vld [vmem:[#allocation22 + $0x5a4] ss:$48 sps:$4 sm:$0xff]  }
 0x6d6   :  { %8411 = vmatprep.subr.bf16.mxu0 %v9095_v57  ;;  %v9139_v57 = vld [vmem:[#allocation22 + $0x5a0] ss:$48 sps:$4 sm:$0xff]  }
 0x6d9   :  { %8412 = vmatpush3.bf16.msra.mxu0 %v9097_v58  ;;  %v9144_v58 = vld [vmem:[#allocation22 + $0x544] ss:$48 sps:$4 sm:$0xff]  }
 0x6da   :  { %8413 = vmatprep.subr.bf16.mxu0 %v9098_v59  ;;  %v9142_v59 = vld [vmem:[#allocation22 + $0x540] ss:$48 sps:$4 sm:$0xff]  }
 0x6dd   :  { %8414 = vmatpush3.bf16.msra.mxu0 %v9100_v60  ;;  %v9147_v60 = vld [vmem:[#allocation22 + $0x4e4] ss:$48 sps:$4 sm:$0xff]  }
 0x6de   :  { %8415 = vmatprep.subr.bf16.mxu0 %v9101_v61  ;;  %v9145_v61 = vld [vmem:[#allocation22 + $0x4e0] ss:$48 sps:$4 sm:$0xff]  }
 0x6e1   :  { %8416 = vmatpush3.bf16.msra.mxu0 %v9103_v19  ;;  %v9150_v19 = vld [vmem:[#allocation22 + $0x484] ss:$48 sps:$4 sm:$0xff]  }
 0x6e2   :  { %8417 = vmatprep.subr.bf16.mxu0 %v9104_v62  ;;  %v9148_v62 = vld [vmem:[#allocation22 + $0x480] ss:$48 sps:$4 sm:$0xff]  }
 0x6e5   :  { %8418 = vmatpush3.bf16.msra.mxu0 %v9106_v0  ;;  %v9151_v0 = vld [vmem:[#allocation22 + $0x420] ss:$48 sps:$4 sm:$0xff]  }
 0x6e6   :  { %8419 = vmatprep.subr.bf16.mxu0 %v9107_v3  ;;  %v9156_v3 = vld [vmem:[#allocation22 + $0x3c4] ss:$48 sps:$4 sm:$0xff]  }
 0x6e9   :  { %8420 = vmatpush3.bf16.msra.mxu0 %v9109_v7  ;;  %v9159_v7 = vld [vmem:[#allocation22 + $0x364] ss:$48 sps:$4 sm:$0xff]  }
 0x6ea   :  { %8421 = vmatprep.subr.bf16.mxu0 %v9110_v8  ;;  %v9157_v8 = vld [vmem:[#allocation22 + $0x360] ss:$48 sps:$4 sm:$0xff]  }
 0x6ed   :  { %8422 = vmatpush3.bf16.msra.mxu0 %v9112_v10  ;;  %v9160_v10 = vld [vmem:[#allocation22 + $0x300] ss:$48 sps:$4 sm:$0xff]  }
 0x6ee   :  { %8545 = vmatprep.subr.bf16.mxu0 %v10079_v34 }
 0x780   :  { %v3823_v25 = vpop.f32.mrf.mxu0 }
 0x781   :  { %v3919_v31 = vpack.c.bf16 %v3823_v25, %v3823_v25  ;;  %v9171_v25 = vld [vmem:[#allocation22 + $0x7ec] ss:$48 sps:$4 sm:$0xff]  }
 0x782   :  { %v8511_v27 = vpop.f32.mrf.mxu0 }
 0x783   :  { %v9174_v27 = vld [vmem:[#allocation22 + $0x78c] ss:$48 sps:$4 sm:$0xff]  }
 0x784   :  { %v3826_v20 = vpop.f32.mrf.mxu0 }
 0x785   :  { %v9172_v20 = vld [vmem:[#allocation22 + $0x788] ss:$48 sps:$4 sm:$0xff]  }
 0x786   :  { %v8512_v22 = vpop.f32.mrf.mxu0 }
 0x787   :  { %v9177_v22 = vld [vmem:[#allocation22 + $0x72c] ss:$48 sps:$4 sm:$0xff]  }
 0x788   :  { %v3868_v23 = vpop.f32.mrf.mxu0 }
 0x789   :  { %v3920_v29 = vpack.c.bf16 %v3868_v23, %v3868_v23  ;;  %v9175_v23 = vld [vmem:[#allocation22 + $0x728] ss:$48 sps:$4 sm:$0xff]  }
 0x78a   :  { %v8517_v32 = vpop.f32.mrf.mxu0 }
 0x78b   :  { %4153 = vmatprep.mubr.bf16.mxu0 %v3920_v29  ;;  %v9178_v29 = vld [vmem:[#allocation22 + $0x6c8] ss:$48 sps:$4 sm:$0xff]   ;;  %v4305_v32 = vcombine.high %v10517_v44, %v10517_v44  ;;  %v9191_v44 = vld [vmem:[#allocation22 + $0x250] ss:$48 sps:$4 sm:$0xff]  }
 0x78c   :  { %v3871_v38 = vpop.f32.mrf.mxu0  ;;  %4154 = vmatmul.mubr.bf16.vlgmr.msra.gmra.mxu0 %v3919_v31  ;;  %v9183_v31 = vld [vmem:[#allocation22 + $0x66c] ss:$48 sps:$4 sm:$0xff]  }
 0x78d   :  { %8547 = vmatprep.mubr.msk.bf16.mxu0 %vm10080_vm8, %v10079_v34  ;;  %v9181_v38 = vld [vmem:[#allocation22 + $0x668] ss:$48 sps:$4 sm:$0xff]  }
 0x78e   :  { %v8518_v41 = vpop.f32.mrf.mxu0 }
 0x78f   :  { %v4319_v41 = vrot.slane %v4305_v32, %v10512_v2  ;;  %v9317_v32 = vld [vmem:[#allocation22 + $0x618] ss:$48 sps:$4 sm:$0xff]  }
 0x790   :  { %v3913_v42 = vpop.f32.mrf.mxu0 }
 0x791   :  { %v3921_v46 = vpack.c.bf16 %v3913_v42, %v3913_v42  ;;  %v9184_v42 = vld [vmem:[#allocation22 + $0x608] ss:$48 sps:$4 sm:$0xff]  }
 0x792   :  { %v8523_v1 = vpop.f32.mrf.mxu0 }
 0x793   :  { %8542 = vmatmul.mubr.bf16.vlgmr.msra.gmra.mxu1 %v3921_v46  ;;  %v10539_v46 = vpack.c.bf16 %v4319_v41, %v4319_v41  ;;  %v9193_v1 = vld [vmem:[#allocation22 + $0x254] ss:$48 sps:$4 sm:$0xff]   ;;  %v7915_v41 = vld [vmem:[#allocation18] ss:$0 sm:$0xff] }
 0x794   :  { %v3916_v30 = vpop.f32.mrf.mxu0  ;;  %6056 = vmatpush1.bf16.msra.mxu1 %v9115_v43  ;;  %6087 = vmatprep.mubr.bf16.mxu1 %v10527_v45  ;;  %v9189_v43 = vld [vmem:[#allocation22 + $0x2b4] ss:$48 sps:$4 sm:$0xff]  }
 0x795   :  { %6057 = vmatprep.subr.bf16.mxu1 %v9120_v47  ;;  %v9187_v47 = vld [vmem:[#allocation22 + $0x2b0] ss:$48 sps:$4 sm:$0xff]   ;;  %v9196_v30 = vld [vmem:[#allocation22 + $0x1f4] ss:$48 sps:$4 sm:$0xff]  }
 0x796   :  { %v8524_v21 = vpop.f32.mrf.mxu0 }
 0x797   :  { %v9197_v21 = vld [vmem:[#allocation22 + $0x190] ss:$48 sps:$4 sm:$0xff]  }
 0x798   :  { %6058 = vmatpush1.bf16.msra.mxu1 %v9118_v35  ;;  %v9194_v35 = vld [vmem:[#allocation22 + $0x1f0] ss:$48 sps:$4 sm:$0xff]  }
 0x799   :  { %6059 = vmatprep.subr.bf16.mxu1 %v9123_v36  ;;  %v9199_v36 = vld [vmem:[#allocation22 + $0x194] ss:$48 sps:$4 sm:$0xff]  }
 0x79c   :  { %6060 = vmatpush1.bf16.msra.mxu1 %v9121_v17  ;;  %v9205_v17 = vld [vmem:[#allocation22 + $0x134] ss:$48 sps:$4 sm:$0xff]  }
 0x79d   :  { %6061 = vmatprep.subr.bf16.mxu1 %v9126_v39  ;;  %v9203_v39 = vld [vmem:[#allocation22 + $0x130] ss:$48 sps:$4 sm:$0xff]  }
 0x7a0   :  { %6062 = vmatpush1.bf16.msra.mxu1 %v9124_v48  ;;  %v9211_v48 = vld [vmem:[#allocation22 + $0xd4] ss:$48 sps:$4 sm:$0xff]  }
 0x7a1   :  { %6063 = vmatprep.subr.bf16.mxu1 %v9129_v49  ;;  %v9209_v49 = vld [vmem:[#allocation22 + $0xd0] ss:$48 sps:$4 sm:$0xff]  }
 0x7a4   :  { %6064 = vmatpush1.bf16.msra.mxu1 %v9127_v50  ;;  %v9217_v50 = vld [vmem:[#allocation22 + $0x74] ss:$48 sps:$4 sm:$0xff]  }
 0x7a5   :  { %6065 = vmatprep.subr.bf16.mxu1 %v9132_v51  ;;  %v9215_v51 = vld [vmem:[#allocation22 + $0x70] ss:$48 sps:$4 sm:$0xff]  }
 0x7a8   :  { %6066 = vmatpush1.bf16.msra.mxu1 %v9130_v52  ;;  %v9223_v52 = vld [vmem:[#allocation22 + $0x14] ss:$48 sps:$4 sm:$0xff]  }
 0x7a9   :  { %6067 = vmatprep.subr.bf16.mxu1 %v9135_v5  ;;  %v9221_v5 = vld [vmem:[#allocation22 + $0x10] ss:$48 sps:$4 sm:$0xff]  }
 0x7ac   :  { %6068 = vmatpush1.bf16.msra.mxu1 %v9133_v53  ;;  %v9229_v53 = vld [vmem:[#allocation22 + $0x5b4] ss:$48 sps:$4 sm:$0xff]  }
 0x7ad   :  { %6069 = vmatprep.subr.bf16.mxu1 %v9138_v54  ;;  %v9227_v54 = vld [vmem:[#allocation22 + $0x5b0] ss:$48 sps:$4 sm:$0xff]  }
 0x7b0   :  { %6070 = vmatpush1.bf16.msra.mxu1 %v9136_v55  ;;  %v9235_v55 = vld [vmem:[#allocation22 + $0x554] ss:$48 sps:$4 sm:$0xff]  }
 0x7b1   :  { %6071 = vmatprep.subr.bf16.mxu1 %v9141_v56  ;;  %v9233_v56 = vld [vmem:[#allocation22 + $0x550] ss:$48 sps:$4 sm:$0xff]  }
 0x7b4   :  { %6072 = vmatpush2.bf16.msra.mxu1 %v9139_v57  ;;  %v9241_v57 = vld [vmem:[#allocation22 + $0x4f4] ss:$48 sps:$4 sm:$0xff]  }
 0x7b5   :  { %6073 = vmatprep.subr.bf16.mxu1 %v9144_v58  ;;  %v9239_v58 = vld [vmem:[#allocation22 + $0x4f0] ss:$48 sps:$4 sm:$0xff]  }
 0x7b8   :  { %6074 = vmatpush2.bf16.msra.mxu1 %v9142_v59  ;;  %v9247_v59 = vld [vmem:[#allocation22 + $0x494] ss:$48 sps:$4 sm:$0xff]  }
 0x7b9   :  { %6075 = vmatprep.subr.bf16.mxu1 %v9147_v60  ;;  %v9245_v60 = vld [vmem:[#allocation22 + $0x490] ss:$48 sps:$4 sm:$0xff]  }
 0x7bc   :  { %6076 = vmatpush2.bf16.msra.mxu1 %v9145_v61  ;;  %v9253_v61 = vld [vmem:[#allocation22 + $0x434] ss:$48 sps:$4 sm:$0xff]  }
 0x7bd   :  { %6077 = vmatprep.subr.bf16.mxu1 %v9150_v19  ;;  %v9251_v19 = vld [vmem:[#allocation22 + $0x430] ss:$48 sps:$4 sm:$0xff]  }
 0x7c0   :  { %6078 = vmatpush2.bf16.msra.mxu1 %v9148_v62  ;;  %v9259_v62 = vld [vmem:[#allocation22 + $0x3d4] ss:$48 sps:$4 sm:$0xff]  }
 0x7c1   :  { %6079 = vmatprep.subr.bf16.mxu1 %v9153_v63  ;;  %v9257_v63 = vld [vmem:[#allocation22 + $0x3d0] ss:$48 sps:$4 sm:$0xff]  }
 0x7c4   :  { %6080 = vmatpush2.bf16.msra.mxu1 %v9151_v0  ;;  %v9265_v0 = vld [vmem:[#allocation22 + $0x374] ss:$48 sps:$4 sm:$0xff]  }
 0x7c5   :  { %6081 = vmatprep.subr.bf16.mxu1 %v9156_v3  ;;  %v9263_v3 = vld [vmem:[#allocation22 + $0x370] ss:$48 sps:$4 sm:$0xff]  }
 0x7c8   :  { %6082 = vmatpush2.bf16.msra.mxu1 %v9154_v6  ;;  %v9271_v6 = vld [vmem:[#allocation22 + $0x314] ss:$48 sps:$4 sm:$0xff]  }
 0x7c9   :  { %6083 = vmatprep.subr.bf16.mxu1 %v9159_v7  ;;  %v9269_v7 = vld [vmem:[#allocation22 + $0x310] ss:$48 sps:$4 sm:$0xff]  }
 0x7cc   :  { %6084 = vmatpush2.bf16.msra.mxu1 %v9157_v8  ;;  %v9277_v8 = vld [vmem:[#allocation22 + $0x8bc] ss:$48 sps:$4 sm:$0xff]  }
 0x7cd   :  { %6085 = vmatprep.subr.bf16.mxu1 %v9162_v9  ;;  %v9275_v9 = vld [vmem:[#allocation22 + $0x8b8] ss:$48 sps:$4 sm:$0xff]  }
 0x7d0   :  { %6086 = vmatpush2.bf16.msra.mxu1 %v9160_v10  ;;  %v9283_v10 = vld [vmem:[#allocation22 + $0x85c] ss:$48 sps:$4 sm:$0xff]  }
 0x7d1   :  { %6178 = vmatprep.subr.bf16.mxu1 %v9165_v11  ;;  %v9281_v11 = vld [vmem:[#allocation22 + $0x858] ss:$48 sps:$4 sm:$0xff]  }
 0x7d3   :  { %6088 = vmatmul.mubr.bf16.vlgmr.msra.gmra.mxu1 %v10532_v13 }
 0x7d4   :  { %6179 = vmatpush1.bf16.msra.mxu1 %v9163_v16  ;;  %6210 = vmatprep.mubr.bf16.mxu1 %v10078_v4  ;;  %v9289_v16 = vld [vmem:[#allocation22 + $0x7fc] ss:$48 sps:$4 sm:$0xff]  }
 0x7d5   :  { %6180 = vmatprep.subr.bf16.mxu1 %v9168_v18  ;;  %v9287_v18 = vld [vmem:[#allocation22 + $0x7f8] ss:$48 sps:$4 sm:$0xff]  }
 0x7d8   :  { %6181 = vmatpush1.bf16.msra.mxu1 %v9166_v24  ;;  %v9295_v24 = vld [vmem:[#allocation22 + $0x79c] ss:$48 sps:$4 sm:$0xff]  }
 0x7d9   :  { %6182 = vmatprep.subr.bf16.mxu1 %v9171_v25  ;;  %v9293_v25 = vld [vmem:[#allocation22 + $0x798] ss:$48 sps:$4 sm:$0xff]  }
 0x7dc   :  { %6183 = vmatpush1.bf16.msra.mxu1 %v9169_v26  ;;  %v9301_v26 = vld [vmem:[#allocation22 + $0x73c] ss:$48 sps:$4 sm:$0xff]  }
 0x7dd   :  { %6184 = vmatprep.subr.bf16.mxu1 %v9174_v27  ;;  %v9299_v27 = vld [vmem:[#allocation22 + $0x738] ss:$48 sps:$4 sm:$0xff]  }
 0x7e0   :  { %6185 = vmatpush1.bf16.msra.mxu1 %v9172_v20  ;;  %v9307_v20 = vld [vmem:[#allocation22 + $0x6dc] ss:$48 sps:$4 sm:$0xff]  }
 0x7e1   :  { %6186 = vmatprep.subr.bf16.mxu1 %v9177_v22  ;;  %v9305_v22 = vld [vmem:[#allocation22 + $0x6d8] ss:$48 sps:$4 sm:$0xff]  }
 0x7e4   :  { %6187 = vmatpush1.bf16.msra.mxu1 %v9175_v23  ;;  %v9313_v23 = vld [vmem:[#allocation22 + $0x67c] ss:$48 sps:$4 sm:$0xff]  }
 0x7e5   :  { %6188 = vmatprep.subr.bf16.mxu1 %v9180_v28  ;;  %v9311_v28 = vld [vmem:[#allocation22 + $0x678] ss:$48 sps:$4 sm:$0xff]  }
 0x7e8   :  { %6189 = vmatpush1.bf16.msra.mxu1 %v9178_v29  ;;  %v9319_v29 = vld [vmem:[#allocation22 + $0x61c] ss:$48 sps:$4 sm:$0xff]  }
 0x7e9   :  { %6190 = vmatprep.subr.bf16.mxu1 %v9183_v31 }
 0x7ec   :  { %6191 = vmatpush1.bf16.msra.mxu1 %v9181_v38  ;;  %v9325_v38 = vld [vmem:[#allocation22 + $0x2c4] ss:$48 sps:$4 sm:$0xff]  }
 0x7ed   :  { %6192 = vmatprep.subr.bf16.mxu1 %v9186_v40 }
 0x7f0   :  { %6193 = vmatpush1.bf16.msra.mxu1 %v9184_v42 }
 0x7f1   :  { %6219 = vmatprep.subr.bf16.mxu1 %v9189_v43 }
 0x7f3   :  { %6211 = vmatmul.mubr.bf16.vlgmr.msra.gmra.mxu1 %v10539_v46 }
 0x7f4   :  { %6220 = vmatpush1.bf16.msra.mxu1 %v9187_v47  ;;  %6251 = vmatprep.mubr.bf16.mxu1 %v10527_v45  ;;  %v9323_v47 = vld [vmem:[#allocation22 + $0x2c0] ss:$48 sps:$4 sm:$0xff]  }
 0x7f5   :  { %6221 = vmatprep.subr.bf16.mxu1 %v9193_v1 }
 0x7f8   :  { %6222 = vmatpush1.bf16.msra.mxu1 %v9191_v44  ;;  %v9331_v44 = vld [vmem:[#allocation22 + $0x264] ss:$48 sps:$4 sm:$0xff]  }
 0x7f9   :  { %6223 = vmatprep.subr.bf16.mxu1 %v9196_v30 }
 0x7fc   :  { %6224 = vmatpush1.bf16.msra.mxu1 %v9194_v35 }
 0x7fd   :  { %6225 = vmatprep.subr.bf16.mxu1 %v9199_v36 }
 0x800   :  { %6226 = vmatpush1.bf16.msra.mxu1 %v9197_v21  ;;  %v9329_v21 = vld [vmem:[#allocation22 + $0x260] ss:$48 sps:$4 sm:$0xff]  }
 0x801   :  { %6227 = vmatprep.subr.bf16.mxu1 %v9205_v17 }
 0x804   :  { %6228 = vmatpush1.bf16.msra.mxu1 %v9203_v39  ;;  %v9337_v39 = vld [vmem:[#allocation22 + $0x204] ss:$48 sps:$4 sm:$0xff]  }
 0x805   :  { %6229 = vmatprep.subr.bf16.mxu1 %v9211_v48 }
 0x808   :  { %6230 = vmatpush1.bf16.msra.mxu1 %v9209_v49 }
 0x809   :  { %6231 = vmatprep.subr.bf16.mxu1 %v9217_v50 }
 0x80c   :  { %6232 = vmatpush1.bf16.msra.mxu1 %v9215_v51  ;;  %v9335_v51 = vld [vmem:[#allocation22 + $0x200] ss:$48 sps:$4 sm:$0xff]  }
 0x80d   :  { %6233 = vmatprep.subr.bf16.mxu1 %v9223_v52 }
 0x810   :  { %6234 = vmatpush1.bf16.msra.mxu1 %v9221_v5 }
 0x811   :  { %6235 = vmatprep.subr.bf16.mxu1 %v9229_v53  ;;  %v9202_v53 = vld [vmem:[#allocation22 + $0x8a4] ss:$48 sps:$4 sm:$0xff]  }
 0x814   :  { %6236 = vmatpush2.bf16.msra.mxu1 %v9227_v54  ;;  %v9343_v54 = vld [vmem:[#allocation22 + $0x1a4] ss:$48 sps:$4 sm:$0xff]  }
 0x815   :  { %6237 = vmatprep.subr.bf16.mxu1 %v9235_v55 }
 0x818   :  { %6238 = vmatpush2.bf16.msra.mxu1 %v9233_v56  ;;  %v4205_v56 = vld [vmem:[#allocation19] sm:$0x1] }
 0x819   :  { %6239 = vmatprep.subr.bf16.mxu1 %v9241_v57  ;;  %v9200_v57 = vld [vmem:[#allocation22 + $0x8a0] ss:$48 sps:$4 sm:$0xff]  }
 0x81c   :  { %6240 = vmatpush2.bf16.msra.mxu1 %v9239_v58  ;;  %v9208_v58 = vld [vmem:[#allocation22 + $0x844] ss:$48 sps:$4 sm:$0xff]  }
 0x81d   :  { %6241 = vmatprep.subr.bf16.mxu1 %v9247_v59  ;;  %v9341_v59 = vld [vmem:[#allocation22 + $0x1a0] ss:$48 sps:$4 sm:$0xff]  }
 0x820   :  { %6242 = vmatpush2.bf16.msra.mxu1 %v9245_v60  ;;  %v9349_v60 = vld [vmem:[#allocation22 + $0x144] ss:$48 sps:$4 sm:$0xff]  }
 0x821   :  { %6243 = vmatprep.subr.bf16.mxu1 %v9253_v61  ;;  %v9206_v61 = vld [vmem:[#allocation22 + $0x840] ss:$48 sps:$4 sm:$0xff]  }
 0x824   :  { %6244 = vmatpush2.bf16.msra.mxu1 %v9251_v19  ;;  %v9214_v19 = vld [vmem:[#allocation22 + $0x7e4] ss:$48 sps:$4 sm:$0xff]  }
 0x825   :  { %6245 = vmatprep.subr.bf16.mxu1 %v9259_v62  ;;  %v9347_v62 = vld [vmem:[#allocation22 + $0x140] ss:$48 sps:$4 sm:$0xff]  }
 0x828   :  { %6246 = vmatpush2.bf16.msra.mxu1 %v9257_v63  ;;  %v9355_v63 = vld [vmem:[#allocation22 + $0xe4] ss:$48 sps:$4 sm:$0xff]  }
 0x829   :  { %6247 = vmatprep.subr.bf16.mxu1 %v9265_v0  ;;  %v9212_v0 = vld [vmem:[#allocation22 + $0x7e0] ss:$48 sps:$4 sm:$0xff]  }
 0x82c   :  { %6248 = vmatpush2.bf16.msra.mxu1 %v9263_v3  ;;  %v9220_v3 = vld [vmem:[#allocation22 + $0x784] ss:$48 sps:$4 sm:$0xff]  }
 0x82d   :  { %6249 = vmatprep.subr.bf16.mxu1 %v9271_v6  ;;  %v9353_v6 = vld [vmem:[#allocation22 + $0xe0] ss:$48 sps:$4 sm:$0xff]  }
 0x830   :  { %6250 = vmatpush2.bf16.msra.mxu1 %v9269_v7  ;;  %v9361_v7 = vld [vmem:[#allocation22 + $0x84] ss:$48 sps:$4 sm:$0xff]  }
 0x831   :  { %6342 = vmatprep.subr.bf16.mxu1 %v9277_v8  ;;  %v9218_v8 = vld [vmem:[#allocation22 + $0x780] ss:$48 sps:$4 sm:$0xff]  }
 0x833   :  { %6252 = vmatmul.mubr.bf16.vlgmr.msra.gmra.mxu1 %v10532_v13 }
 0x834   :  { %6343 = vmatpush1.bf16.msra.mxu1 %v9275_v9  ;;  %6374 = vmatprep.mubr.bf16.mxu1 %v10078_v4  ;;  %v9226_v9 = vld [vmem:[#allocation22 + $0x724] ss:$48 sps:$4 sm:$0xff]  }
 0x835   :  { %6344 = vmatprep.subr.bf16.mxu1 %v9283_v10  ;;  %v9359_v10 = vld [vmem:[#allocation22 + $0x80] ss:$48 sps:$4 sm:$0xff]  }
 0x838   :  { %6345 = vmatpush1.bf16.msra.mxu1 %v9281_v11  ;;  %v9367_v11 = vld [vmem:[#allocation22 + $0x24] ss:$48 sps:$4 sm:$0xff]  }
 0x839   :  { %6346 = vmatprep.subr.bf16.mxu1 %v9289_v16  ;;  %v9224_v16 = vld [vmem:[#allocation22 + $0x720] ss:$48 sps:$4 sm:$0xff]  }
 0x83c   :  { %6347 = vmatpush1.bf16.msra.mxu1 %v9287_v18  ;;  %v9232_v18 = vld [vmem:[#allocation22 + $0x6c4] ss:$48 sps:$4 sm:$0xff]  }
 0x83d   :  { %6348 = vmatprep.subr.bf16.mxu1 %v9295_v24  ;;  %v9365_v24 = vld [vmem:[#allocation22 + $0x20] ss:$48 sps:$4 sm:$0xff]  }
 0x840   :  { %6349 = vmatpush1.bf16.msra.mxu1 %v9293_v25  ;;  %v9373_v25 = vld [vmem:[#allocation22 + $0x5c4] ss:$48 sps:$4 sm:$0xff]  }
 0x841   :  { %6350 = vmatprep.subr.bf16.mxu1 %v9301_v26  ;;  %v9230_v26 = vld [vmem:[#allocation22 + $0x6c0] ss:$48 sps:$4 sm:$0xff]  }
 0x844   :  { %6351 = vmatpush1.bf16.msra.mxu1 %v9299_v27  ;;  %v9238_v27 = vld [vmem:[#allocation22 + $0x664] ss:$48 sps:$4 sm:$0xff]  }
 0x845   :  { %6352 = vmatprep.subr.bf16.mxu1 %v9307_v20  ;;  %v9371_v20 = vld [vmem:[#allocation22 + $0x5c0] ss:$48 sps:$4 sm:$0xff]  }
 0x848   :  { %6353 = vmatpush1.bf16.msra.mxu1 %v9305_v22  ;;  %v9379_v22 = vld [vmem:[#allocation22 + $0x564] ss:$48 sps:$4 sm:$0xff]  }
 0x849   :  { %6354 = vmatprep.subr.bf16.mxu1 %v9313_v23  ;;  %v9236_v23 = vld [vmem:[#allocation22 + $0x660] ss:$48 sps:$4 sm:$0xff]  }
 0x84c   :  { %v8423_v31 = vpop.f32.mrf.mxu0  ;;  %6355 = vmatpush1.bf16.msra.mxu1 %v9311_v28  ;;  %v9244_v28 = vld [vmem:[#allocation22 + $0x604] ss:$48 sps:$4 sm:$0xff]  }
 0x84d   :  { %6356 = vmatprep.subr.bf16.mxu1 %v9319_v29  ;;  %v9377_v29 = vld [vmem:[#allocation22 + $0x560] ss:$48 sps:$4 sm:$0xff]  }
 0x84e   :  { %v8424_v40 = vpop.f32.mrf.mxu0 }
 0x84f   :  { %v8425_v42 = vadd.f32 %v8424_v40, %v8423_v31  ;;  %v9385_v31 = vld [vmem:[#allocation22 + $0x504] ss:$48 sps:$4 sm:$0xff]   ;;  %v9383_v40 = vld [vmem:[#allocation22 + $0x500] ss:$48 sps:$4 sm:$0xff]  }
 0x850   :  { %v8426_v43 = vpop.f32.mrf.mxu0  ;;  %6357 = vmatpush1.bf16.msra.mxu1 %v9317_v32  ;;  %v9242_v32 = vld [vmem:[#allocation22 + $0x600] ss:$48 sps:$4 sm:$0xff]  }
 0x851   :  { %v4156_v1 = vadd.f32 %v8425_v42, %v7915_v41  ;;  %6383 = vmatprep.subr.bf16.mxu1 %v9325_v38  ;;  %v9250_v38 = vld [vmem:[#allocation22 + $0x2ac] ss:$48 sps:$4 sm:$0xff]   ;;  %v9391_v41 = vld [vmem:[#allocation22 + $0x4a4] ss:$48 sps:$4 sm:$0xff]   ;;  %v9248_v42 = vld [vmem:[#allocation22 + $0x2a8] ss:$48 sps:$4 sm:$0xff]  }
 0x852   :  { %v8427_v30 = vpop.f32.mrf.mxu0  ;;  %v9256_v43 = vld [vmem:[#allocation22 + $0x24c] ss:$48 sps:$4 sm:$0xff]  }
 0x853   :  { %v4195_v35 = vpop.f32.mrf.mxu1  ;;  %6375 = vmatmul.mubr.bf16.vlgmr.msra.gmra.mxu1 %v10539_v46  ;;  %v9262_v30 = vld [vmem:[#allocation22 + $0x1ec] ss:$48 sps:$4 sm:$0xff]  }
 0x854   :  { %v4196_v36 = vadd.f32 %v4195_v35, %v4156_v1  ;;  %6384 = vmatpush1.bf16.msra.mxu1 %v9323_v47  ;;  %6415 = vmatprep.mubr.bf16.mxu1 %v10527_v45  ;;  %v9389_v47 = vld [vmem:[#allocation22 + $0x4a0] ss:$48 sps:$4 sm:$0xff]   ;;  %v9397_v1 = vld [vmem:[#allocation22 + $0x444] ss:$48 sps:$4 sm:$0xff]  }
 0x855   :  { %v8543_v17 = vpop.f32.mrf.mxu1  ;;  %6385 = vmatprep.subr.bf16.mxu1 %v9331_v44  ;;  %v9254_v44 = vld [vmem:[#allocation22 + $0x248] ss:$48 sps:$4 sm:$0xff]   ;;  %v9395_v35 = vld [vmem:[#allocation22 + $0x440] ss:$48 sps:$4 sm:$0xff]  }
 0x856   :  { %vm4201_vm12 = vcmp.gt.f32.partialorder %v4196_v36, 0.0  ;;  %v4202_v48 = vmul.f32 0.01, %v4196_v36  ;;  %v9268_v17 = vld [vmem:[#allocation22 + $0x18c] ss:$48 sps:$4 sm:$0xff]  }
 0x857   :  { %v4198_v49 = vpop.f32.mrf.mxu1 }
 0x858   :  { %v4203_v50 = vsel %vm4201_vm12, %v4196_v36, %v4202_v48  ;;  %6386 = vmatpush1.bf16.msra.mxu1 %v9329_v21  ;;  %v9403_v36 = vld [vmem:[#allocation22 + $0x3e4] ss:$48 sps:$4 sm:$0xff]   ;;  %v9260_v21 = vld [vmem:[#allocation22 + $0x1e8] ss:$48 sps:$4 sm:$0xff]  }
 0x859   :  { %v4204_v52 = vpack.c.bf16 %v4203_v50, %v4203_v50  ;;  %v8544_v5 = vpop.f32.mrf.mxu1  ;;  %6387 = vmatprep.subr.bf16.mxu1 %v9337_v39  ;;  %v9401_v39 = vld [vmem:[#allocation22 + $0x3e0] ss:$48 sps:$4 sm:$0xff]   ;;  %v9409_v48 = vld [vmem:[#allocation22 + $0x384] ss:$48 sps:$4 sm:$0xff]   ;;  %v9266_v49 = vld [vmem:[#allocation22 + $0x188] ss:$48 sps:$4 sm:$0xff]  }
 0x85a   :  { %v9274_v50 = vld [vmem:[#allocation22 + $0x12c] ss:$48 sps:$4 sm:$0xff]   ;;  %v9272_v5 = vld [vmem:[#allocation22 + $0x128] ss:$48 sps:$4 sm:$0xff]  }
 0x85b   :  { %v4212_v55 = vsel %vm4210_vm13, %v4204_v52, 0  ;;  %v9415_v52 = vld [vmem:[#allocation22 + $0x324] ss:$48 sps:$4 sm:$0xff]  }
 0x85c   :  { %8546 = vmatpush3.bf16.msra.mxu0 %v4212_v55  ;;  %6388 = vmatpush1.bf16.msra.mxu1 %v9335_v51  ;;  %v9407_v51 = vld [vmem:[#allocation22 + $0x380] ss:$48 sps:$4 sm:$0xff]   ;;  %v9421_v55 = vld [vmem:[#allocation22 + $0x8cc] ss:$48 sps:$4 sm:$0xff]  }
 0x85d   :  { %6096 = vmatprep.subr.bf16.mxu0 %v9202_v53  ;;  %6389 = vmatprep.subr.bf16.mxu1 %v9343_v54  ;;  %v9280_v53 = vld [vmem:[#allocation22 + $0xcc] ss:$48 sps:$4 sm:$0xff]   ;;  %v9413_v54 = vld [vmem:[#allocation22 + $0x320] ss:$48 sps:$4 sm:$0xff]  }
 0x85f   :  { %8548 = vmatmul.mubr.msk.bf16.vlgmr.msra.gmra.mxu0 %vm4206_vm14, %v4205_v56  ;;  %v9278_v56 = vld [vmem:[#allocation22 + $0xc8] ss:$48 sps:$4 sm:$0xff]  }
 0x860   :  { %6097 = vmatpush1.bf16.msra.mxu0 %v9200_v57  ;;  %6128 = vmatprep.mubr.bf16.mxu0 %v10078_v4  ;;  %v9286_v57 = vld [vmem:[#allocation22 + $0x6c] ss:$48 sps:$4 sm:$0xff]  }
 0x861   :  { %6098 = vmatprep.subr.bf16.mxu0 %v9208_v58  ;;  %6390 = vmatpush1.bf16.msra.mxu1 %v9341_v59  ;;  %v9419_v58 = vld [vmem:[#allocation22 + $0x8c8] ss:$48 sps:$4 sm:$0xff]   ;;  %v9427_v59 = vld [vmem:[#allocation22 + $0x86c] ss:$48 sps:$4 sm:$0xff]  }
 0x862   :  { %6391 = vmatprep.subr.bf16.mxu1 %v9349_v60  ;;  %v9284_v60 = vld [vmem:[#allocation22 + $0x68] ss:$48 sps:$4 sm:$0xff]  }
 0x864   :  { %6099 = vmatpush1.bf16.msra.mxu0 %v9206_v61  ;;  %v9292_v61 = vld [vmem:[#allocation22 + $0xc] ss:$48 sps:$4 sm:$0xff]  }
 0x865   :  { %6100 = vmatprep.subr.bf16.mxu0 %v9214_v19  ;;  %6392 = vmatpush1.bf16.msra.mxu1 %v9347_v62  ;;  %v9425_v19 = vld [vmem:[#allocation22 + $0x868] ss:$48 sps:$4 sm:$0xff]   ;;  %v9433_v62 = vld [vmem:[#allocation22 + $0x80c] ss:$48 sps:$4 sm:$0xff]  }
 0x866   :  { %6393 = vmatprep.subr.bf16.mxu1 %v9355_v63  ;;  %v9290_v63 = vld [vmem:[#allocation22 + $0x8] ss:$48 sps:$4 sm:$0xff]  }
 0x868   :  { %6101 = vmatpush1.bf16.msra.mxu0 %v9212_v0  ;;  %v9298_v0 = vld [vmem:[#allocation22 + $0x5ac] ss:$48 sps:$4 sm:$0xff]  }
 0x869   :  { %6102 = vmatprep.subr.bf16.mxu0 %v9220_v3  ;;  %6394 = vmatpush1.bf16.msra.mxu1 %v9353_v6  ;;  %v9431_v3 = vld [vmem:[#allocation22 + $0x808] ss:$48 sps:$4 sm:$0xff]   ;;  %v9439_v6 = vld [vmem:[#allocation22 + $0x7ac] ss:$48 sps:$4 sm:$0xff]  }
 0x86a   :  { %6395 = vmatprep.subr.bf16.mxu1 %v9361_v7  ;;  %v9296_v7 = vld [vmem:[#allocation22 + $0x5a8] ss:$48 sps:$4 sm:$0xff]  }
 0x86c   :  { %6103 = vmatpush1.bf16.msra.mxu0 %v9218_v8  ;;  %v9304_v8 = vld [vmem:[#allocation22 + $0x54c] ss:$48 sps:$4 sm:$0xff]  }
 0x86d   :  { %6104 = vmatprep.subr.bf16.mxu0 %v9226_v9  ;;  %6396 = vmatpush1.bf16.msra.mxu1 %v9359_v10  ;;  %v9437_v9 = vld [vmem:[#allocation22 + $0x7a8] ss:$48 sps:$4 sm:$0xff]   ;;  %v9445_v10 = vld [vmem:[#allocation22 + $0x74c] ss:$48 sps:$4 sm:$0xff]  }
 0x86e   :  { %6397 = vmatprep.subr.bf16.mxu1 %v9367_v11  ;;  %v9302_v11 = vld [vmem:[#allocation22 + $0x548] ss:$48 sps:$4 sm:$0xff]  }
 0x870   :  { %6105 = vmatpush1.bf16.msra.mxu0 %v9224_v16  ;;  %v9310_v16 = vld [vmem:[#allocation22 + $0x4ec] ss:$48 sps:$4 sm:$0xff]  }
 0x871   :  { %6106 = vmatprep.subr.bf16.mxu0 %v9232_v18  ;;  %6398 = vmatpush1.bf16.msra.mxu1 %v9365_v24  ;;  %v9443_v18 = vld [vmem:[#allocation22 + $0x748] ss:$48 sps:$4 sm:$0xff]   ;;  %v9451_v24 = vld [vmem:[#allocation22 + $0x6ec] ss:$48 sps:$4 sm:$0xff]  }
 0x872   :  { %6399 = vmatprep.subr.bf16.mxu1 %v9373_v25  ;;  %v9308_v25 = vld [vmem:[#allocation22 + $0x4e8] ss:$48 sps:$4 sm:$0xff]  }
 0x874   :  { %6107 = vmatpush1.bf16.msra.mxu0 %v9230_v26  ;;  %v9316_v26 = vld [vmem:[#allocation22 + $0x48c] ss:$48 sps:$4 sm:$0xff]  }
 0x875   :  { %6108 = vmatprep.subr.bf16.mxu0 %v9238_v27  ;;  %6400 = vmatpush2.bf16.msra.mxu1 %v9371_v20  ;;  %v9449_v27 = vld [vmem:[#allocation22 + $0x6e8] ss:$48 sps:$4 sm:$0xff]   ;;  %v9457_v20 = vld [vmem:[#allocation22 + $0x68c] ss:$48 sps:$4 sm:$0xff]  }
 0x876   :  { %6401 = vmatprep.subr.bf16.mxu1 %v9379_v22  ;;  %v9314_v22 = vld [vmem:[#allocation22 + $0x488] ss:$48 sps:$4 sm:$0xff]  }
 0x878   :  { %6109 = vmatpush1.bf16.msra.mxu0 %v9236_v23  ;;  %v9322_v23 = vld [vmem:[#allocation22 + $0x42c] ss:$48 sps:$4 sm:$0xff]  }
 0x879   :  { %6110 = vmatprep.subr.bf16.mxu0 %v9244_v28  ;;  %6402 = vmatpush2.bf16.msra.mxu1 %v9377_v29  ;;  %v9455_v28 = vld [vmem:[#allocation22 + $0x688] ss:$48 sps:$4 sm:$0xff]   ;;  %v9463_v29 = vld [vmem:[#allocation22 + $0x62c] ss:$48 sps:$4 sm:$0xff]  }
 0x87a   :  { %6403 = vmatprep.subr.bf16.mxu1 %v9385_v31  ;;  %v9320_v31 = vld [vmem:[#allocation22 + $0x428] ss:$48 sps:$4 sm:$0xff]  }
 0x87c   :  { %6111 = vmatpush1.bf16.msra.mxu0 %v9242_v32  ;;  %v9328_v32 = vld [vmem:[#allocation22 + $0x3cc] ss:$48 sps:$4 sm:$0xff]  }
 0x87d   :  { %6137 = vmatprep.subr.bf16.mxu0 %v9250_v38  ;;  %6404 = vmatpush2.bf16.msra.mxu1 %v9383_v40  ;;  %v9461_v38 = vld [vmem:[#allocation22 + $0x628] ss:$48 sps:$4 sm:$0xff]   ;;  %v9469_v40 = vld [vmem:[#allocation21 + $0x124] ss:$48 sps:$4 sm:$0xff]  }
 0x87e   :  { %6405 = vmatprep.subr.bf16.mxu1 %v9391_v41  ;;  %v9326_v41 = vld [vmem:[#allocation22 + $0x3c8] ss:$48 sps:$4 sm:$0xff]  }
 0x87f   :  { %6129 = vmatmul.mubr.bf16.vlgmr.msra.gmra.mxu0 %v10539_v46 }
 0x880   :  { %6138 = vmatpush1.bf16.msra.mxu0 %v9248_v42  ;;  %6169 = vmatprep.mubr.bf16.mxu0 %v10527_v45  ;;  %v9334_v42 = vld [vmem:[#allocation22 + $0x36c] ss:$48 sps:$4 sm:$0xff]  }
 0x881   :  { %6139 = vmatprep.subr.bf16.mxu0 %v9256_v43  ;;  %6406 = vmatpush2.bf16.msra.mxu1 %v9389_v47  ;;  %v9467_v43 = vld [vmem:[#allocation21 + $0x120] ss:$48 sps:$4 sm:$0xff]   ;;  %v9475_v47 = vld [vmem:[#allocation21 + $0xc4] ss:$48 sps:$4 sm:$0xff]  }
 0x882   :  { %6407 = vmatprep.subr.bf16.mxu1 %v9397_v1  ;;  %v9332_v1 = vld [vmem:[#allocation22 + $0x368] ss:$48 sps:$4 sm:$0xff]  }
 0x884   :  { %6140 = vmatpush1.bf16.msra.mxu0 %v9254_v44  ;;  %v9340_v44 = vld [vmem:[#allocation22 + $0x30c] ss:$48 sps:$4 sm:$0xff]  }
 0x885   :  { %6141 = vmatprep.subr.bf16.mxu0 %v9262_v30  ;;  %6408 = vmatpush2.bf16.msra.mxu1 %v9395_v35  ;;  %v9473_v30 = vld [vmem:[#allocation21 + $0xc0] ss:$48 sps:$4 sm:$0xff]   ;;  %v9481_v35 = vld [vmem:[#allocation21 + $0x64] ss:$48 sps:$4 sm:$0xff]  }
 0x886   :  { %6409 = vmatprep.subr.bf16.mxu1 %v9403_v36  ;;  %v9338_v36 = vld [vmem:[#allocation22 + $0x308] ss:$48 sps:$4 sm:$0xff]  }
 0x888   :  { %6142 = vmatpush1.bf16.msra.mxu0 %v9260_v21  ;;  %v9346_v21 = vld [vmem:[#allocation22 + $0x8b4] ss:$48 sps:$4 sm:$0xff]  }
 0x889   :  { %6143 = vmatprep.subr.bf16.mxu0 %v9268_v17  ;;  %6410 = vmatpush2.bf16.msra.mxu1 %v9401_v39  ;;  %v9479_v17 = vld [vmem:[#allocation21 + $0x60] ss:$48 sps:$4 sm:$0xff]   ;;  %v9487_v39 = vld [vmem:[#allocation21 + $0x4] ss:$48 sps:$4 sm:$0xff]  }
 0x88a   :  { %6411 = vmatprep.subr.bf16.mxu1 %v9409_v48  ;;  %v9344_v48 = vld [vmem:[#allocation22 + $0x8b0] ss:$48 sps:$4 sm:$0xff]  }
 0x88c   :  { %6144 = vmatpush1.bf16.msra.mxu0 %v9266_v49  ;;  %v9352_v49 = vld [vmem:[#allocation22 + $0x854] ss:$48 sps:$4 sm:$0xff]  }
 0x88d   :  { %6145 = vmatprep.subr.bf16.mxu0 %v9274_v50  ;;  %6412 = vmatpush2.bf16.msra.mxu1 %v9407_v51  ;;  %v9485_v50 = vld [vmem:[#allocation21] ss:$48 sps:$4 sm:$0xff]   ;;  %v9493_v51 = vld [vmem:[#allocation21 + $0x134] ss:$48 sps:$4 sm:$0xff]  }
 0x88e   :  { %6413 = vmatprep.subr.bf16.mxu1 %v9415_v52  ;;  %v9350_v52 = vld [vmem:[#allocation22 + $0x850] ss:$48 sps:$4 sm:$0xff]  }
 0x890   :  { %6146 = vmatpush1.bf16.msra.mxu0 %v9272_v5 }
 0x891   :  { %6147 = vmatprep.subr.bf16.mxu0 %v9280_v53  ;;  %6414 = vmatpush2.bf16.msra.mxu1 %v9413_v54  ;;  %v9358_v53 = vld [vmem:[#allocation22 + $0x7f4] ss:$48 sps:$4 sm:$0xff]  }
 0x892   :  { %6506 = vmatprep.subr.bf16.mxu1 %v9421_v55  ;;  %v9356_v55 = vld [vmem:[#allocation22 + $0x7f0] ss:$48 sps:$4 sm:$0xff]  }
 0x893   :  { %v10556_v5 = vpop.f32.mrf.mxu1 }
 0x894   :  { %6148 = vmatpush1.bf16.msra.mxu0 %v9278_v56  ;;  %6416 = vmatmul.mubr.bf16.vlgmr.msra.gmra.mxu1 %v10532_v13 }
 0x895   :  { %6149 = vmatprep.subr.bf16.mxu0 %v9286_v57  ;;  %6507 = vmatpush1.bf16.msra.mxu1 %v9419_v58  ;;  %v10558_v54 = vpop.f32.mrf.mxu1  ;;  %v9364_v57 = vld [vmem:[#allocation22 + $0x794] ss:$48 sps:$4 sm:$0xff]  }
 0x896   :  { %6508 = vmatprep.subr.bf16.mxu1 %v9427_v59  ;;  %6538 = vmatprep.mubr.bf16.mxu1 %v10078_v4  ;;  %v9362_v59 = vld [vmem:[#allocation22 + $0x790] ss:$48 sps:$4 sm:$0xff]  }
 0x897   :  { %v6093_v56 = vpop.f32.mrf.mxu1 }
 0x898   :  { %6150 = vmatpush1.bf16.msra.mxu0 %v9284_v60  ;;  %v9370_v60 = vld [vmem:[#allocation22 + $0x734] ss:$48 sps:$4 sm:$0xff]  }
 0x899   :  { %6151 = vmatprep.subr.bf16.mxu0 %v9292_v61  ;;  %6509 = vmatpush1.bf16.msra.mxu1 %v9425_v19  ;;  %v6094_v58 = vpop.f32.mrf.mxu1  ;;  %v9368_v61 = vld [vmem:[#allocation22 + $0x730] ss:$48 sps:$4 sm:$0xff]   ;;  %v9376_v19 = vld [vmem:[#allocation22 + $0x6d4] ss:$48 sps:$4 sm:$0xff]  }
 0x89a   :  { %6510 = vmatprep.subr.bf16.mxu1 %v9433_v62  ;;  %v9374_v62 = vld [vmem:[#allocation22 + $0x6d0] ss:$48 sps:$4 sm:$0xff]  }
 0x89c   :  { %6152 = vmatpush1.bf16.msra.mxu0 %v9290_v63  ;;  %v9382_v63 = vld [vmem:[#allocation22 + $0x674] ss:$48 sps:$4 sm:$0xff]  }
 0x89d   :  { %6153 = vmatprep.subr.bf16.mxu0 %v9298_v0  ;;  %6511 = vmatpush1.bf16.msra.mxu1 %v9431_v3  ;;  %v9380_v0 = vld [vmem:[#allocation22 + $0x670] ss:$48 sps:$4 sm:$0xff]   ;;  %v9388_v3 = vld [vmem:[#allocation22 + $0x614] ss:$48 sps:$4 sm:$0xff]  }
 0x89e   :  { %6512 = vmatprep.subr.bf16.mxu1 %v9439_v6  ;;  %v9386_v6 = vld [vmem:[#allocation22 + $0x610] ss:$48 sps:$4 sm:$0xff]  }
 0x8a0   :  { %6154 = vmatpush2.bf16.msra.mxu0 %v9296_v7  ;;  %v9394_v7 = vld [vmem:[#allocation22 + $0x2bc] ss:$48 sps:$4 sm:$0xff]  }
 0x8a1   :  { %6155 = vmatprep.subr.bf16.mxu0 %v9304_v8  ;;  %6513 = vmatpush1.bf16.msra.mxu1 %v9437_v9  ;;  %v9392_v8 = vld [vmem:[#allocation22 + $0x2b8] ss:$48 sps:$4 sm:$0xff]   ;;  %v9400_v9 = vld [vmem:[#allocation22 + $0x25c] ss:$48 sps:$4 sm:$0xff]  }
 0x8a2   :  { %6514 = vmatprep.subr.bf16.mxu1 %v9445_v10  ;;  %v9398_v10 = vld [vmem:[#allocation22 + $0x258] ss:$48 sps:$4 sm:$0xff]  }
 0x8a4   :  { %6156 = vmatpush2.bf16.msra.mxu0 %v9302_v11  ;;  %v9406_v11 = vld [vmem:[#allocation22 + $0x1fc] ss:$48 sps:$4 sm:$0xff]  }
 0x8a5   :  { %6157 = vmatprep.subr.bf16.mxu0 %v9310_v16  ;;  %6515 = vmatpush1.bf16.msra.mxu1 %v9443_v18  ;;  %v9404_v16 = vld [vmem:[#allocation22 + $0x1f8] ss:$48 sps:$4 sm:$0xff]   ;;  %v9412_v18 = vld [vmem:[#allocation22 + $0x19c] ss:$48 sps:$4 sm:$0xff]  }
 0x8a6   :  { %6516 = vmatprep.subr.bf16.mxu1 %v9451_v24  ;;  %v9410_v24 = vld [vmem:[#allocation22 + $0x198] ss:$48 sps:$4 sm:$0xff]  }
 0x8a8   :  { %6158 = vmatpush2.bf16.msra.mxu0 %v9308_v25  ;;  %v9418_v25 = vld [vmem:[#allocation22 + $0x13c] ss:$48 sps:$4 sm:$0xff]  }
 0x8a9   :  { %6159 = vmatprep.subr.bf16.mxu0 %v9316_v26  ;;  %6517 = vmatpush1.bf16.msra.mxu1 %v9449_v27  ;;  %v9416_v26 = vld [vmem:[#allocation22 + $0x138] ss:$48 sps:$4 sm:$0xff]   ;;  %v9424_v27 = vld [vmem:[#allocation22 + $0xdc] ss:$48 sps:$4 sm:$0xff]  }
 0x8aa   :  { %6518 = vmatprep.subr.bf16.mxu1 %v9457_v20  ;;  %v9422_v20 = vld [vmem:[#allocation22 + $0xd8] ss:$48 sps:$4 sm:$0xff]  }
 0x8ac   :  { %6160 = vmatpush2.bf16.msra.mxu0 %v9314_v22  ;;  %v9430_v22 = vld [vmem:[#allocation22 + $0x7c] ss:$48 sps:$4 sm:$0xff]  }
 0x8ad   :  { %6161 = vmatprep.subr.bf16.mxu0 %v9322_v23  ;;  %6519 = vmatpush1.bf16.msra.mxu1 %v9455_v28  ;;  %v9428_v23 = vld [vmem:[#allocation22 + $0x78] ss:$48 sps:$4 sm:$0xff]   ;;  %v9436_v28 = vld [vmem:[#allocation22 + $0x1c] ss:$48 sps:$4 sm:$0xff]  }
 0x8ae   :  { %6520 = vmatprep.subr.bf16.mxu1 %v9463_v29  ;;  %v9434_v29 = vld [vmem:[#allocation22 + $0x18] ss:$48 sps:$4 sm:$0xff]  }
 0x8b0   :  { %6162 = vmatpush2.bf16.msra.mxu0 %v9320_v31  ;;  %v9442_v31 = vld [vmem:[#allocation22 + $0x5bc] ss:$48 sps:$4 sm:$0xff]  }
 0x8b1   :  { %6163 = vmatprep.subr.bf16.mxu0 %v9328_v32  ;;  %6521 = vmatpush1.bf16.msra.mxu1 %v9461_v38 }
 0x8b2   :  { %6798 = vmatprep.subr.bf16.mxu1 %v9469_v40  ;;  %v9440_v40 = vld [vmem:[#allocation22 + $0x5b8] ss:$48 sps:$4 sm:$0xff]  }
 0x8b3   :  { %v10562_v32 = vpop.f32.mrf.mxu1 }
 0x8b4   :  { %6164 = vmatpush2.bf16.msra.mxu0 %v9326_v41  ;;  %6539 = vmatmul.mubr.bf16.vlgmr.msra.gmra.mxu1 %v10539_v46  ;;  %v9448_v41 = vld [vmem:[#allocation22 + $0x55c] ss:$48 sps:$4 sm:$0xff]  }
 0x8b5   :  { %6165 = vmatprep.subr.bf16.mxu0 %v9334_v42  ;;  %6799 = vmatpush1.bf16.msra.mxu1 %v9467_v43  ;;  %v10564_v38 = vpop.f32.mrf.mxu1 }
 0x8b6   :  { %6800 = vmatprep.subr.bf16.mxu1 %v9475_v47  ;;  %6822 = vmatprep.mubr.bf16.mxu1 %v10078_v4  ;;  %v9446_v47 = vld [vmem:[#allocation22 + $0x558] ss:$48 sps:$4 sm:$0xff]  }
 0x8b7   :  { %v6216_v42 = vpop.f32.mrf.mxu1 }
 0x8b8   :  { %6166 = vmatpush2.bf16.msra.mxu0 %v9332_v1  ;;  %v9454_v1 = vld [vmem:[#allocation22 + $0x4fc] ss:$48 sps:$4 sm:$0xff]   ;;  %v9521_v42 = vld [vmem:[#allocation21 + $0xe0] ss:$48 sps:$4 sm:$0xff]  }
 0x8b9   :  { %6167 = vmatprep.subr.bf16.mxu0 %v9340_v44  ;;  %6801 = vmatpush1.bf16.msra.mxu1 %v9473_v30  ;;  %v6217_v43 = vpop.f32.mrf.mxu1  ;;  %v9452_v44 = vld [vmem:[#allocation22 + $0x4f8] ss:$48 sps:$4 sm:$0xff]   ;;  %v9460_v30 = vld [vmem:[#allocation22 + $0x49c] ss:$48 sps:$4 sm:$0xff]  }
 0x8ba   :  { %6802 = vmatprep.subr.bf16.mxu1 %v9481_v35  ;;  %v9458_v35 = vld [vmem:[#allocation22 + $0x498] ss:$48 sps:$4 sm:$0xff]  }
 0x8bc   :  { %6168 = vmatpush2.bf16.msra.mxu0 %v9338_v36  ;;  %v9466_v36 = vld [vmem:[#allocation22 + $0x43c] ss:$48 sps:$4 sm:$0xff]  }
 0x8bd   :  { %6260 = vmatprep.subr.bf16.mxu0 %v9346_v21  ;;  %6803 = vmatpush1.bf16.msra.mxu1 %v9479_v17  ;;  %v9464_v21 = vld [vmem:[#allocation22 + $0x438] ss:$48 sps:$4 sm:$0xff]   ;;  %v9472_v17 = vld [vmem:[#allocation22 + $0x3dc] ss:$48 sps:$4 sm:$0xff]  }
 0x8be   :  { %6804 = vmatprep.subr.bf16.mxu1 %v9487_v39  ;;  %v9470_v39 = vld [vmem:[#allocation22 + $0x3d8] ss:$48 sps:$4 sm:$0xff]  }
 0x8bf   :  { %6170 = vmatmul.mubr.bf16.vlgmr.msra.gmra.mxu0 %v10532_v13 }
 0x8c0   :  { %6261 = vmatpush1.bf16.msra.mxu0 %v9344_v48  ;;  %6292 = vmatprep.mubr.bf16.mxu0 %v10078_v4  ;;  %v9478_v48 = vld [vmem:[#allocation22 + $0x37c] ss:$48 sps:$4 sm:$0xff]  }
 0x8c1   :  { %6262 = vmatprep.subr.bf16.mxu0 %v9352_v49  ;;  %6805 = vmatpush1.bf16.msra.mxu1 %v9485_v50  ;;  %v9476_v49 = vld [vmem:[#allocation22 + $0x378] ss:$48 sps:$4 sm:$0xff]   ;;  %v9484_v50 = vld [vmem:[#allocation22 + $0x31c] ss:$48 sps:$4 sm:$0xff]  }
 0x8c2   :  { %6880 = vmatprep.subr.bf16.mxu1 %v9493_v51  ;;  %v9482_v51 = vld [vmem:[#allocation22 + $0x318] ss:$48 sps:$4 sm:$0xff]  }
 0x8c4   :  { %6263 = vmatpush1.bf16.msra.mxu0 %v9350_v52  ;;  %v9490_v52 = vld [vmem:[#allocation22 + $0x8c4] ss:$48 sps:$4 sm:$0xff]  }
 0x8c5   :  { %6264 = vmatprep.subr.bf16.mxu0 %v9358_v53  ;;  %v9488_v53 = vld [vmem:[#allocation22 + $0x8c0] ss:$48 sps:$4 sm:$0xff]  }
 0x8c8   :  { %6265 = vmatpush1.bf16.msra.mxu0 %v9356_v55  ;;  %v9496_v55 = vld [vmem:[#allocation22 + $0x864] ss:$48 sps:$4 sm:$0xff]  }
 0x8c9   :  { %6266 = vmatprep.subr.bf16.mxu0 %v9364_v57  ;;  %v9491_v57 = vld [vmem:[#allocation21 + $0x130] ss:$48 sps:$4 sm:$0xff]  }
 0x8cc   :  { %6267 = vmatpush1.bf16.msra.mxu0 %v9362_v59  ;;  %v9494_v59 = vld [vmem:[#allocation22 + $0x860] ss:$48 sps:$4 sm:$0xff]  }
 0x8cd   :  { %6268 = vmatprep.subr.bf16.mxu0 %v9370_v60  ;;  %v9499_v60 = vld [vmem:[#allocation21 + $0xd4] ss:$48 sps:$4 sm:$0xff]  }
 0x8d0   :  { %6269 = vmatpush1.bf16.msra.mxu0 %v9368_v61 }
 0x8d1   :  { %6270 = vmatprep.subr.bf16.mxu0 %v9376_v19 }
 0x8d4   :  { %6271 = vmatpush1.bf16.msra.mxu0 %v9374_v62  ;;  %v9502_v62 = vld [vmem:[#allocation22 + $0x804] ss:$48 sps:$4 sm:$0xff]  }
 0x8d5   :  { %6272 = vmatprep.subr.bf16.mxu0 %v9382_v63 }
 0x8d8   :  { %6273 = vmatpush1.bf16.msra.mxu0 %v9380_v0 }
 0x8d9   :  { %6274 = vmatprep.subr.bf16.mxu0 %v9388_v3  ;;  %v9497_v3 = vld [vmem:[#allocation21 + $0xd0] ss:$48 sps:$4 sm:$0xff]  }
 0x8dc   :  { %6275 = vmatpush1.bf16.msra.mxu0 %v9386_v6  ;;  %v9500_v6 = vld [vmem:[#allocation22 + $0x800] ss:$48 sps:$4 sm:$0xff]  }
 0x8dd   :  { %6301 = vmatprep.subr.bf16.mxu0 %v9394_v7  ;;  %v9505_v7 = vld [vmem:[#allocation21 + $0x74] ss:$48 sps:$4 sm:$0xff]  }
 0x8df   :  { %6293 = vmatmul.mubr.bf16.vlgmr.msra.gmra.mxu0 %v10539_v46 }
 0x8e0   :  { %6302 = vmatpush1.bf16.msra.mxu0 %v9392_v8  ;;  %6333 = vmatprep.mubr.bf16.mxu0 %v10527_v45 }
 0x8e1   :  { %6303 = vmatprep.subr.bf16.mxu0 %v9400_v9 }
 0x8e4   :  { %6304 = vmatpush1.bf16.msra.mxu0 %v9398_v10  ;;  %v9508_v10 = vld [vmem:[#allocation22 + $0x7a4] ss:$48 sps:$4 sm:$0xff]  }
 0x8e5   :  { %6305 = vmatprep.subr.bf16.mxu0 %v9406_v11 }
 0x8e8   :  { %6306 = vmatpush1.bf16.msra.mxu0 %v9404_v16  ;;  %v9503_v16 = vld [vmem:[#allocation21 + $0x70] ss:$48 sps:$4 sm:$0xff]  }
 0x8e9   :  { %6307 = vmatprep.subr.bf16.mxu0 %v9412_v18  ;;  %v9506_v18 = vld [vmem:[#allocation22 + $0x7a0] ss:$48 sps:$4 sm:$0xff]  }
 0x8ec   :  { %6308 = vmatpush1.bf16.msra.mxu0 %v9410_v24  ;;  %v9511_v24 = vld [vmem:[#allocation21 + $0x14] ss:$48 sps:$4 sm:$0xff]  }
 0x8ed   :  { %6309 = vmatprep.subr.bf16.mxu0 %v9418_v25  ;;  %v9514_v25 = vld [vmem:[#allocation22 + $0x744] ss:$48 sps:$4 sm:$0xff]  }
 0x8f0   :  { %6310 = vmatpush1.bf16.msra.mxu0 %v9416_v26  ;;  %v9509_v26 = vld [vmem:[#allocation21 + $0x10] ss:$48 sps:$4 sm:$0xff]  }
 0x8f1   :  { %6311 = vmatprep.subr.bf16.mxu0 %v9424_v27  ;;  %v9512_v27 = vld [vmem:[#allocation22 + $0x740] ss:$48 sps:$4 sm:$0xff]  }
 0x8f3   :  { %v10570_v61 = vpop.f32.mrf.mxu1 }
 0x8f4   :  { %6312 = vmatpush1.bf16.msra.mxu0 %v9422_v20  ;;  %v9517_v20 = vld [vmem:[#allocation21 + $0x144] ss:$48 sps:$4 sm:$0xff]  }
 0x8f5   :  { %6313 = vmatprep.subr.bf16.mxu0 %v9430_v22  ;;  %v10574_v63 = vpop.f32.mrf.mxu1  ;;  %v9520_v22 = vld [vmem:[#allocation22 + $0x6e4] ss:$48 sps:$4 sm:$0xff]  }
 0x8f7   :  { %v6257_v8 = vpop.f32.mrf.mxu1 }
 0x8f8   :  { %6314 = vmatpush1.bf16.msra.mxu0 %v9428_v23  ;;  %v9515_v23 = vld [vmem:[#allocation21 + $0x140] ss:$48 sps:$4 sm:$0xff]  }
 0x8f9   :  { %6315 = vmatprep.subr.bf16.mxu0 %v9436_v28  ;;  %v6258_v11 = vpop.f32.mrf.mxu1 }
 0x8fa   :  { %v9562_v11 = vld [vmem:[#allocation22 + $0x5cc] ss:$48 sps:$4 sm:$0xff]  }
 0x8fc   :  { %6316 = vmatpush1.bf16.msra.mxu0 %v9434_v29  ;;  %v9518_v29 = vld [vmem:[#allocation22 + $0x6e0] ss:$48 sps:$4 sm:$0xff]  }
 0x8fd   :  { %6317 = vmatprep.subr.bf16.mxu0 %v9442_v31  ;;  %v9523_v31 = vld [vmem:[#allocation21 + $0xe4] ss:$48 sps:$4 sm:$0xff]  }
 0x900   :  { %6318 = vmatpush2.bf16.msra.mxu0 %v9440_v40  ;;  %v9526_v40 = vld [vmem:[#allocation22 + $0x684] ss:$48 sps:$4 sm:$0xff]  }
 0x901   :  { %6319 = vmatprep.subr.bf16.mxu0 %v9448_v41 }
 0x904   :  { %6320 = vmatpush2.bf16.msra.mxu0 %v9446_v47  ;;  %v9524_v47 = vld [vmem:[#allocation22 + $0x680] ss:$48 sps:$4 sm:$0xff]  }
 0x905   :  { %6321 = vmatprep.subr.bf16.mxu0 %v9454_v1  ;;  %v9529_v1 = vld [vmem:[#allocation21 + $0x84] ss:$48 sps:$4 sm:$0xff]  }
 0x908   :  { %6322 = vmatpush2.bf16.msra.mxu0 %v9452_v44  ;;  %v9532_v44 = vld [vmem:[#allocation22 + $0x624] ss:$48 sps:$4 sm:$0xff]  }
 0x909   :  { %6323 = vmatprep.subr.bf16.mxu0 %v9460_v30 }
 0x90c   :  { %6324 = vmatpush2.bf16.msra.mxu0 %v9458_v35  ;;  %v9527_v35 = vld [vmem:[#allocation21 + $0x80] ss:$48 sps:$4 sm:$0xff]  }
 0x90d   :  { %6325 = vmatprep.subr.bf16.mxu0 %v9466_v36  ;;  %v9530_v36 = vld [vmem:[#allocation22 + $0x620] ss:$48 sps:$4 sm:$0xff]  }
 0x910   :  { %6326 = vmatpush2.bf16.msra.mxu0 %v9464_v21  ;;  %v9535_v21 = vld [vmem:[#allocation21 + $0x24] ss:$48 sps:$4 sm:$0xff]  }
 0x911   :  { %6327 = vmatprep.subr.bf16.mxu0 %v9472_v17  ;;  %v9538_v17 = vld [vmem:[#allocation22 + $0x2cc] ss:$48 sps:$4 sm:$0xff]  }
 0x913   :  { %v10577_v28 = vpop.f32.mrf.mxu1 }
 0x914   :  { %6328 = vmatpush2.bf16.msra.mxu0 %v9470_v39  ;;  %v9533_v39 = vld [vmem:[#allocation21 + $0x20] ss:$48 sps:$4 sm:$0xff]  }
 0x915   :  { %6329 = vmatprep.subr.bf16.mxu0 %v9478_v48  ;;  %v10579_v41 = vpop.f32.mrf.mxu1  ;;  %v9536_v48 = vld [vmem:[#allocation22 + $0x2c8] ss:$48 sps:$4 sm:$0xff]  }
 0x917   :  { %v6380_v43 = vpop.f32.mrf.mxu1 }
 0x918   :  { %6330 = vmatpush2.bf16.msra.mxu0 %v9476_v49  ;;  %v9541_v49 = vld [vmem:[#allocation22 + $0x26c] ss:$48 sps:$4 sm:$0xff]   ;;  %v9578_v43 = vld [vmem:[#allocation22 + $0x388] ss:$48 sps:$4 sm:$0xff]  }
 0x919   :  { %6331 = vmatprep.subr.bf16.mxu0 %v9484_v50  ;;  %v6381_v30 = vpop.f32.mrf.mxu1 }
 0x91a   :  { %v9581_v30 = vld [vmem:[#allocation22 + $0x328] ss:$48 sps:$4 sm:$0xff]  }
 0x91c   :  { %6332 = vmatpush2.bf16.msra.mxu0 %v9482_v51  ;;  %v9539_v51 = vld [vmem:[#allocation22 + $0x268] ss:$48 sps:$4 sm:$0xff]  }
 0x91d   :  { %6424 = vmatprep.subr.bf16.mxu0 %v9490_v52 }
 0x91f   :  { %v4248_v56 = vpop.f32.mrf.mxu0  ;;  %6334 = vmatmul.mubr.bf16.vlgmr.msra.gmra.mxu0 %v10532_v13 }
 0x920   :  { %v10567_v58 = vpack.c.bf16 %v4248_v56, %v4248_v56  ;;  %6425 = vmatpush1.bf16.msra.mxu0 %v9488_v53  ;;  %6456 = vmatprep.mubr.bf16.mxu0 %v10078_v4  ;;  %v9544_v53 = vld [vmem:[#allocation22 + $0x20c] ss:$48 sps:$4 sm:$0xff]   ;;  %v9542_v56 = vld [vmem:[#allocation22 + $0x208] ss:$48 sps:$4 sm:$0xff]  }
 0x921   :  { %v8549_v19 = vpop.f32.mrf.mxu0  ;;  %6426 = vmatprep.subr.bf16.mxu0 %v9496_v55 }
 0x922   :  { %8277 = vmatmul.mubr.msk.bf16.vlgmr.msra.gmra.mxu1 %vm314_vm0, %v10567_v58  ;;  %v9548_v19 = vld [vmem:[#allocation22 + $0x148] ss:$48 sps:$4 sm:$0xff]  }
 0x923   :  { %6881 = vmatpush1.bf16.msra.mxu1 %v9491_v57  ;;  %v4251_v0 = vpop.f32.mrf.mxu0  ;;  %6904 = vmatprep.mubr.bf16.mxu1 %v10078_v4 }
 0x924   :  { %6427 = vmatpush1.bf16.msra.mxu0 %v9494_v59  ;;  %6882 = vmatprep.subr.bf16.mxu1 %v9499_v60  ;;  %v9547_v59 = vld [vmem:[#allocation22 + $0x1ac] ss:$48 sps:$4 sm:$0xff]   ;;  %v9545_v60 = vld [vmem:[#allocation22 + $0x1a8] ss:$48 sps:$4 sm:$0xff]  }
 0x925   :  { %v8550_v9 = vpop.f32.mrf.mxu0  ;;  %6428 = vmatprep.subr.bf16.mxu0 %v9502_v62  ;;  %v9551_v62 = vld [vmem:[#allocation22 + $0xe8] ss:$48 sps:$4 sm:$0xff]   ;;  %v9556_v0 = vld [vmem:[#allocation22 + $0x8c] ss:$48 sps:$4 sm:$0xff]  }
 0x926   :  { %v9557_v9 = vld [vmem:[#allocation22 + $0x28] ss:$48 sps:$4 sm:$0xff]  }
 0x927   :  { %6883 = vmatpush1.bf16.msra.mxu1 %v9497_v3  ;;  %v9554_v3 = vld [vmem:[#allocation22 + $0x88] ss:$48 sps:$4 sm:$0xff]  }
 0x928   :  { %6429 = vmatpush1.bf16.msra.mxu0 %v9500_v6  ;;  %6884 = vmatprep.subr.bf16.mxu1 %v9505_v7  ;;  %v9559_v7 = vld [vmem:[#allocation22 + $0x2c] ss:$48 sps:$4 sm:$0xff]  }
 0x929   :  { %6430 = vmatprep.subr.bf16.mxu0 %v9508_v10 }
 0x92b   :  { %6885 = vmatpush1.bf16.msra.mxu1 %v9503_v16 }
 0x92c   :  { %6431 = vmatpush1.bf16.msra.mxu0 %v9506_v18  ;;  %6886 = vmatprep.subr.bf16.mxu1 %v9511_v24  ;;  %v9560_v18 = vld [vmem:[#allocation22 + $0x5c8] ss:$48 sps:$4 sm:$0xff]   ;;  %v9565_v24 = vld [vmem:[#allocation22 + $0x56c] ss:$48 sps:$4 sm:$0xff]  }
 0x92d   :  { %6432 = vmatprep.subr.bf16.mxu0 %v9514_v25  ;;  %v9563_v25 = vld [vmem:[#allocation22 + $0x568] ss:$48 sps:$4 sm:$0xff]  }
 0x92f   :  { %6887 = vmatpush1.bf16.msra.mxu1 %v9509_v26  ;;  %v9568_v26 = vld [vmem:[#allocation22 + $0x50c] ss:$48 sps:$4 sm:$0xff]  }
 0x930   :  { %6433 = vmatpush1.bf16.msra.mxu0 %v9512_v27  ;;  %6962 = vmatprep.subr.bf16.mxu1 %v9517_v20  ;;  %v9566_v27 = vld [vmem:[#allocation22 + $0x508] ss:$48 sps:$4 sm:$0xff]   ;;  %v9571_v20 = vld [vmem:[#allocation22 + $0x4ac] ss:$48 sps:$4 sm:$0xff]  }
 0x931   :  { %6434 = vmatprep.subr.bf16.mxu0 %v9520_v22  ;;  %v9569_v22 = vld [vmem:[#allocation22 + $0x4a8] ss:$48 sps:$4 sm:$0xff]  }
 0x932   :  { %8279 = vmatmul.mubr.msk.bf16.vlgmr.msra.gmra.mxu1 %vm314_vm0, %v10567_v58 }
 0x933   :  { %6963 = vmatpush1.bf16.msra.mxu1 %v9515_v23  ;;  %6986 = vmatprep.mubr.bf16.mxu1 %v10078_v4  ;;  %v9574_v23 = vld [vmem:[#allocation22 + $0x44c] ss:$48 sps:$4 sm:$0xff]  }
 0x934   :  { %6435 = vmatpush1.bf16.msra.mxu0 %v9518_v29  ;;  %6964 = vmatprep.subr.bf16.mxu1 %v9523_v31  ;;  %v9572_v29 = vld [vmem:[#allocation22 + $0x448] ss:$48 sps:$4 sm:$0xff]   ;;  %v9577_v31 = vld [vmem:[#allocation22 + $0x3ec] ss:$48 sps:$4 sm:$0xff]  }
 0x935   :  { %6436 = vmatprep.subr.bf16.mxu0 %v9526_v40  ;;  %v9575_v40 = vld [vmem:[#allocation22 + $0x3e8] ss:$48 sps:$4 sm:$0xff]  }
 0x937   :  { %6965 = vmatpush1.bf16.msra.mxu1 %v9521_v42  ;;  %v9580_v42 = vld [vmem:[#allocation22 + $0x38c] ss:$48 sps:$4 sm:$0xff]  }
 0x938   :  { %6437 = vmatpush1.bf16.msra.mxu0 %v9524_v47  ;;  %6966 = vmatprep.subr.bf16.mxu1 %v9529_v1  ;;  %v9583_v1 = vld [vmem:[#allocation22 + $0x32c] ss:$48 sps:$4 sm:$0xff]  }
 0x939   :  { %6438 = vmatprep.subr.bf16.mxu0 %v9532_v44 }
 0x93b   :  { %6967 = vmatpush1.bf16.msra.mxu1 %v9527_v35 }
 0x93c   :  { %6439 = vmatpush1.bf16.msra.mxu0 %v9530_v36  ;;  %6968 = vmatprep.subr.bf16.mxu1 %v9535_v21  ;;  %v9586_v36 = vld [vmem:[#allocation21 + $0x12c] ss:$48 sps:$4 sm:$0xff]  }
 0x93d   :  { %6465 = vmatprep.subr.bf16.mxu0 %v9538_v17  ;;  %v9584_v17 = vld [vmem:[#allocation21 + $0x128] ss:$48 sps:$4 sm:$0xff]  }
 0x93f   :  { %6969 = vmatpush1.bf16.msra.mxu1 %v9533_v39  ;;  %v10584_v50 = vpop.f32.mrf.mxu0  ;;  %6457 = vmatmul.mubr.bf16.vlgmr.msra.gmra.mxu0 %v10539_v46  ;;  %v9550_v46 = vld [vmem:[#allocation22 + $0x14c] ss:$48 sps:$4 sm:$0xff]  }
 0x940   :  { %6466 = vmatpush1.bf16.msra.mxu0 %v9536_v48  ;;  %6497 = vmatprep.mubr.bf16.mxu0 %v10527_v45  ;;  %v9553_v45 = vld [vmem:[#allocation22 + $0xec] ss:$48 sps:$4 sm:$0xff]  }
 0x941   :  { %v10588_v52 = vpop.f32.mrf.mxu0  ;;  %6467 = vmatprep.subr.bf16.mxu0 %v9541_v49  ;;  %v9589_v39 = vld [vmem:[#allocation21 + $0xcc] ss:$48 sps:$4 sm:$0xff]   ;;  %v9587_v49 = vld [vmem:[#allocation21 + $0xc8] ss:$48 sps:$4 sm:$0xff]  }
 0x942   :  { %8281 = vmatmul.mubr.msk.bf16.vlgmr.msra.gmra.mxu1 %vm314_vm0, %v10567_v58 }
 0x943   :  { %v6134_v55 = vpop.f32.mrf.mxu0 }
 0x944   :  { %6468 = vmatpush1.bf16.msra.mxu0 %v9539_v51 }
 0x945   :  { %v6135_v57 = vpop.f32.mrf.mxu0  ;;  %6469 = vmatprep.subr.bf16.mxu0 %v9544_v53  ;;  %v9592_v53 = vld [vmem:[#allocation21 + $0x6c] ss:$48 sps:$4 sm:$0xff]  }
 0x948   :  { %6470 = vmatpush1.bf16.msra.mxu0 %v9542_v56  ;;  %v9590_v56 = vld [vmem:[#allocation21 + $0x68] ss:$48 sps:$4 sm:$0xff]  }
 0x949   :  { %6471 = vmatprep.subr.bf16.mxu0 %v9547_v59  ;;  %v9595_v59 = vld [vmem:[#allocation21 + $0xc] ss:$48 sps:$4 sm:$0xff]  }
 0x94c   :  { %6472 = vmatpush1.bf16.msra.mxu0 %v9545_v60  ;;  %v9593_v60 = vld [vmem:[#allocation21 + $0x8] ss:$48 sps:$4 sm:$0xff]  }
 0x94d   :  { %6473 = vmatprep.subr.bf16.mxu0 %v9550_v46  ;;  %v9598_v46 = vld [vmem:[#allocation21 + $0x13c] ss:$48 sps:$4 sm:$0xff]  }
 0x950   :  { %6474 = vmatpush1.bf16.msra.mxu0 %v9548_v19  ;;  %v9601_v19 = vld [vmem:[#allocation21 + $0xdc] ss:$48 sps:$4 sm:$0xff]  }
 0x951   :  { %6475 = vmatprep.subr.bf16.mxu0 %v9553_v45  ;;  %v9599_v45 = vld [vmem:[#allocation21 + $0xd8] ss:$48 sps:$4 sm:$0xff]  }
 0x954   :  { %6476 = vmatpush1.bf16.msra.mxu0 %v9551_v62  ;;  %v10592_v6 = vpop.f32.mrf.mxu1  ;;  %v9604_v62 = vld [vmem:[#allocation21 + $0x7c] ss:$48 sps:$4 sm:$0xff]  }
 0x955   :  { %6477 = vmatprep.subr.bf16.mxu0 %v9556_v0  ;;  %v9602_v0 = vld [vmem:[#allocation21 + $0x78] ss:$48 sps:$4 sm:$0xff]  }
 0x956   :  { %v10594_v8 = vpop.f32.mrf.mxu1 }
 0x958   :  { %6478 = vmatpush1.bf16.msra.mxu0 %v9554_v3  ;;  %v6421_v10 = vpop.f32.mrf.mxu1  ;;  %v9607_v3 = vld [vmem:[#allocation21 + $0x1c] ss:$48 sps:$4 sm:$0xff]  }
 0x959   :  { %6479 = vmatprep.subr.bf16.mxu0 %v9559_v7  ;;  %v9605_v7 = vld [vmem:[#allocation21 + $0x18] ss:$48 sps:$4 sm:$0xff]  }
 0x95a   :  { %v6422_v16 = vpop.f32.mrf.mxu1  ;;  %v9608_v10 = vld [vmem:[#allocation21 + $0x148] ss:$48 sps:$4 sm:$0xff]  }
 0x95c   :  { %6480 = vmatpush1.bf16.msra.mxu0 %v9557_v9  ;;  %v9610_v9 = vld [vmem:[#allocation21 + $0x14c] ss:$48 sps:$4 sm:$0xff]  }
 0x95d   :  { %6481 = vmatprep.subr.bf16.mxu0 %v9562_v11  ;;  %v9613_v11 = vld [vmem:[#allocation21 + $0xec] ss:$48 sps:$4 sm:$0xff]  }
 0x960   :  { %6482 = vmatpush2.bf16.msra.mxu0 %v9560_v18  ;;  %v9611_v18 = vld [vmem:[#allocation21 + $0xe8] ss:$48 sps:$4 sm:$0xff]  }
 0x961   :  { %6483 = vmatprep.subr.bf16.mxu0 %v9565_v24 }
 0x964   :  { %6484 = vmatpush2.bf16.msra.mxu0 %v9563_v25  ;;  %v9616_v25 = vld [vmem:[#allocation21 + $0x8c] ss:$48 sps:$4 sm:$0xff]  }
 0x965   :  { %6485 = vmatprep.subr.bf16.mxu0 %v9568_v26 }
 0x968   :  { %6486 = vmatpush2.bf16.msra.mxu0 %v9566_v27  ;;  %v9614_v27 = vld [vmem:[#allocation21 + $0x88] ss:$48 sps:$4 sm:$0xff]  }
 0x969   :  { %6487 = vmatprep.subr.bf16.mxu0 %v9571_v20 }
 0x96c   :  { %6488 = vmatpush2.bf16.msra.mxu0 %v9569_v22  ;;  %v9619_v22 = vld [vmem:[#allocation21 + $0x2c] ss:$48 sps:$4 sm:$0xff]  }
 0x96d   :  { %6489 = vmatprep.subr.bf16.mxu0 %v9574_v23  ;;  %v9617_v23 = vld [vmem:[#allocation21 + $0x28] ss:$48 sps:$4 sm:$0xff]  }
 0x970   :  { %6490 = vmatpush2.bf16.msra.mxu0 %v9572_v29  ;;  %v6131_v29 = vadd.f32 %v10584_v50, %v10556_v5 }
 0x971   :  { %6491 = vmatprep.subr.bf16.mxu0 %v9577_v31 }
 0x974   :  { %6492 = vmatpush2.bf16.msra.mxu0 %v9575_v40  ;;  %v10596_v47 = vpop.f32.mrf.mxu1 }
 0x975   :  { %6493 = vmatprep.subr.bf16.mxu0 %v9580_v42  ;;  %v6133_v42 = vadd.f32 %v10588_v52, %v10558_v54 }
 0x976   :  { %v10598_v44 = vpop.f32.mrf.mxu1 }
 0x978   :  { %6494 = vmatpush2.bf16.msra.mxu0 %v9578_v43  ;;  %v6544_v35 = vpop.f32.mrf.mxu1 }
 0x979   :  { %6495 = vmatprep.subr.bf16.mxu0 %v9583_v1 }
 0x97a   :  { %v6545_v21 = vpop.f32.mrf.mxu1 }
 0x97c   :  { %6496 = vmatpush2.bf16.msra.mxu0 %v9581_v30 }
 0x97d   :  { %6839 = vmatprep.subr.bf16.mxu0 %v9586_v36 }
 0x97f   :  { %v10600_v48 = vpop.f32.mrf.mxu0  ;;  %6498 = vmatmul.mubr.bf16.vlgmr.msra.gmra.mxu0 %v10532_v13  ;;  %v9596_v13 = vld [vmem:[#allocation21 + $0x138] ss:$48 sps:$4 sm:$0xff]  }
 0x980   :  { %6840 = vmatpush1.bf16.msra.mxu0 %v9584_v17  ;;  %6863 = vmatprep.mubr.bf16.mxu0 %v10078_v4 }
 0x981   :  { %v10604_v51 = vpop.f32.mrf.mxu0  ;;  %6841 = vmatprep.subr.bf16.mxu0 %v9589_v39 }
 0x983   :  { %v6175_v55 = vpop.f32.mrf.mxu0 }
 0x984   :  { %6842 = vmatpush1.bf16.msra.mxu0 %v9587_v49  ;;  %v9621_v55 = vld [vmem:[#allocation25 + $0x78] sm:$0xff]  }
 0x985   :  { %v6176_v57 = vpop.f32.mrf.mxu0  ;;  %6843 = vmatprep.subr.bf16.mxu0 %v9592_v53  ;;  %8440 = vmatprep.subr.bf16.mxu1 %v9621_v55 }
 0x986   :  { %v9623_v57 = vld [vmem:[#allocation25 + $0xb8] sm:$0xff]  }
 0x988   :  { %6844 = vmatpush1.bf16.msra.mxu0 %v9590_v56  ;;  %v9622_v56 = vld [vmem:[#allocation25 + $0x38] sm:$0xff]  }
 0x989   :  { %6845 = vmatprep.subr.bf16.mxu0 %v9595_v59  ;;  %8441 = vmatpush3.bf16.msra.mxu1 %v9622_v56  ;;  %v9624_v59 = vld [vmem:[#allocation25 + $0x70] sm:$0xff]  }
 0x98a   :  { %8442 = vmatprep.subr.bf16.mxu1 %v9624_v59 }
 0x98c   :  { %6846 = vmatpush1.bf16.msra.mxu0 %v9593_v60  ;;  %v9625_v60 = vld [vmem:[#allocation25 + $0x30] sm:$0xff]  }
 0x98d   :  { %6921 = vmatprep.subr.bf16.mxu0 %v9598_v46  ;;  %8443 = vmatpush3.bf16.msra.mxu1 %v9625_v60 }
 0x98f   :  { %8278 = vmatmul.mubr.msk.bf16.vlgmr.msra.gmra.mxu0 %vm314_vm0, %v10567_v58 }
 0x990   :  { %6922 = vmatpush1.bf16.msra.mxu0 %v9596_v13  ;;  %6945 = vmatprep.mubr.bf16.mxu0 %v10078_v4 }
 0x991   :  { %6923 = vmatprep.subr.bf16.mxu0 %v9601_v19  ;;  %v9627_v19 = vld [vmem:[#allocation25 + $0x68] sm:$0xff]  }
 0x992   :  { %8444 = vmatprep.subr.bf16.mxu1 %v9627_v19 }
 0x994   :  { %6924 = vmatpush1.bf16.msra.mxu0 %v9599_v45 }
 0x995   :  { %6925 = vmatprep.subr.bf16.mxu0 %v9604_v62 }
 0x998   :  { %6926 = vmatpush1.bf16.msra.mxu0 %v9602_v0  ;;  %v9628_v0 = vld [vmem:[#allocation25 + $0x28] sm:$0xff]  }
 0x999   :  { %6927 = vmatprep.subr.bf16.mxu0 %v9607_v3  ;;  %8445 = vmatpush3.bf16.msra.mxu1 %v9628_v0 }
 0x99c   :  { %6928 = vmatpush1.bf16.msra.mxu0 %v9605_v7 }
 0x99d   :  { %7003 = vmatprep.subr.bf16.mxu0 %v9610_v9  ;;  %v9629_v9 = vld [vmem:[#allocation25 + $0xa8] sm:$0xff]  }
 0x99f   :  { %v6294_v16 = vpop.f32.mrf.mxu0  ;;  %8280 = vmatmul.mubr.msk.bf16.vlgmr.msra.gmra.mxu0 %vm314_vm0, %v10567_v58 }
 0x9a0   :  { %7004 = vmatpush1.bf16.msra.mxu0 %v9608_v10  ;;  %7027 = vmatprep.mubr.bf16.mxu0 %v10078_v4  ;;  %v6295_v17 = vadd.f32 %v6294_v16, %v10570_v61  ;;  %v9630_v16 = vld [vmem:[#allocation25 + $0x60] sm:$0xff]  }
 0x9a1   :  { %v6296_v24 = vpop.f32.mrf.mxu0  ;;  %7005 = vmatprep.subr.bf16.mxu0 %v9613_v11  ;;  %8446 = vmatprep.subr.bf16.mxu1 %v9630_v16 }
 0x9a2   :  { %v6297_v5 = vadd.f32 %v6296_v24, %v10574_v63  ;;  %v9626_v63 = vld [vmem:[#allocation25 + $0xb0] sm:$0xff]   ;;  %v9631_v24 = vld [vmem:[#allocation25 + $0x20] sm:$0xff]  }
 0x9a3   :  { %v6298_v26 = vpop.f32.mrf.mxu0  ;;  %8447 = vmatpush3.bf16.msra.mxu1 %v9631_v24  ;;  %v10666_v24 = vld [vmem:[#allocation24 + $0x8] sm:$0xf] }
 0x9a4   :  { %7006 = vmatpush1.bf16.msra.mxu0 %v9611_v18  ;;  %v9633_v26 = vld [vmem:[#allocation25 + $0x58] sm:$0xff]  }
 0x9a5   :  { %v6299_v20 = vpop.f32.mrf.mxu0  ;;  %7007 = vmatprep.subr.bf16.mxu0 %v9616_v25  ;;  %8448 = vmatprep.subr.bf16.mxu1 %v9633_v26 }
 0x9a6   :  { %v9635_v20 = vld [vmem:[#allocation25 + $0x98] sm:$0xff]  }
 0x9a8   :  { %7008 = vmatpush1.bf16.msra.mxu0 %v9614_v27  ;;  %v9634_v27 = vld [vmem:[#allocation25 + $0x18] sm:$0xff]  }
 0x9a9   :  { %7009 = vmatprep.subr.bf16.mxu0 %v9619_v22  ;;  %v9636_v22 = vld [vmem:[#allocation25 + $0x50] sm:$0xff]   ;;  %8449 = vmatpush3.bf16.msra.mxu1 %v9634_v27  ;;  %v7066_v27 = vsub.s32 6, %v10322_v12 }
 0x9aa   :  { %8450 = vmatprep.subr.bf16.mxu1 %v9636_v22 }
 0x9ac   :  { %7010 = vmatpush1.bf16.msra.mxu0 %v9617_v23  ;;  %v9637_v23 = vld [vmem:[#allocation25 + $0x10] sm:$0xff]  }
 0x9ad   :  { %8551 = vmatprep.subr.bf16.mxu0 %v10079_v34  ;;  %8451 = vmatpush3.bf16.msra.mxu1 %v9637_v23 }
 0x9af   :  { %8282 = vmatmul.mubr.msk.bf16.vlgmr.msra.gmra.mxu0 %vm314_vm0, %v10567_v58 }
 0x9b0   :  { %8567 = vmatprep.mubr.msk.bf16.mxu0 %vm10080_vm8, %v10079_v34  ;;  %8552 = vmatpush3.bf16.msra.mxu0 %v9623_v57 }
 0x9b1   :  { %8553 = vmatprep.subr.bf16.mxu0 %v10079_v34 }
 0x9b4   :  { %8554 = vmatpush3.bf16.msra.mxu0 %v9626_v63 }
 0x9b5   :  { %8555 = vmatprep.subr.bf16.mxu0 %v10079_v34 }
 0x9b8   :  { %8556 = vmatpush3.bf16.msra.mxu0 %v9629_v9 }
 0x9b9   :  { %8557 = vmatprep.subr.bf16.mxu0 %v10079_v34 }
 0x9df   :  { %v10617_v4 = vpop.f32.mrf.mxu0 }
 0x9e1   :  { %v10621_v31 = vpop.f32.mrf.mxu0 }
 0x9e2   :  { %v6824_v40 = vpop.f32.mrf.mxu1 }
 0x9e3   :  { %v10625_v43 = vadd.f32 %v6824_v40, %v6131_v29  ;;  %v6339_v1 = vpop.f32.mrf.mxu0  ;;  %v9638_v29 = vld [vmem:[#allocation25 + $0x90] sm:$0xff]   ;;  %v9639_v40 = vld [vmem:[#allocation25 + $0x48] sm:$0xff]  }
 0x9e4   :  { %v6826_v30 = vpop.f32.mrf.mxu1  ;;  %8452 = vmatprep.subr.bf16.mxu1 %v9639_v40  ;;  %v9641_v1 = vld [vmem:[#allocation25 + $0x88] sm:$0xff]  }
 0x9e5   :  { %v10627_v35 = vadd.f32 %v6826_v30, %v6133_v42  ;;  %v6340_v58 = vpop.f32.mrf.mxu0  ;;  %v9640_v42 = vld [vmem:[#allocation25 + $0x8] sm:$0xff]   ;;  %v9642_v30 = vld [vmem:[#allocation25 + $0x40] sm:$0xff]  }
 0x9e6   :  { %v6828_v36 = vpop.f32.mrf.mxu1  ;;  %8453 = vmatpush3.bf16.msra.mxu1 %v9640_v42  ;;  %v9643_v58 = vld [vmem:[#allocation25] sm:$0xff]   ;;  %v6377_v42 = vadd.f32 %v10577_v28, %v10617_v4 }
 0x9e7   :  { %8454 = vmatprep.subr.bf16.mxu1 %v9642_v30  ;;  %v9644_v36 = vld [vmem:[#allocation25 + $0x80] sm:$0xff]  }
 0x9e8   :  { %v6829_v21 = vpop.f32.mrf.mxu1 }
 0x9e9   :  { %v7036_v21 = vld [vmem:[#allocation24] sm:$0xff] }
 0x9ea   :  { %8455 = vmatpush3.bf16.msra.mxu1 %v9643_v58  ;;  %v7067_v30 = vrot.slane %v7036_v21, %v7066_v27 }
 0x9f2   :  { %v6906_v39 = vpop.f32.mrf.mxu1 }
 0x9f3   :  { %v10631_v50 = vadd.f32 %v6906_v39, %v6295_v17  ;;  %v7043_v17 = vrot.slane %v7036_v21, %v10328_v15  ;;  %v7062_v39 = vsub.s32 5, %v10322_v12 }
 0x9f4   :  { %v6908_v49 = vpop.f32.mrf.mxu1 }
 0x9f5   :  { %v10633_v53 = vadd.f32 %v6908_v49, %v6297_v5  ;;  %v7047_v49 = vrot.slane %v7036_v21, %v10325_v14  ;;  %v7100_v55 = vadd.f32 %v7043_v17, %v10625_v43  ;;  %v7063_v56 = vrot.slane %v7036_v21, %v7062_v39 }
 0x9f6   :  { %v6910_v54 = vpop.f32.mrf.mxu1  ;;  %v7051_v43 = vrot.slane %v7036_v21, %v10356_v37 }
 0x9f7   :  { %v7058_v54 = vsub.s32 4, %v10322_v12  ;;  %v7105_v63 = vadd.f32 %v7063_v56, %v10633_v53  ;;  %v7055_v53 = vrot.slane %v7036_v21, %v10353_v33 }
 0x9f8   :  { %v6911_v52 = vpop.f32.mrf.mxu1 }
 0x9f9   :  { %v7059_v59 = vrot.slane %v7036_v21, %v7058_v54  ;;  %v8288_v19 = vmul.f32 -1.442695, %v7105_v63 }
 0x9ff   :  { %v6458_v61 = vpop.f32.mrf.mxu0 }
 0xa00   :  { %v6459_v46 = vadd.f32 %v6458_v61, %v10592_v6  ;;  %v8283_v61 = vmul.f32 -1.442695, %v7100_v55 }
 0xa01   :  { %v6460_v13 = vpop.f32.mrf.mxu0 }
 0xa02   :  { %v6461_v45 = vadd.f32 %v6460_v13, %v10594_v8  ;;  %v6988_v62 = vpop.f32.mrf.mxu1  ;;  %v9632_v8 = vld [vmem:[#allocation25 + $0xa0] sm:$0xff]   ;;  %v7104_v13 = vadd.f32 %v7059_v59, %v10631_v50  ;;  %9645 = vpow2.f32 %v8283_v61 }
 0xa03   :  { %v10639_v3 = vadd.f32 %v6988_v62, %v6459_v46  ;;  %v6462_v7 = vpop.f32.mrf.mxu0  ;;  %8558 = vmatpush3.bf16.msra.mxu0 %v9632_v8  ;;  %v6213_v62 = vadd.f32 %v10562_v32, %v10600_v48  ;;  %v7079_v48 = vrot.slane %v10666_v24, %v10325_v14 }
 0xa04   :  { %v6990_v10 = vpop.f32.mrf.mxu1  ;;  %8559 = vmatprep.subr.bf16.mxu0 %v10079_v34 }
 0xa05   :  { %v10641_v11 = vadd.f32 %v6990_v10, %v6461_v45  ;;  %v6463_v6 = vpop.f32.mrf.mxu0  ;;  %v8287_v45 = vmul.f32 -1.442695, %v7104_v13 }
 0xa06   :  { %v6992_v18 = vpop.f32.mrf.mxu1 }
 0xa07   :  { %8560 = vmatpush3.bf16.msra.mxu0 %v9635_v20  ;;  %v7109_v26 = vadd.f32 %v7079_v48, %v10641_v11  ;;  %v6379_v11 = vadd.f32 %v10579_v41, %v10621_v31  ;;  %v7169_v31 = vld [vmem:[%s10750_s8] sm:$0x3f] }
 0xa08   :  { %v6993_v25 = vpop.f32.mrf.mxu1  ;;  %8561 = vmatprep.subr.bf16.mxu0 %v10079_v34 }
 0xa0b   :  { %8562 = vmatpush3.bf16.msra.mxu0 %v9638_v29  ;;  %v7070_v29 = vsub.s32 7, %v10322_v12 }
 0xa0c   :  { %8563 = vmatprep.subr.bf16.mxu0 %v10079_v34 }
 0xa0d   :  { %v7071_v17 = vrot.slane %v7036_v21, %v7070_v29 }
 0xa0f   :  { %8564 = vmatpush3.bf16.msra.mxu0 %v9641_v1  ;;  %v9646_v25 = vpop.eup %9645  ;;  %v8289_v1 = vmul.f32 -1.442695, %v7109_v26 }
 0xa10   :  { %8565 = vmatprep.subr.bf16.mxu0 %v10079_v34  ;;  %v7101_v34 = vadd.f32 %v7047_v49, %v10627_v35  ;;  %v6215_v35 = vadd.f32 %v10564_v38, %v10604_v51  ;;  %v7075_v51 = vrot.slane %v10666_v24, %v10328_v15  ;;  %v7121_v20 = vadd.f32 1.0, %v9646_v25 }
 0xa12   :  { %v8284_v46 = vmul.f32 -1.442695, %v7101_v34  ;;  %v7108_v40 = vadd.f32 %v7075_v51, %v10639_v3  ;;  %v7171_v34 = vcombine.high %v7169_v31, %v7169_v31 }
 0xa13   :  { %8566 = vmatpush3.bf16.msra.mxu0 %v9644_v36 }
 0xa14   :  { %9647 = vpow2.f32 %v8284_v46  ;;  %v7083_v46 = vrot.slane %v10666_v24, %v10356_v37 }
 0xa15   :  { %9649 = vpow2.f32 %v8288_v19 }
 0xa16   :  { %9651 = vpow2.f32 %v8287_v45 }
 0xa21   :  { %v9648_v38 = vpop.eup %9647 }
 0xa22   :  { %v9650_v22 = vpop.eup %9649  ;;  %v7122_v23 = vadd.f32 1.0, %v9648_v38 }
 0xa23   :  { %v9652_v14 = vpop.eup %9651  ;;  %v7141_v58 = vadd.f32 1.0, %v9650_v22 }
 0xa24   :  { %v7140_v39 = vadd.f32 1.0, %v9652_v14 }
 0xa3f   :  { %v10650_v5 = vpop.f32.mrf.mxu0 }
 0xa40   :  { %v6541_v63 = vadd.f32 %v10596_v47, %v10650_v5 }
 0xa41   :  { %v10654_v52 = vpop.f32.mrf.mxu0 }
 0xa43   :  { %v6503_v57 = vpop.f32.mrf.mxu0 }
 0xa45   :  { %v6504_v60 = vpop.f32.mrf.mxu0 }
 0xa46   :  { %v7178_v60 = vrot.slane %v7169_v31, %v10512_v2 }
 0xa4f   :  { %v6865_v0 = vpop.f32.mrf.mxu0 }
 0xa50   :  { %v6866_v7 = vadd.f32 %v6865_v0, %v6213_v62  ;;  %v7185_v62 = vrot.slane %v7171_v34, %v10512_v2  ;;  %v8292_v34 = vld [vmem:[#allocation27] ss:$0 sm:$0xff] }
 0xa51   :  { %v6867_v9 = vpop.f32.mrf.mxu0 }
 0xa52   :  { %v7102_v50 = vadd.f32 %v7051_v43, %v6866_v7  ;;  %v6868_v10 = vadd.f32 %v6867_v9, %v6215_v35  ;;  %v6543_v43 = vadd.f32 %v10598_v44, %v10654_v52  ;;  %v7087_v35 = vrot.slane %v10666_v24, %v10353_v33 }
 0xa53   :  { %v6869_v6 = vpop.f32.mrf.mxu0 }
 0xa54   :  { %v8285_v16 = vmul.f32 -1.442695, %v7102_v50  ;;  %v7103_v18 = vadd.f32 %v7055_v53, %v6868_v10  ;;  %v7186_v53 = vcombine.high %v7178_v60, %v7178_v60 }
 0xa55   :  { %v6870_v32 = vpop.f32.mrf.mxu0 }
 0xa56   :  { %9653 = vpow2.f32 %v8285_v16  ;;  %v8286_v8 = vmul.f32 -1.442695, %v7103_v18 }
 0xa58   :  { %9655 = vpow2.f32 %v8286_v8 }
 0xa59   :  { %9657 = vrcp.f32 %v7121_v20 }
 0xa5a   :  { %9659 = vrcp.f32 %v7122_v23 }
 0xa5b   :  { %9661 = vtanh.f32 %v7108_v40 }
 0xa5c   :  { %9663 = vpow2.f32 %v8289_v1 }
 0xa5d   :  { %9665 = vrcp.f32 %v7141_v58 }
 0xa5f   :  { %v6947_v15 = vpop.f32.mrf.mxu0 }
 0xa60   :  { %v6948_v36 = vadd.f32 %v6947_v15, %v6377_v42 }
 0xa61   :  { %v6949_v12 = vpop.f32.mrf.mxu0 }
 0xa62   :  { %v7106_v3 = vadd.f32 %v7067_v30, %v6948_v36  ;;  %v6950_v49 = vadd.f32 %v6949_v12, %v6379_v11 }
 0xa63   :  { %v9654_v54 = vpop.eup %9653  ;;  %v6951_v28 = vpop.f32.mrf.mxu0 }
 0xa64   :  { %v7123_v4 = vadd.f32 1.0, %v9654_v54  ;;  %9667 = vtanh.f32 %v7106_v3  ;;  %v7107_v55 = vadd.f32 %v7071_v17, %v6950_v49 }
 0xa65   :  { %v9656_v56 = vpop.eup %9655  ;;  %9669 = vrcp.f32 %v7140_v39  ;;  %v6952_v57 = vpop.f32.mrf.mxu0 }
 0xa66   :  { %9671 = vrcp.f32 %v7123_v4  ;;  %v7139_v41 = vadd.f32 1.0, %v9656_v56  ;;  %v9658_v21 = vpop.eup %9657 }
 0xa67   :  { %9673 = vtanh.f32 %v7107_v55  ;;  %v9660_v59 = vpop.eup %9659 }
 0xa68   :  { %9675 = vrcp.f32 %v7139_v41  ;;  %v9662_v61 = vpop.eup %9661 }
 0xa69   :  { %v9664_v13 = vpop.eup %9663 }
 0xa6a   :  { %v9666_v45 = vpop.eup %9665  ;;  %v7160_v6 = vadd.f32 1.0, %v9664_v13 }
 0xa6b   :  { %v7192_v32 = vmul.f32 %v9666_v45, %v7185_v62 }
 0xa6f   :  { %v7029_v19 = vpop.f32.mrf.mxu0 }
 0xa70   :  { %v7030_v0 = vadd.f32 %v7029_v19, %v6541_v63 }
 0xa71   :  { %v9668_v7 = vpop.eup %9667  ;;  %v7031_v9 = vpop.f32.mrf.mxu0 }
 0xa72   :  { %v9670_v50 = vpop.eup %9669  ;;  %v7193_v47 = vmul.f32 %v9668_v7, %v9658_v21  ;;  %v7110_v5 = vadd.f32 %v7083_v46, %v7030_v0  ;;  %v7032_v10 = vadd.f32 %v7031_v9, %v6543_v43 }
 0xa73   :  { %v9672_v37 = vpop.eup %9671  ;;  %v7033_v16 = vpop.f32.mrf.mxu0  ;;  %v7191_v52 = vmul.f32 %v9670_v50, %v7186_v53 }
 0xa74   :  { %v9674_v18 = vpop.eup %9673  ;;  %v7195_v48 = vmul.f32 %v9672_v37, %v9662_v61  ;;  %v8290_v8 = vmul.f32 -1.442695, %v7110_v5  ;;  %v7111_v25 = vadd.f32 %v7087_v35, %v7032_v10 }
 0xa75   :  { %v9676_v44 = vpop.eup %9675  ;;  %v7194_v38 = vmul.f32 %v9674_v18, %v9660_v59  ;;  %v7034_v51 = vpop.f32.mrf.mxu0 }
 0xa76   :  { %v7198_v33 = vadd.f32 %v7195_v48, %v7192_v32  ;;  %v7190_v24 = vmul.f32 %v9676_v44, %v7178_v60  ;;  %9677 = vpow2.f32 %v8290_v8  ;;  %v8291_v26 = vmul.f32 -1.442695, %v7111_v25 }
 0xa77   :  { %v7197_v27 = vadd.f32 %v7194_v38, %v7191_v52  ;;  %9679 = vrcp.f32 %v7160_v6 }
 0xa78   :  { %v7196_v20 = vadd.f32 %v7193_v47, %v7190_v24  ;;  %9681 = vpow2.f32 %v8291_v26  ;;  %v7222_v23 = vrot.slane %v7198_v33, %v10512_v2 }
 0xa7a   :  { %9683 = vtanh.f32 %v7196_v20  ;;  %v7208_v22 = vcombine.low %v7196_v20, %v7197_v27 }
 0xa7b   :  { %9685 = vtanh.f32 %v7197_v27 }
 0xa7c   :  { %v7215_v29 = vrot.slane %v7208_v22, %v10512_v2 }
 0xa7e   :  { %v7223_v40 = vcombine.low %v7215_v29, %v7222_v23 }
 0xa80   :  { %7225 = vst [vmem:[%s10729_s23] sm:$0x3f] %v7223_v40 }
 0xa83   :  { %v9678_v14 = vpop.eup %9677 }
 0xa84   :  { %v7161_v42 = vadd.f32 1.0, %v9678_v14  ;;  %v9680_v1 = vpop.eup %9679 }
 0xa85   :  { %v9682_v30 = vpop.eup %9681 }
 0xa86   :  { %9687 = vrcp.f32 %v7161_v42  ;;  %v7162_v15 = vadd.f32 1.0, %v9682_v30 }
 0xa87   :  { %v9684_v58 = vpop.eup %9683  ;;  %9689 = vtanh.f32 %v7198_v33 }
 0xa88   :  { %v7202_v11 = vmul.f32 %v9684_v58, %v9680_v1  ;;  %9691 = vrcp.f32 %v7162_v15  ;;  %v9686_v36 = vpop.eup %9685 }
 0xa8a   :  { %v7247_v4 = vpack.c.bf16 %v7202_v11, %v7202_v11 }
 0xa93   :  { %v9688_v17 = vpop.eup %9687 }
 0xa94   :  { %v7203_v39 = vmul.f32 %v9688_v17, %v9686_v36  ;;  %v9690_v12 = vpop.eup %9689 }
 0xa95   :  { %v9692_v3 = vpop.eup %9691 }
 0xa96   :  { %v7229_v49 = vcombine.low %v7202_v11, %v7203_v39  ;;  %v7248_v54 = vpack.c.bf16 %v7203_v39, %v7203_v39  ;;  %v7204_v28 = vmul.f32 %v9692_v3, %v9690_v12 }
 0xa98   :  { %v7236_v55 = vrot.slane %v7229_v49, %v10512_v2  ;;  %7481 = vmatprep.mubr.bf16.mxu1 %v7248_v54  ;;  %v7243_v56 = vrot.slane %v7204_v28, %v10512_v2  ;;  %v7249_v57 = vpack.c.bf16 %v7204_v28, %v7204_v28 }
 0xa99   :  { %7482 = vmatmul.mubr.bf16.vlgmr.msra.gmra.mxu1 %v7247_v4 }
 0xa9a   :  { %v7244_v41 = vcombine.low %v7236_v55, %v7243_v56  ;;  %8568 = vmatmul.mubr.bf16.vlgmr.msra.gmra.mxu0 %v7249_v57 }
 0xa9c   :  { %7246 = vst [vmem:[%s10728_s22] sm:$0x3f] %v7244_v41 }
 0xb59   :  { %v8456_v31 = vpop.f32.mrf.mxu1 }
 0xb5a   :  { %v7523_v21 = vpop.f32.mrf.mxu0 }
 0xb5b   :  { %v8457_v59 = vpop.f32.mrf.mxu1 }
 0xb5c   :  { %v8458_v60 = vadd.f32 %v8457_v59, %v8456_v31  ;;  %v8569_v61 = vpop.f32.mrf.mxu0 }
 0xb5d   :  { %v8459_v63 = vpop.f32.mrf.mxu1 }
 0xb5e   :  { %v7484_v46 = vadd.f32 %v8458_v60, %v8292_v34  ;;  %v7526_v13 = vpop.f32.mrf.mxu0 }
 0xb5f   :  { %v8460_v19 = vpop.f32.mrf.mxu1 }
 0xb60   :  { %v7524_v45 = vadd.f32 %v7523_v21, %v7484_v46  ;;  %v8570_v2 = vpop.f32.mrf.mxu0 }
 0xb62   :  { %7529 = vst [vmem:[%s10751_s17] sm:$0x3] %v7524_v45 }
 0xb63   :  { %7542 = vsyncpa [#allocation3], 1 }
 0xb64   :  { %7543 = vsyncpa [#allocation5], 1 }
 0xb65   :  { %7544 = vsyncpa [#allocation8], 1 }
 0xb66   :  { %7545 = vsyncpa [#allocation11], 1 }
 0xb67   :  { %7546 = vsyncpa [#allocation14], 1 }
 0xb68   :  { %7547 = vsyncpa [#allocation17], 1 }
 0xb69   :  { %7548 = vsyncpa [#allocation20], 1 }
 0xb6a   :  { %7549 = vsyncpa [#allocation23], 1 }
 0xb6b   :  { %7550 = vsyncpa [#allocation26], 1 }

</bundles_post_ra>
